<compile_context>
chip_gen: v7x
topology: tpu7x:2x2x1
jax: 0.10.0
libtpu: 0.0.40
codegen_flags: <defaults>
</compile_context>

<pallas_src>
import functools

import jax
import jax.numpy as jnp
from jax.experimental import pallas as pl
from jax.experimental.pallas import tpu as pltpu


# ----------------------------------------------------------------------------
# Helpers
# ----------------------------------------------------------------------------
def _round_up(x, m):
    return ((x + m - 1) // m) * m


def _pick_tile(dim, candidates):
    for c in candidates:
        if dim % c == 0:
            return c
    return dim  # fall back to the full dimension (e.g. K = 48 for layer 0)


# ----------------------------------------------------------------------------
# Pallas kernel 1: tiled bf16 matmul with fused per-channel epilogue
#   out = leaky_relu(acc * scale + bias)   (relu optional, trace-time flag)
# ----------------------------------------------------------------------------
def _mm_epilogue_kernel(a_ref, b_ref, s_ref, c_ref, o_ref, acc_ref, *,
                        relu, slope):
    @pl.when(pl.program_id(2) == 0)
    def _():
        acc_ref[...] = jnp.zeros_like(acc_ref)

    acc_ref[...] += jnp.dot(a_ref[...], b_ref[...],
                            preferred_element_type=jnp.float32)

    @pl.when(pl.program_id(2) == pl.num_programs(2) - 1)
    def _():
        y = acc_ref[...] * s_ref[...] + c_ref[...]
        if relu:
            y = jnp.where(y >= 0.0, y, slope * y)
        o_ref[...] = y


def matmul_fused(a, b_packed, scale, bias, *, relu, slope=0.2):
    """a: (M, K) any float dtype, b_packed: (K, Np) bf16 (pre-packed weights),
    scale/bias: (1, Np) f32 per-output-channel epilogue. Returns (Mp, Np) f32."""
    M, K = a.shape
    Kb, Np = b_packed.shape
    assert K == Kb and Np % 128 == 0

    Mp = max(128, _round_up(M, 128))
    tm = _pick_tile(Mp, (512, 256, 128))
    tn = _pick_tile(Np, (512, 256, 128))
    tk = _pick_tile(K, (512, 256, 128))   # -> full K (e.g. 48) when small

    # Expose >=2 parallel blocks so both v7x TensorCores get work.
    if (Mp // tm) * (Np // tn) < 2:
        if Np // tn < 2 and tn >= 256:
            tn //= 2
        elif Mp // tm < 2 and tm >= 256:
            tm //= 2

    ap = a if Mp == M else jnp.pad(a, ((0, Mp - M), (0, 0)))
    ap = ap.astype(jnp.bfloat16)

    kernel = functools.partial(_mm_epilogue_kernel, relu=relu, slope=slope)
    out = pl.pallas_call(
        kernel,
        out_shape=jax.ShapeDtypeStruct((Mp, Np), jnp.float32),
        grid_spec=pltpu.PrefetchScalarGridSpec(
            num_scalar_prefetch=0,
            grid=(Mp // tm, Np // tn, K // tk),
            in_specs=[pl.BlockSpec((tm, tk), lambda i, j, k: (i, k)),
                      pl.BlockSpec((tk, tn), lambda i, j, k: (k, j)),
                      pl.BlockSpec((1, tn), lambda i, j, k: (0, j)),
                      pl.BlockSpec((1, tn), lambda i, j, k: (0, j))],
            out_specs=pl.BlockSpec((tm, tn), lambda i, j, k: (i, j)),
            scratch_shapes=[pltpu.VMEM((tm, tn), jnp.float32)]),
        compiler_params=pltpu.CompilerParams(
            dimension_semantics=("parallel", "parallel", "arbitrary"),
            vmem_limit_bytes=32 * 1024 * 1024),
    )(ap, b_packed, scale, bias)
    return out


# ----------------------------------------------------------------------------
# Pallas kernel 2: fused  importance_map -> 5x5 dilation -> rec_loss
# (single launch; whole tensors live in VMEM)
# ----------------------------------------------------------------------------
def _fused_rec_loss_kernel(xp_ref, tp_ref, r_ref, o_ref):
    xp = xp_ref[...]                      # (N, C, H+4, W+4) padded with 1.0
    tp = tp_ref[...]
    r = r_ref[...]                        # (N, C, H, W)
    H, W = r_ref.shape[2], r_ref.shape[3]
    C = r_ref.shape[1]

    # importance map (0.1*where(..,100,0) folded to where(..,10,0))
    imp = 100.0 * jnp.abs(xp - tp) + 0.1
    imp = imp + jnp.where(xp != 1.0, 10.0, 0.0) + jnp.where(tp != 1.0, 10.0, 0.0)
    imp = jnp.clip(imp, 0.0, 100.0)
    # Border pixels (x = t = 1.0) give imp = 0.1, the global minimum of the
    # clipped map, so they never change the sliding max (== geodesic border).

    # separable 5x5 sliding max: 1x5 along W (lanes), then 5x1 along H
    hmax = imp[:, :, :, 2:2 + W]
    for d in (0, 1, 3, 4):
        hmax = jnp.maximum(hmax, imp[:, :, :, d:d + W])
    dila = hmax[:, :, 2:2 + H, :]
    for d in (0, 1, 3, 4):
        dila = jnp.maximum(dila, hmax[:, :, d:d + H, :])

    t_in = tp[:, :, 2:2 + H, 2:2 + W]
    rec_map = dila * jnp.abs(t_in - r)

    s = jnp.sum(rec_map, axis=3)          # (N, C, H)
    s = jnp.sum(s, axis=2)                # (N, C)
    s = jnp.sum(s, axis=1, keepdims=True)  # (N, 1)
    per_sample = s * (10.0 / (C * H * W))
    o_ref[...] = jnp.broadcast_to(per_sample, o_ref.shape)


def rec_loss_fused_pallas(inputs, target_images, reconstructions):
    """rec_loss = 10 * mean_per_sample(dilate5x5(importance(x, t)) * |t - r|)."""
    N, C, H, W = inputs.shape
    pad = ((0, 0), (0, 0), (2, 2), (2, 2))
    xp = jnp.pad(inputs.astype(jnp.float32), pad, constant_values=1.0)
    tp = jnp.pad(target_images.astype(jnp.float32), pad, constant_values=1.0)
    out = pl.pallas_call(
        _fused_rec_loss_kernel,
        out_shape=jax.ShapeDtypeStruct((N, 128), jnp.float32),
    )(xp, tp, reconstructions.astype(jnp.float32))
    return out[:, 0]                      # (N,)


# ----------------------------------------------------------------------------
# NLayerDiscriminator (PatchGAN) built on the Pallas matmul kernel
# ----------------------------------------------------------------------------
def conv2d_pallas(x_nhwc, layer, padding=1, ksize=4):
    """x: (N, H, W, Cin) -> (N, OH, OW, Cout) via im2col + fused-epilogue matmul."""
    N, H, W, Cin = x_nhwc.shape
    stride = layer['stride']
    Cout = layer['cout']
    OH = (H + 2 * padding - ksize) // stride + 1
    OW = (W + 2 * padding - ksize) // stride + 1

    # im2col in bf16, NHWC -> K ordered (cin, kh, kw) to match the packed
    # PyTorch weight flattening; no large transpose needed.
    # TODO(synk): a direct Pallas conv kernel (window gather via index_map)
    # would avoid the KH*KW im2col inflation entirely.
    xp = jnp.pad(x_nhwc, ((0, 0), (padding, padding), (padding, padding), (0, 0))
                 ).astype(jnp.bfloat16)
    patches = []
    for i in range(ksize):
        for j in range(ksize):
            patches.append(xp[:, i:i + stride * OH:stride,
                              j:j + stride * OW:stride, :])
    col = jnp.stack(patches, axis=4)                   # (N, OH, OW, Cin, KH*KW)
    M = N * OH * OW
    K = Cin * ksize * ksize
    col = col.reshape(M, K)

    out = matmul_fused(col, layer['w_packed'], layer['scale_vec'],
                       layer['bias_vec'], relu=layer['fuse_relu'])
    out = out[:M, :Cout]
    return out.reshape(N, OH, OW, Cout)


def init_disc_params(key, input_nc=3, ndf=64, n_layers=3):
    """weights_init: conv weight ~ N(0, 0.02); BN gamma ~ N(1, 0.02), beta 0.
    Weights are packed once into padded (K, Np) bf16 matrices + epilogue vecs."""
    specs = [(input_nc, ndf, 2, True, False)]
    nf = 1
    for n in range(1, n_layers):
        nf_prev, nf = nf, min(2 ** n, 8)
        specs.append((ndf * nf_prev, ndf * nf, 2, False, True))
    nf_prev, nf = nf, min(2 ** n_layers, 8)
    specs.append((ndf * nf_prev, ndf * nf, 1, False, True))
    specs.append((ndf * nf, 1, 1, True, False))

    keys = jax.random.split(key, 2 * len(specs))
    params = []
    n_lay = len(specs)
    for i, (cin, cout, stride, use_bias, use_bn) in enumerate(specs):
        w = 0.02 * jax.random.normal(keys[2 * i], (cout, cin, 4, 4), jnp.float32)
        K = cin * 16
        Np = max(128, _round_up(cout, 128))
        wmat = w.reshape(cout, K).T                       # (K, cout)
        w_packed = jnp.zeros((K, Np), jnp.bfloat16)
        w_packed = w_packed.at[:, :cout].set(wmat.astype(jnp.bfloat16))

        bias_vec = jnp.zeros((1, Np), jnp.float32)
        if use_bias:
            b = jnp.zeros((cout,), jnp.float32)
            bias_vec = bias_vec.at[0, :cout].set(b)
        scale_vec = jnp.ones((1, Np), jnp.float32)

        if use_bn:
            gamma = 1.0 + 0.02 * jax.random.normal(keys[2 * i + 1], (cout,),
                                                   jnp.float32)
            beta = jnp.zeros((cout,), jnp.float32)
        else:
            gamma, beta = None, None

        # LeakyReLU is fused into the matmul epilogue only for non-BN,
        # non-final layers; BN layers need batch stats first, final layer has
        # no activation.
        fuse_relu = (not use_bn) and (i < n_lay - 1)
        params.append(dict(w_packed=w_packed, scale_vec=scale_vec,
                           bias_vec=bias_vec, gamma=gamma, beta=beta,
                           stride=stride, use_bn=use_bn, cout=cout,
                           fuse_relu=fuse_relu))
    return params


def discriminator_forward(params, x_nchw):
    h = jnp.transpose(x_nchw, (0, 2, 3, 1)).astype(jnp.float32)   # NHWC
    for p in params:
        h = conv2d_pallas(h, p)
        if p['use_bn']:
            # BatchNorm2d in training mode (biased batch stats) + LeakyReLU.
            mean = jnp.mean(h, axis=(0, 1, 2), keepdims=True)
            var = jnp.mean((h - mean) ** 2, axis=(0, 1, 2), keepdims=True)
            h = (h - mean) * jax.lax.rsqrt(var + 1e-5)
            h = h * p['gamma'] + p['beta']
            h = jnp.where(h >= 0, h, 0.2 * h)
        # non-BN layers: bias + LeakyReLU already fused into matmul epilogue
    return jnp.transpose(h, (0, 3, 1, 2))                # (N, 1, h', w')


# ----------------------------------------------------------------------------
# Loss glue (small scalar math, plain JAX)
# ----------------------------------------------------------------------------
def adopt_weight(weight, global_step, threshold=0, value=0.0):
    # jit-safe (works for both static and traced global_step)
    return jnp.where(global_step < threshold, value, weight)


def hinge_d_loss(logits_real, logits_fake):
    loss_real = jnp.mean(jax.nn.relu(1.0 - logits_real))
    loss_fake = jnp.mean(jax.nn.relu(1.0 + logits_fake))
    return 0.5 * (loss_real + loss_fake)


def vanilla_d_loss(logits_real, logits_fake):
    return 0.5 * (jnp.mean(jax.nn.softplus(-logits_real)) +
                  jnp.mean(jax.nn.softplus(logits_fake)))


def interpolate_nearest(mask, size):
    # PyTorch F.interpolate(mode='nearest'): src = floor(dst * in / out)
    N, C, h, w = mask.shape
    rows = (jnp.arange(size[0]) * h) // size[0]
    cols = (jnp.arange(size[1]) * w) // size[1]
    return mask[:, :, rows[:, None], cols[None, :]]


def bce_loss(pred, target):
    logp = jnp.maximum(jnp.log(pred), -100.0)
    log1p = jnp.maximum(jnp.log(1.0 - pred), -100.0)
    return -jnp.mean(target * logp + (1.0 - target) * log1p)


# ----------------------------------------------------------------------------
# VQLPIPSWithDiscriminatorOCRNoQ.forward
# ----------------------------------------------------------------------------
def vq_lpips_disc_forward(disc_params, inputs, reconstructions,
                          target_text_mask=None, pred_text_mask=None,
                          optimizer_idx=0, global_step=0, cond=None,
                          split='train', target_images=None,
                          disc_start=0, disc_factor=1.0, disc_weight=1.0,
                          perceptual_weight=0.2, ocr_perceptual_weight=1.0,
                          mask_supervision_weight=1.0, disc_loss='hinge'):
    assert cond is None  # disc_conditional=False default
    d_loss_fn = hinge_d_loss if disc_loss == 'hinge' else vanilla_d_loss

    if optimizer_idx == 1:
        # Real and fake passes stay separate (matching PyTorch) so BN batch
        # statistics are computed per pass, not over the concatenation.
        logits_real = discriminator_forward(disc_params,
                                            jax.lax.stop_gradient(inputs))
        logits_fake = discriminator_forward(disc_params,
                                            jax.lax.stop_gradient(reconstructions))
        df = adopt_weight(disc_factor, global_step, threshold=disc_start)
        d_loss = df * d_loss_fn(logits_real, logits_fake)
        # Spec logs disc_factor * d_loss (d_loss already contains disc_factor);
        # reproduced literally.
        log = {f'{split}/disc_loss': df * jnp.mean(d_loss)}
        return d_loss, log

    # ---- generator / autoencoder branch ----
    if split == 'test':
        perceptual_weight = 1.0

    # importance map + 5x5 dilation + per-sample rec loss: single Pallas kernel
    # (dilation input is stop-gradient in the reference; forward value identical)
    rec_loss = rec_loss_fused_pallas(inputs, target_images, reconstructions)

    # TODO(synk): LPIPS / OCR_CRAFT_LPIPS are frozen pretrained perceptual nets
    # (external checkpoints); no Pallas equivalent here -> contributions are 0.
    p_loss = jnp.array(0.0, jnp.float32)
    p_ocr_loss = jnp.array(0.0, jnp.float32)

    total_loss = rec_loss + perceptual_weight * p_loss        # perceptual_weight > 0
    total_loss = total_loss + ocr_perceptual_weight * p_ocr_loss

    if target_text_mask is not None:
        tmask64 = interpolate_nearest(target_text_mask[:, None, :, :],
                                      (64, 64)).astype(jnp.float32)
        mask_loss = bce_loss(pred_text_mask, tmask64)
    else:
        mask_loss = jnp.array(0.0, jnp.float32)
    total_loss = total_loss + mask_supervision_weight * mask_loss
    total_loss = jnp.mean(total_loss)

    logits_fake = discriminator_forward(disc_params, reconstructions)
    g_loss = -jnp.mean(logits_fake)

    # TODO(synk): calculate_adaptive_weight requires autograd w.r.t. the
    # decoder's last layer (not available here); using the RuntimeError
    # fallback path d_weight = 0.0.
    d_weight = jnp.array(0.0, jnp.float32)

    df = adopt_weight(disc_factor, global_step, threshold=disc_start)
    loss = total_loss + d_weight * df * g_loss

    log = {
        f'{split}/total_loss': loss,
        f'{split}/rec_loss': jnp.mean(rec_loss),
        f'{split}/ocr_loss': ocr_perceptual_weight * p_ocr_loss,
        f'{split}/p_loss': perceptual_weight * p_loss,
        f'{split}/mask_loss': mask_supervision_weight * mask_loss,
        f'{split}/g_loss': df * d_weight * g_loss,
    }
    return loss, log


# ----------------------------------------------------------------------------
if __name__ == "__main__":
    key = jax.random.PRNGKey(0)
    k = jax.random.split(key, 6)

    N, C, H, W = 2, 3, 64, 64
    inputs = jax.random.uniform(k[0], (N, C, H, W), jnp.float32)
    reconstructions = jax.random.uniform(k[1], (N, C, H, W), jnp.float32)
    target_images = jax.random.uniform(k[2], (N, C, H, W), jnp.float32)
    target_text_mask = (jax.random.uniform(k[3], (N, 16, 16)) > 0.5).astype(jnp.float32)
    pred_text_mask = jax.random.uniform(k[4], (N, 1, 64, 64), jnp.float32,
                                        minval=0.05, maxval=0.95)

    disc_params = init_disc_params(jax.random.PRNGKey(42),
                                   input_nc=3, ndf=64, n_layers=3)

    # generator / autoencoder optimizer step (optimizer_idx = 0)
    loss, log = vq_lpips_disc_forward(
        disc_params, inputs, reconstructions,
        target_text_mask=target_text_mask, pred_text_mask=pred_text_mask,
        optimizer_idx=0, global_step=10000, target_images=target_images,
        disc_start=100, split='train')
    jax.block_until_ready(loss)

    # discriminator optimizer step (optimizer_idx = 1)
    d_loss, d_log = vq_lpips_disc_forward(
        disc_params, inputs, reconstructions,
        optimizer_idx=1, global_step=10000, disc_start=100, split='train')
    jax.block_until_ready(d_loss)

    print("KERNEL_OK")
</pallas_src>

<mosaic_0001>
module attributes {stable_mosaic.version = 11 : i64} {
  func.func @_fused_rec_loss_kernel(%arg0: memref<2x3x68x68xf32, #tpu.memory_space<vmem>>, %arg1: memref<2x3x68x68xf32, #tpu.memory_space<vmem>>, %arg2: memref<2x3x64x64xf32, #tpu.memory_space<vmem>>, %arg3: memref<2x128xf32, #tpu.memory_space<vmem>>) attributes {dimension_semantics = [], scalar_prefetch = 0 : i64, scratch_operands = 0 : i64, tpu.core_type = #tpu.core_type<tc>} {
    %c0 = arith.constant 0 : index
    %c0_0 = arith.constant 0 : index
    %c0_1 = arith.constant 0 : index
    %c0_2 = arith.constant 0 : index
    %0 = vector.load %arg0[%c0, %c0_0, %c0_1, %c0_2] : memref<2x3x68x68xf32, #tpu.memory_space<vmem>>, vector<2x3x68x68xf32>
    %c0_3 = arith.constant 0 : index
    %c0_4 = arith.constant 0 : index
    %c0_5 = arith.constant 0 : index
    %c0_6 = arith.constant 0 : index
    %1 = vector.load %arg1[%c0_3, %c0_4, %c0_5, %c0_6] : memref<2x3x68x68xf32, #tpu.memory_space<vmem>>, vector<2x3x68x68xf32>
    %c0_7 = arith.constant 0 : index
    %c0_8 = arith.constant 0 : index
    %c0_9 = arith.constant 0 : index
    %c0_10 = arith.constant 0 : index
    %2 = vector.load %arg2[%c0_7, %c0_8, %c0_9, %c0_10] : memref<2x3x64x64xf32, #tpu.memory_space<vmem>>, vector<2x3x64x64xf32>
    %3 = arith.subf %0, %1 : vector<2x3x68x68xf32>
    %4 = math.absf %3 : vector<2x3x68x68xf32>
    %cst = arith.constant 1.000000e+02 : f32
    %5 = vector.broadcast %cst : f32 to vector<2x3x68x68xf32>
    %6 = arith.mulf %5, %4 : vector<2x3x68x68xf32>
    %cst_11 = arith.constant 1.000000e-01 : f32
    %7 = vector.broadcast %cst_11 : f32 to vector<2x3x68x68xf32>
    %8 = arith.addf %6, %7 : vector<2x3x68x68xf32>
    %cst_12 = arith.constant 1.000000e+00 : f32
    %9 = vector.broadcast %cst_12 : f32 to vector<2x3x68x68xf32>
    %10 = arith.cmpf one, %0, %9 : vector<2x3x68x68xf32>
    %cst_13 = arith.constant 1.000000e+01 : f32
    %cst_14 = arith.constant 0.000000e+00 : f32
    %11 = vector.broadcast %cst_13 : f32 to vector<2x3x68x68xf32>
    %12 = vector.broadcast %cst_14 : f32 to vector<2x3x68x68xf32>
    %13 = arith.select %10, %11, %12 : vector<2x3x68x68xi1>, vector<2x3x68x68xf32>
    %14 = arith.addf %8, %13 : vector<2x3x68x68xf32>
    %cst_15 = arith.constant 1.000000e+00 : f32
    %15 = vector.broadcast %cst_15 : f32 to vector<2x3x68x68xf32>
    %16 = arith.cmpf one, %1, %15 : vector<2x3x68x68xf32>
    %cst_16 = arith.constant 1.000000e+01 : f32
    %cst_17 = arith.constant 0.000000e+00 : f32
    %17 = vector.broadcast %cst_16 : f32 to vector<2x3x68x68xf32>
    %18 = vector.broadcast %cst_17 : f32 to vector<2x3x68x68xf32>
    %19 = arith.select %16, %17, %18 : vector<2x3x68x68xi1>, vector<2x3x68x68xf32>
    %20 = arith.addf %14, %19 : vector<2x3x68x68xf32>
    %cst_18 = arith.constant 0.000000e+00 : f32
    %cst_19 = arith.constant 1.000000e+02 : f32
    %21 = vector.broadcast %cst_18 : f32 to vector<2x3x68x68xf32>
    %22 = arith.maximumf %21, %20 : vector<2x3x68x68xf32>
    %23 = vector.broadcast %cst_19 : f32 to vector<2x3x68x68xf32>
    %24 = arith.minimumf %23, %22 : vector<2x3x68x68xf32>
    %25 = vector.extract_strided_slice %24 {offsets = [0, 0, 0, 2], sizes = [2, 3, 68, 64], strides = [1, 1, 1, 1]} : vector<2x3x68x68xf32> to vector<2x3x68x64xf32>
    %26 = vector.extract_strided_slice %24 {offsets = [0, 0, 0, 0], sizes = [2, 3, 68, 64], strides = [1, 1, 1, 1]} : vector<2x3x68x68xf32> to vector<2x3x68x64xf32>
    %27 = arith.maximumf %25, %26 : vector<2x3x68x64xf32>
    %28 = vector.extract_strided_slice %24 {offsets = [0, 0, 0, 1], sizes = [2, 3, 68, 64], strides = [1, 1, 1, 1]} : vector<2x3x68x68xf32> to vector<2x3x68x64xf32>
    %29 = arith.maximumf %27, %28 : vector<2x3x68x64xf32>
    %30 = vector.extract_strided_slice %24 {offsets = [0, 0, 0, 3], sizes = [2, 3, 68, 64], strides = [1, 1, 1, 1]} : vector<2x3x68x68xf32> to vector<2x3x68x64xf32>
    %31 = arith.maximumf %29, %30 : vector<2x3x68x64xf32>
    %32 = vector.extract_strided_slice %24 {offsets = [0, 0, 0, 4], sizes = [2, 3, 68, 64], strides = [1, 1, 1, 1]} : vector<2x3x68x68xf32> to vector<2x3x68x64xf32>
    %33 = arith.maximumf %31, %32 : vector<2x3x68x64xf32>
    %34 = vector.extract_strided_slice %33 {offsets = [0, 0, 2, 0], sizes = [2, 3, 64, 64], strides = [1, 1, 1, 1]} : vector<2x3x68x64xf32> to vector<2x3x64x64xf32>
    %35 = vector.extract_strided_slice %33 {offsets = [0, 0, 0, 0], sizes = [2, 3, 64, 64], strides = [1, 1, 1, 1]} : vector<2x3x68x64xf32> to vector<2x3x64x64xf32>
    %36 = arith.maximumf %34, %35 : vector<2x3x64x64xf32>
    %37 = vector.extract_strided_slice %33 {offsets = [0, 0, 1, 0], sizes = [2, 3, 64, 64], strides = [1, 1, 1, 1]} : vector<2x3x68x64xf32> to vector<2x3x64x64xf32>
    %38 = arith.maximumf %36, %37 : vector<2x3x64x64xf32>
    %39 = vector.extract_strided_slice %33 {offsets = [0, 0, 3, 0], sizes = [2, 3, 64, 64], strides = [1, 1, 1, 1]} : vector<2x3x68x64xf32> to vector<2x3x64x64xf32>
    %40 = arith.maximumf %38, %39 : vector<2x3x64x64xf32>
    %41 = vector.extract_strided_slice %33 {offsets = [0, 0, 4, 0], sizes = [2, 3, 64, 64], strides = [1, 1, 1, 1]} : vector<2x3x68x64xf32> to vector<2x3x64x64xf32>
    %42 = arith.maximumf %40, %41 : vector<2x3x64x64xf32>
    %43 = vector.extract_strided_slice %1 {offsets = [0, 0, 2, 2], sizes = [2, 3, 64, 64], strides = [1, 1, 1, 1]} : vector<2x3x68x68xf32> to vector<2x3x64x64xf32>
    %44 = arith.subf %43, %2 : vector<2x3x64x64xf32>
    %45 = math.absf %44 : vector<2x3x64x64xf32>
    %46 = arith.mulf %42, %45 : vector<2x3x64x64xf32>
    %cst_20 = arith.constant dense<0.000000e+00> : vector<2x3x64xf32>
    %47 = vector.multi_reduction <add>, %46, %cst_20 [3] : vector<2x3x64x64xf32> to vector<2x3x64xf32>
    %cst_21 = arith.constant dense<0.000000e+00> : vector<2x3xf32>
    %48 = vector.multi_reduction <add>, %47, %cst_21 [2] : vector<2x3x64xf32> to vector<2x3xf32>
    %cst_22 = arith.constant dense<0.000000e+00> : vector<2xf32>
    %49 = vector.multi_reduction <add>, %48, %cst_22 [1] : vector<2x3xf32> to vector<2xf32>
    %50 = vector.shape_cast %49 : vector<2xf32> to vector<2x1xf32>
    %cst_23 = arith.constant 8.13802064E-4 : f32
    %51 = vector.broadcast %cst_23 : f32 to vector<2x1xf32>
    %52 = arith.mulf %50, %51 : vector<2x1xf32>
    %53 = vector.shape_cast %52 : vector<2x1xf32> to vector<2x1xf32>
    %54 = vector.broadcast %53 : vector<2x1xf32> to vector<2x128xf32>
    %c0_24 = arith.constant 0 : index
    %c0_25 = arith.constant 0 : index
    %55 = vector.load %arg3[%c0_24, %c0_25] : memref<2x128xf32, #tpu.memory_space<vmem>>, vector<2x128xf32>
    tpu.vector_store %arg3[%c0_24, %c0_25], %54 {strides = array<i32>} : memref<2x128xf32, #tpu.memory_space<vmem>>, vector<2x128xf32>,
    return
  }
}

</mosaic_0001>

<bundles_post_ra>
// kernel: tpu_custom_call.1
= control target key start
LH: loop header
LB: loop body
LE: loop exit
PB: predicated region body
PF: predicated region fallthrough
CT: control target
= control target key end

     0   :  { %v3934_v7 = vmov 0.0   ;;  %s3935_s17 = smov 2   ;;  %s8314_s0 = inlined_call_operand.vmem [shape: f32[2,3,68,68], index: 0, kind: input, shape index: {}]   ;;  %s8315_s1 = inlined_call_operand.vmem [shape: f32[2,3,68,68], index: 1, kind: input, shape index: {}]   ;;  %s8316_s2 = inlined_call_operand.vmem [shape: f32[2,3,64,64], index: 2, kind: input, shape index: {}]   ;;  %s8317_s3 = inlined_call_operand.hbm [shape: f32[2,128], index: 3, kind: output, shape index: {}]  }
   0x1   :  { %v17_v0 = vld [vmem:[%s8314_s0 + $0x10] sm:$0xff]  ;;  %v15_v2 = vld [vmem:[%s8314_s0] sm:$0xff]  ;;  %v18_v5 = vld [vmem:[%s8314_s0 + $0x18] sm:$0xff] }
   0x2   :  { %v71_v1 = vld [vmem:[%s8315_s1 + $0x10] sm:$0xff]  ;;  %vm389_vm0 = vcmp.ne.f32.partialorder %v17_v0, 1.0  ;;  %v69_v4 = vld [vmem:[%s8315_s1] sm:$0xff]  ;;  %vm387_vm2 = vcmp.ne.f32.partialorder %v15_v2, 1.0  ;;  %v72_v6 = vld [vmem:[%s8315_s1 + $0x18] sm:$0xff]  ;;  %vm390_vm4 = vcmp.ne.f32.partialorder %v18_v5, 1.0 }
   0x3   :  { %v173_v3 = vsub.f32 %v17_v0, %v71_v1  ;;  %vm551_vm1 = vcmp.ne.f32.partialorder %v71_v1, 1.0  ;;  %v443_v8 = vsel %vm389_vm0, 10.0, %v3934_v7  ;;  %v171_v10 = vsub.f32 %v15_v2, %v69_v4  ;;  %v16_v12 = vld [vmem:[%s8314_s0 + $0x8] sm:$0xff]  ;;  %v19_v27 = vld [vmem:[%s8314_s0 + $0x20] sm:$0xff]  ;;  %v22_v54 = vld [vmem:[%s8314_s0 + $0x38] sm:$0xff] }
   0x4   :  { %v605_v9 = vsel %vm551_vm1, 10.0, %v3934_v7  ;;  %v441_v11 = vsel %vm387_vm2, 10.0, %v3934_v7  ;;  %v70_v13 = vld [vmem:[%s8315_s1 + $0x8] sm:$0xff]  ;;  %vm549_vm3 = vcmp.ne.f32.partialorder %v69_v4, 1.0  ;;  %v174_v15 = vsub.f32 %v18_v5, %v72_v6  ;;  %v73_v28 = vld [vmem:[%s8315_s1 + $0x20] sm:$0xff]  ;;  %v76_v55 = vld [vmem:[%s8315_s1 + $0x38] sm:$0xff] }
   0x5   :  { %v227_v14 = vand.u32 2147483647, %v173_v3  ;;  %v20_v16 = vld [vmem:[%s8314_s0 + $0x28] sm:$0xff]  ;;  %v225_v18 = vand.u32 2147483647, %v171_v10  ;;  %v603_v19 = vsel %vm549_vm3, 10.0, %v3934_v7  ;;  %v172_v24 = vsub.f32 %v16_v12, %v70_v13 }
   0x6   :  { %v74_v17 = vld [vmem:[%s8315_s1 + $0x28] sm:$0xff]  ;;  %v444_v20 = vsel %vm390_vm4, 10.0, %v3934_v7  ;;  %vm552_vm5 = vcmp.ne.f32.partialorder %v72_v6, 1.0  ;;  %v228_v22 = vand.u32 2147483647, %v174_v15  ;;  %vm388_vm6 = vcmp.ne.f32.partialorder %v16_v12, 1.0 }
   0x7   :  { %v281_v21 = vmul.f32 100.0, %v227_v14  ;;  %v606_v23 = vsel %vm552_vm5, 10.0, %v3934_v7  ;;  %v279_v25 = vmul.f32 100.0, %v225_v18  ;;  %vm550_vm7 = vcmp.ne.f32.partialorder %v70_v13, 1.0  ;;  %v21_v3 = vld [vmem:[%s8314_s0 + $0x30] sm:$0xff]  ;;  %v78_v12 = vld [vmem:[%s8315_s1 + $0x48] sm:$0xff] }
   0x8   :  { %v176_v26 = vsub.f32 %v20_v16, %v74_v17  ;;  %v282_v30 = vmul.f32 100.0, %v228_v22  ;;  %v226_v31 = vand.u32 2147483647, %v172_v24  ;;  %v442_v32 = vsel %vm388_vm6, 10.0, %v3934_v7  ;;  %v75_v4 = vld [vmem:[%s8315_s1 + $0x30] sm:$0xff] }
   0x9   :  { %v335_v29 = vadd.f32 0.1, %v281_v21  ;;  %v333_v33 = vadd.f32 0.1, %v279_v25  ;;  %v604_v34 = vsel %vm550_vm7, 10.0, %v3934_v7  ;;  %vm392_vm8 = vcmp.ne.f32.partialorder %v20_v16, 1.0 }
   0xa   :  { %v230_v35 = vand.u32 2147483647, %v176_v26  ;;  %v336_v37 = vadd.f32 0.1, %v282_v30  ;;  %v280_v38 = vmul.f32 100.0, %v226_v31  ;;  %v446_v39 = vsel %vm392_vm8, 10.0, %v3934_v7 }
   0xb   :  { %v497_v36 = vadd.f32 %v443_v8, %v335_v29  ;;  %v495_v40 = vadd.f32 %v441_v11, %v333_v33  ;;  %vm554_vm9 = vcmp.ne.f32.partialorder %v74_v17, 1.0  ;;  %v175_v42 = vsub.f32 %v19_v27, %v73_v28  ;;  %v24_v11 = vld [vmem:[%s8314_s0 + $0x48] sm:$0xff]  ;;  %v23_v16 = vld [vmem:[%s8314_s0 + $0x40] sm:$0xf]  ;;  %v26_v31 = vld [vmem:[%s8314_s0 + $0x58] sm:$0xff] }
   0xc   :  { %v284_v41 = vmul.f32 100.0, %v230_v35  ;;  %v498_v44 = vadd.f32 %v444_v20, %v336_v37  ;;  %v334_v45 = vadd.f32 0.1, %v280_v38  ;;  %v608_v46 = vsel %vm554_vm9, 10.0, %v3934_v7  ;;  %v77_v21 = vld [vmem:[%s8315_s1 + $0x40] sm:$0xf] }
   0xd   :  { %v659_v43 = vadd.f32 %v605_v9, %v497_v36  ;;  %v657_v47 = vadd.f32 %v603_v19, %v495_v40  ;;  %v229_v49 = vand.u32 2147483647, %v175_v42  ;;  %vm391_vm10 = vcmp.ne.f32.partialorder %v19_v27, 1.0 }
   0xe   :  { %v338_v48 = vadd.f32 0.1, %v284_v41  ;;  %v660_v51 = vadd.f32 %v606_v23, %v498_v44  ;;  %v496_v52 = vadd.f32 %v442_v32, %v334_v45  ;;  %v445_v53 = vsel %vm391_vm10, 10.0, %v3934_v7  ;;  %v80_v32 = vld [vmem:[%s8315_s1 + $0x58] sm:$0xff] }
   0xf   :  { %v713_v50 = vmax.f32 %v659_v43, 0.0  ;;  %v711_v56 = vmax.f32 %v657_v47, 0.0  ;;  %v283_v58 = vmul.f32 100.0, %v229_v49  ;;  %vm553_vm11 = vcmp.ne.f32.partialorder %v73_v28, 1.0  ;;  %v79_v47 = vld [vmem:[%s8315_s1 + $0x50] sm:$0xff] }
  0x10   :  { %v500_v57 = vadd.f32 %v446_v39, %v338_v48  ;;  %v714_v60 = vmax.f32 %v660_v51, 0.0  ;;  %v658_v61 = vadd.f32 %v604_v34, %v496_v52  ;;  %v607_v62 = vsel %vm553_vm11, 10.0, %v3934_v7 }
  0x11   :  { %v4013_v59 = vmin.f32 %v713_v50, 100.0  ;;  %v4016_v63 = vmin.f32 %v711_v56, 100.0  ;;  %v337_v1 = vadd.f32 0.1, %v283_v58  ;;  %v178_v2 = vsub.f32 %v22_v54, %v76_v55  ;;  %v82_v56 = vld [vmem:[%s8315_s1 + $0x68] sm:$0xff] }
  0x12   :  { %v662_v0 = vadd.f32 %v608_v46, %v500_v57  ;;  %v4026_v5 = vmin.f32 %v714_v60, 100.0  ;;  %v712_v6 = vmax.f32 %v658_v61, 0.0  ;;  %vm394_vm12 = vcmp.ne.f32.partialorder %v22_v54, 1.0  ;;  %v25_v46 = vld [vmem:[%s8314_s0 + $0x50] sm:$0xff] }
  0x13   :  { %8555 = vst [vmem:[#allocation5_spill] sm:$0xff] %v4013_v59  ;;  %877 = vrot.lane.b32.xlu1 %v4013_v59, %s3935_s17  ;;  %vm556_vm13 = vcmp.ne.f32.partialorder %v76_v55, 1.0  ;;  %873 = vrot.lane.b32.xlu0 %v4016_v63, %s3935_s17  ;;  %v499_v9 = vadd.f32 %v445_v53, %v337_v1  ;;  %v232_v10 = vand.u32 2147483647, %v178_v2  ;;  %v448_v14 = vsel %vm394_vm12, 10.0, %v3934_v7  ;;  %v28_v55 = vld [vmem:[%s8314_s0 + $0x68] sm:$0xff] }
  0x14   :  { %8556 = vst [vmem:[#allocation6_spill] sm:$0xff] %v4026_v5  ;;  %v716_v8 = vmax.f32 %v662_v0, 0.0  ;;  %v4036_v13 = vmin.f32 %v712_v6, 100.0  ;;  %v177_v15 = vsub.f32 %v21_v3, %v75_v4  ;;  %vm393_vm14 = vcmp.ne.f32.partialorder %v21_v3, 1.0 }
  0x15   :  { %v661_v18 = vadd.f32 %v607_v62, %v499_v9  ;;  %v286_v19 = vmul.f32 100.0, %v232_v10  ;;  %v610_v20 = vsel %vm556_vm13, 10.0, %v3934_v7  ;;  %vm555_vm15 = vcmp.ne.f32.partialorder %v75_v4, 1.0 }
  0x16   :  { %v4042_v17 = vmin.f32 %v716_v8, 100.0  ;;  %v231_v22 = vand.u32 2147483647, %v177_v15  ;;  %v180_v23 = vsub.f32 %v24_v11, %v78_v12  ;;  %vm396_vm0 = vcmp.ne.f32.partialorder %v24_v11, 1.0  ;;  %v27_v15 = vld [vmem:[%s8314_s0 + $0x60] sm:$0xff] }
  0x17   :  { %879 = vrot.lane.b32.xlu1 %v4026_v5, %s3935_s17  ;;  %875 = vrot.lane.b32.xlu0 %v4036_v13, %s3935_s17  ;;  %v715_v24 = vmax.f32 %v661_v18, 0.0  ;;  %v340_v25 = vadd.f32 0.1, %v286_v19  ;;  %v447_v26 = vsel %vm393_vm14, 10.0, %v3934_v7  ;;  %v609_v27 = vsel %vm555_vm15, 10.0, %v3934_v7 }
  0x18   :  { %v285_v28 = vmul.f32 100.0, %v231_v22  ;;  %v234_v29 = vand.u32 2147483647, %v180_v23  ;;  %vm558_vm1 = vcmp.ne.f32.partialorder %v78_v12, 1.0  ;;  %v179_v30 = vsub.f32 %v23_v16, %v77_v21 }
  0x19   :  { %v4060_v33 = vmin.f32 %v715_v24, 100.0  ;;  %v502_v34 = vadd.f32 %v448_v14, %v340_v25  ;;  %v450_v35 = vsel %vm396_vm0, 10.0, %v3934_v7  ;;  %vm395_vm2 = vcmp.ne.f32.partialorder %v23_v16, 1.0  ;;  %v81_v16 = vld [vmem:[%s8315_s1 + $0x60] sm:$0xff]  ;;  %v30_v25 = vld [vmem:[%s8314_s0 + $0x78] sm:$0xff] }
  0x1a   :  { %v339_v36 = vadd.f32 0.1, %v285_v28  ;;  %v288_v37 = vmul.f32 100.0, %v234_v29  ;;  %v612_v38 = vsel %vm558_vm1, 10.0, %v3934_v7  ;;  %v233_v39 = vand.u32 2147483647, %v179_v30 }
  0x1b   :  { %883 = vrot.lane.b32.xlu1 %v4042_v17, %s3935_s17  ;;  %881 = vrot.lane.b32.xlu0 %v4060_v33, %s3935_s17  ;;  %v664_v40 = vadd.f32 %v610_v20, %v502_v34  ;;  %vm557_vm3 = vcmp.ne.f32.partialorder %v77_v21, 1.0  ;;  %v182_v41 = vsub.f32 %v26_v31, %v80_v32  ;;  %vm398_vm4 = vcmp.ne.f32.partialorder %v26_v31, 1.0  ;;  %v29_v34 = vld [vmem:[%s8314_s0 + $0x70] sm:$0xff] }
  0x1c   :  { %v501_v42 = vadd.f32 %v447_v26, %v339_v36  ;;  %v342_v43 = vadd.f32 0.1, %v288_v37  ;;  %v287_v44 = vmul.f32 100.0, %v233_v39  ;;  %v449_v45 = vsel %vm395_vm2, 10.0, %v3934_v7  ;;  %v84_v26 = vld [vmem:[%s8315_s1 + $0x78] sm:$0xff] }
  0x1d   :  { %v718_v48 = vmax.f32 %v664_v40, 0.0  ;;  %v611_v49 = vsel %vm557_vm3, 10.0, %v3934_v7  ;;  %v236_v50 = vand.u32 2147483647, %v182_v41  ;;  %vm560_vm5 = vcmp.ne.f32.partialorder %v80_v32, 1.0 }
  0x1e   :  { %v663_v51 = vadd.f32 %v609_v27, %v501_v42  ;;  %v504_v52 = vadd.f32 %v450_v35, %v342_v43  ;;  %v341_v53 = vadd.f32 0.1, %v287_v44  ;;  %v452_v54 = vsel %vm398_vm4, 10.0, %v3934_v7  ;;  %v83_v35 = vld [vmem:[%s8315_s1 + $0x70] sm:$0xff]  ;;  %v32_v43 = vld [vmem:[%s8314_s0 + $0x88] sm:$0xf] }
  0x1f   :  { %v4083_v57 = vmin.f32 %v718_v48, 100.0  ;;  %v290_v58 = vmul.f32 100.0, %v236_v50  ;;  %v181_v60 = vsub.f32 %v25_v46, %v79_v47  ;;  %vm397_vm6 = vcmp.ne.f32.partialorder %v25_v46, 1.0 }
  0x20   :  { %v717_v61 = vmax.f32 %v663_v51, 0.0  ;;  %v666_v62 = vadd.f32 %v612_v38, %v504_v52  ;;  %v503_v0 = vadd.f32 %v449_v45, %v341_v53  ;;  %v614_v1 = vsel %vm560_vm5, 10.0, %v3934_v7 }
  0x21   :  { %887 = vrot.lane.b32.xlu1 %v4083_v57, %s3935_s17  ;;  %v344_v2 = vadd.f32 0.1, %v290_v58  ;;  %v235_v3 = vand.u32 2147483647, %v181_v60  ;;  %vm559_vm7 = vcmp.ne.f32.partialorder %v79_v47, 1.0  ;;  %v184_v4 = vsub.f32 %v28_v55, %v82_v56 }
  0x22   :  { %v4088_v6 = vmin.f32 %v717_v61, 100.0  ;;  %v720_v8 = vmax.f32 %v666_v62, 0.0  ;;  %v665_v9 = vadd.f32 %v611_v49, %v503_v0  ;;  %v451_v10 = vsel %vm397_vm6, 10.0, %v3934_v7  ;;  %v86_v47 = vld [vmem:[%s8315_s1 + $0x88] sm:$0xf] }
  0x23   :  { %v506_v11 = vadd.f32 %v452_v54, %v344_v2  ;;  %v289_v12 = vmul.f32 100.0, %v235_v3  ;;  %v238_v14 = vand.u32 2147483647, %v184_v4  ;;  %vm400_vm8 = vcmp.ne.f32.partialorder %v28_v55, 1.0  ;;  %v85_v2 = vld [vmem:[%s8315_s1 + $0x80] sm:$0xff] }
  0x24   :  { %885 = vrot.lane.b32.xlu0 %v4088_v6, %s3935_s17  ;;  %v4099_v18 = vmin.f32 %v720_v8, 100.0  ;;  %v719_v19 = vmax.f32 %v665_v9, 0.0  ;;  %v613_v20 = vsel %vm559_vm7, 10.0, %v3934_v7  ;;  %vm562_vm9 = vcmp.ne.f32.partialorder %v82_v56, 1.0 }
  0x25   :  { %v668_v21 = vadd.f32 %v614_v1, %v506_v11  ;;  %v343_v22 = vadd.f32 0.1, %v289_v12  ;;  %v292_v23 = vmul.f32 100.0, %v238_v14  ;;  %v454_v24 = vsel %vm400_vm8, 10.0, %v3934_v7  ;;  %v31_v1 = vld [vmem:[%s8314_s0 + $0x80] sm:$0xff]  ;;  %v34_v12 = vld [vmem:[%s8314_s0 + $0x98] sm:$0xff] }
  0x26   :  { %891 = vrot.lane.b32.xlu1 %v4099_v18, %s3935_s17  ;;  %v4111_v27 = vmin.f32 %v719_v19, 100.0  ;;  %v183_v28 = vsub.f32 %v27_v15, %v81_v16  ;;  %vm399_vm10 = vcmp.ne.f32.partialorder %v27_v15, 1.0  ;;  %vm561_vm11 = vcmp.ne.f32.partialorder %v81_v16, 1.0  ;;  %v88_v14 = vld [vmem:[%s8315_s1 + $0x98] sm:$0xff] }
  0x27   :  { %v722_v29 = vmax.f32 %v668_v21, 0.0  ;;  %v505_v30 = vadd.f32 %v451_v10, %v343_v22  ;;  %v346_v31 = vadd.f32 0.1, %v292_v23  ;;  %v616_v32 = vsel %vm562_vm9, 10.0, %v3934_v7 }
  0x28   :  { %889 = vrot.lane.b32.xlu0 %v4111_v27, %s3935_s17  ;;  %v237_v36 = vand.u32 2147483647, %v183_v28  ;;  %v453_v37 = vsel %vm399_vm10, 10.0, %v3934_v7  ;;  %v186_v38 = vsub.f32 %v30_v25, %v84_v26  ;;  %vm402_vm12 = vcmp.ne.f32.partialorder %v30_v25, 1.0 }
  0x29   :  { %v4123_v39 = vmin.f32 %v722_v29, 100.0  ;;  %v667_v40 = vadd.f32 %v613_v20, %v505_v30  ;;  %v508_v41 = vadd.f32 %v454_v24, %v346_v31  ;;  %v615_v42 = vsel %vm561_vm11, 10.0, %v3934_v7 }
  0x2a   :  { %v291_v44 = vmul.f32 100.0, %v237_v36  ;;  %v240_v45 = vand.u32 2147483647, %v186_v38  ;;  %vm564_vm13 = vcmp.ne.f32.partialorder %v84_v26, 1.0  ;;  %v185_v46 = vsub.f32 %v29_v34, %v83_v35  ;;  %v33_v36 = vld [vmem:[%s8314_s0 + $0x90] sm:$0xff] }
  0x2b   :  { %8557 = vst [vmem:[#allocation7_spill] sm:$0xff] %v4123_v39  ;;  %895 = vrot.lane.b32.xlu1 %v4123_v39, %s3935_s17  ;;  %v721_v48 = vmax.f32 %v667_v40, 0.0  ;;  %v670_v49 = vadd.f32 %v616_v32, %v508_v41  ;;  %v456_v50 = vsel %vm402_vm12, 10.0, %v3934_v7  ;;  %vm401_vm14 = vcmp.ne.f32.partialorder %v29_v34, 1.0 }
  0x2c   :  { %v345_v51 = vadd.f32 0.1, %v291_v44  ;;  %v294_v52 = vmul.f32 100.0, %v240_v45  ;;  %v618_v53 = vsel %vm564_vm13, 10.0, %v3934_v7  ;;  %v239_v54 = vand.u32 2147483647, %v185_v46 }
  0x2d   :  { %v4136_v55 = vmin.f32 %v721_v48, 100.0  ;;  %v724_v56 = vmax.f32 %v670_v49, 0.0  ;;  %vm563_vm15 = vcmp.ne.f32.partialorder %v83_v35, 1.0  ;;  %v188_v58 = vsub.f32 %v32_v43, %v86_v47 }
  0x2e   :  { %v507_v60 = vadd.f32 %v453_v37, %v345_v51  ;;  %v348_v61 = vadd.f32 0.1, %v294_v52  ;;  %v293_v62 = vmul.f32 100.0, %v239_v54  ;;  %v455_v0 = vsel %vm401_vm14, 10.0, %v3934_v7  ;;  %v87_v37 = vld [vmem:[%s8315_s1 + $0x90] sm:$0xff] }
  0x2f   :  { %8558 = vst [vmem:[#allocation8_spill] sm:$0xff] %v4136_v55  ;;  %893 = vrot.lane.b32.xlu0 %v4136_v55, %s3935_s17  ;;  %v4147_v3 = vmin.f32 %v724_v56, 100.0  ;;  %v242_v4 = vand.u32 2147483647, %v188_v58  ;;  %vm404_vm0 = vcmp.ne.f32.partialorder %v32_v43, 1.0  ;;  %vm566_vm1 = vcmp.ne.f32.partialorder %v86_v47, 1.0 }
  0x30   :  { %v669_v8 = vadd.f32 %v615_v42, %v507_v60  ;;  %v510_v9 = vadd.f32 %v456_v50, %v348_v61  ;;  %v347_v10 = vadd.f32 0.1, %v293_v62  ;;  %v617_v11 = vsel %vm563_vm15, 10.0, %v3934_v7  ;;  %v36_v42 = vld [vmem:[%s8314_s0 + $0xa8] sm:$0xff] }
  0x31   :  { %899 = vrot.lane.b32.xlu1 %v4147_v3, %s3935_s17  ;;  %v296_v15 = vmul.f32 100.0, %v242_v4  ;;  %v458_v16 = vsel %vm404_vm0, 10.0, %v3934_v7  ;;  %v187_v19 = vsub.f32 %v31_v1, %v85_v2  ;;  %vm403_vm2 = vcmp.ne.f32.partialorder %v31_v1, 1.0  ;;  %v90_v43 = vld [vmem:[%s8315_s1 + $0xa8] sm:$0xff] }
  0x32   :  { %v723_v20 = vmax.f32 %v669_v8, 0.0  ;;  %v672_v21 = vadd.f32 %v618_v53, %v510_v9  ;;  %v509_v22 = vadd.f32 %v455_v0, %v347_v10  ;;  %v620_v23 = vsel %vm566_vm1, 10.0, %v3934_v7 }
  0x33   :  { %v350_v24 = vadd.f32 0.1, %v296_v15  ;;  %v241_v25 = vand.u32 2147483647, %v187_v19  ;;  %vm565_vm3 = vcmp.ne.f32.partialorder %v85_v2, 1.0  ;;  %v190_v26 = vsub.f32 %v34_v12, %v88_v14 }
  0x34   :  { %v4161_v28 = vmin.f32 %v723_v20, 100.0  ;;  %v726_v29 = vmax.f32 %v672_v21, 0.0  ;;  %v671_v30 = vadd.f32 %v617_v11, %v509_v22  ;;  %v457_v31 = vsel %vm403_vm2, 10.0, %v3934_v7 }
  0x35   :  { %v512_v32 = vadd.f32 %v458_v16, %v350_v24  ;;  %v295_v34 = vmul.f32 100.0, %v241_v25  ;;  %v244_v35 = vand.u32 2147483647, %v190_v26  ;;  %vm406_vm4 = vcmp.ne.f32.partialorder %v34_v12, 1.0 }
  0x36   :  { %897 = vrot.lane.b32.xlu0 %v4161_v28, %s3935_s17  ;;  %v4172_v38 = vmin.f32 %v726_v29, 100.0  ;;  %v725_v40 = vmax.f32 %v671_v30, 0.0  ;;  %v619_v41 = vsel %vm565_vm3, 10.0, %v3934_v7  ;;  %vm568_vm5 = vcmp.ne.f32.partialorder %v88_v14, 1.0 }
  0x37   :  { %v674_v44 = vadd.f32 %v620_v23, %v512_v32  ;;  %v349_v45 = vadd.f32 0.1, %v295_v34  ;;  %v298_v46 = vmul.f32 100.0, %v244_v35  ;;  %v460_v47 = vsel %vm406_vm4, 10.0, %v3934_v7 }
  0x38   :  { %8 = vsyncpa [#allocation3], 0  ;;  %903 = vrot.lane.b32.xlu1 %v4172_v38, %s3935_s17  ;;  %v4184_v48 = vmin.f32 %v725_v40, 100.0  ;;  %v189_v49 = vsub.f32 %v33_v36, %v87_v37  ;;  %vm405_vm6 = vcmp.ne.f32.partialorder %v33_v36, 1.0  ;;  %vm567_vm7 = vcmp.ne.f32.partialorder %v87_v37, 1.0  ;;  %v35_v54 = vld [vmem:[%s8314_s0 + $0xa0] sm:$0xff] }
  0x39   :  { %v728_v50 = vmax.f32 %v674_v44, 0.0  ;;  %v511_v51 = vadd.f32 %v457_v31, %v349_v45  ;;  %v352_v52 = vadd.f32 0.1, %v298_v46  ;;  %v622_v53 = vsel %vm568_vm5, 10.0, %v3934_v7  ;;  %v89_v56 = vld [vmem:[%s8315_s1 + $0xa0] sm:$0xff]  ;;  %v38_v10 = vld [vmem:[%s8314_s0 + $0xb8] sm:$0xff] }
  0x3a   :  { %901 = vrot.lane.b32.xlu0 %v4184_v48, %s3935_s17  ;;  %v243_v58 = vand.u32 2147483647, %v189_v49  ;;  %v459_v60 = vsel %vm405_vm6, 10.0, %v3934_v7  ;;  %v192_v61 = vsub.f32 %v36_v42, %v90_v43  ;;  %vm408_vm8 = vcmp.ne.f32.partialorder %v36_v42, 1.0  ;;  %v92_v11 = vld [vmem:[%s8315_s1 + $0xb8] sm:$0xff]  ;;  %v37_v31 = vld [vmem:[%s8314_s0 + $0xb0] sm:$0xff] }
  0x3b   :  { %v4197_v62 = vmin.f32 %v728_v50, 100.0  ;;  %v673_v0 = vadd.f32 %v619_v41, %v511_v51  ;;  %v514_v1 = vadd.f32 %v460_v47, %v352_v52  ;;  %v621_v2 = vsel %vm567_vm7, 10.0, %v3934_v7  ;;  %v91_v32 = vld [vmem:[%s8315_s1 + $0xb0] sm:$0xff]  ;;  %v40_v42 = vld [vmem:[%s8314_s0 + $0xc8] sm:$0xff]  ;;  %s3937_s20 = smov 127   ;;  %s3938_s21 = smov 126  }
  0x3c   :  { %v297_v4 = vmul.f32 100.0, %v243_v58  ;;  %v246_v8 = vand.u32 2147483647, %v192_v61  ;;  %vm570_vm9 = vcmp.ne.f32.partialorder %v90_v43, 1.0  ;;  %v191_v9 = vsub.f32 %v35_v54, %v89_v56  ;;  %v94_v43 = vld [vmem:[%s8315_s1 + $0xc8] sm:$0xff] }
  0x3d   :  { %907 = vrot.lane.b32.xlu1 %v4197_v62, %s3935_s17  ;;  %v727_v12 = vmax.f32 %v673_v0, 0.0  ;;  %v676_v14 = vadd.f32 %v622_v53, %v514_v1  ;;  %v462_v15 = vsel %vm408_vm8, 10.0, %v3934_v7  ;;  %vm407_vm10 = vcmp.ne.f32.partialorder %v35_v54, 1.0 }
  0x3e   :  { %v351_v16 = vadd.f32 0.1, %v297_v4  ;;  %v300_v19 = vmul.f32 100.0, %v246_v8  ;;  %v624_v20 = vsel %vm570_vm9, 10.0, %v3934_v7  ;;  %v245_v21 = vand.u32 2147483647, %v191_v9 }
  0x3f   :  { %v4210_v22 = vmin.f32 %v727_v12, 100.0  ;;  %v730_v23 = vmax.f32 %v676_v14, 0.0  ;;  %vm569_vm11 = vcmp.ne.f32.partialorder %v89_v56, 1.0  ;;  %v194_v24 = vsub.f32 %v38_v10, %v92_v11  ;;  %v39_v4 = vld [vmem:[%s8314_s0 + $0xc0] sm:$0xff] }
  0x40   :  { %v513_v25 = vadd.f32 %v459_v60, %v351_v16  ;;  %v354_v26 = vadd.f32 0.1, %v300_v19  ;;  %v299_v29 = vmul.f32 100.0, %v245_v21  ;;  %v461_v30 = vsel %vm407_vm10, 10.0, %v3934_v7  ;;  %v93_v8 = vld [vmem:[%s8315_s1 + $0xc0] sm:$0xff]  ;;  %v42_v19 = vld [vmem:[%s8314_s0 + $0xd8] sm:$0xff] }
  0x41   :  { %905 = vrot.lane.b32.xlu0 %v4210_v22, %s3935_s17  ;;  %v4221_v34 = vmin.f32 %v730_v23, 100.0  ;;  %v248_v35 = vand.u32 2147483647, %v194_v24  ;;  %vm410_vm12 = vcmp.ne.f32.partialorder %v38_v10, 1.0  ;;  %vm572_vm13 = vcmp.ne.f32.partialorder %v92_v11, 1.0 }
  0x42   :  { %v675_v36 = vadd.f32 %v621_v2, %v513_v25  ;;  %v516_v37 = vadd.f32 %v462_v15, %v354_v26  ;;  %v353_v40 = vadd.f32 0.1, %v299_v29  ;;  %v623_v41 = vsel %vm569_vm11, 10.0, %v3934_v7  ;;  %v41_v24 = vld [vmem:[%s8314_s0 + $0xd0] sm:$0xf] }
  0x43   :  { %911 = vrot.lane.b32.xlu1 %v4221_v34, %s3935_s17  ;;  %v302_v44 = vmul.f32 100.0, %v248_v35  ;;  %v464_v45 = vsel %vm410_vm12, 10.0, %v3934_v7  ;;  %v193_v46 = vsub.f32 %v37_v31, %v91_v32  ;;  %vm409_vm14 = vcmp.ne.f32.partialorder %v37_v31, 1.0  ;;  %v95_v31 = vld [vmem:[%s8315_s1 + $0xd0] sm:$0xf] }
  0x44   :  { %v729_v47 = vmax.f32 %v675_v36, 0.0  ;;  %v678_v49 = vadd.f32 %v624_v20, %v516_v37  ;;  %v515_v50 = vadd.f32 %v461_v30, %v353_v40  ;;  %v626_v51 = vsel %vm572_vm13, 10.0, %v3934_v7  ;;  %v96_v20 = vld [vmem:[%s8315_s1 + $0xd8] sm:$0xff] }
  0x45   :  { %v356_v52 = vadd.f32 0.1, %v302_v44  ;;  %v247_v53 = vand.u32 2147483647, %v193_v46  ;;  %vm571_vm15 = vcmp.ne.f32.partialorder %v91_v32, 1.0  ;;  %v196_v54 = vsub.f32 %v40_v42, %v94_v43  ;;  %v44_v46 = vld [vmem:[%s8314_s0 + $0xe8] sm:$0xff] }
  0x46   :  { %v4235_v56 = vmin.f32 %v729_v47, 100.0  ;;  %v732_v58 = vmax.f32 %v678_v49, 0.0  ;;  %v677_v60 = vadd.f32 %v623_v41, %v515_v50  ;;  %v463_v61 = vsel %vm409_vm14, 10.0, %v3934_v7  ;;  %v98_v47 = vld [vmem:[%s8315_s1 + $0xe8] sm:$0xff] }
  0x47   :  { %v518_v0 = vadd.f32 %v464_v45, %v356_v52  ;;  %v301_v1 = vmul.f32 100.0, %v247_v53  ;;  %v250_v2 = vand.u32 2147483647, %v196_v54  ;;  %vm412_vm0 = vcmp.ne.f32.partialorder %v40_v42, 1.0 }
  0x48   :  { %909 = vrot.lane.b32.xlu0 %v4235_v56, %s3935_s17  ;;  %v4246_v9 = vmin.f32 %v732_v58, 100.0  ;;  %v731_v10 = vmax.f32 %v677_v60, 0.0  ;;  %v625_v11 = vsel %vm571_vm15, 10.0, %v3934_v7  ;;  %vm574_vm1 = vcmp.ne.f32.partialorder %v94_v43, 1.0 }
  0x49   :  { %v680_v12 = vadd.f32 %v626_v51, %v518_v0  ;;  %v355_v14 = vadd.f32 0.1, %v301_v1  ;;  %v304_v15 = vmul.f32 100.0, %v250_v2  ;;  %v466_v16 = vsel %vm412_vm0, 10.0, %v3934_v7 }
  0x4a   :  { %915 = vrot.lane.b32.xlu1 %v4246_v9, %s3935_s17  ;;  %v4258_v21 = vmin.f32 %v731_v10, 100.0  ;;  %v195_v23 = vsub.f32 %v39_v4, %v93_v8  ;;  %vm411_vm2 = vcmp.ne.f32.partialorder %v39_v4, 1.0  ;;  %vm573_vm3 = vcmp.ne.f32.partialorder %v93_v8, 1.0  ;;  %v43_v10 = vld [vmem:[%s8314_s0 + $0xe0] sm:$0xff] }
  0x4b   :  { %v734_v25 = vmax.f32 %v680_v12, 0.0  ;;  %v517_v26 = vadd.f32 %v463_v61, %v355_v14  ;;  %v358_v29 = vadd.f32 0.1, %v304_v15  ;;  %v628_v30 = vsel %vm574_vm1, 10.0, %v3934_v7 }
  0x4c   :  { %913 = vrot.lane.b32.xlu0 %v4258_v21, %s3935_s17  ;;  %v249_v32 = vand.u32 2147483647, %v195_v23  ;;  %v465_v35 = vsel %vm411_vm2, 10.0, %v3934_v7  ;;  %v198_v36 = vsub.f32 %v42_v19, %v96_v20  ;;  %vm414_vm4 = vcmp.ne.f32.partialorder %v42_v19, 1.0  ;;  %v46_v23 = vld [vmem:[%s8314_s0 + $0xf8] sm:$0xff] }
  0x4d   :  { %v4271_v37 = vmin.f32 %v734_v25, 100.0  ;;  %v679_v40 = vadd.f32 %v625_v11, %v517_v26  ;;  %v520_v41 = vadd.f32 %v466_v16, %v358_v29  ;;  %v627_v42 = vsel %vm573_vm3, 10.0, %v3934_v7  ;;  %v97_v11 = vld [vmem:[%s8315_s1 + $0xe0] sm:$0xff] }
  0x4e   :  { %v303_v43 = vmul.f32 100.0, %v249_v32  ;;  %v252_v44 = vand.u32 2147483647, %v198_v36  ;;  %vm576_vm5 = vcmp.ne.f32.partialorder %v96_v20, 1.0  ;;  %v197_v45 = vsub.f32 %v41_v24, %v95_v31 }
  0x4f   :  { %919 = vrot.lane.b32.xlu1 %v4271_v37, %s3935_s17  ;;  %v733_v49 = vmax.f32 %v679_v40, 0.0  ;;  %v682_v50 = vadd.f32 %v628_v30, %v520_v41  ;;  %v468_v51 = vsel %vm414_vm4, 10.0, %v3934_v7  ;;  %vm413_vm6 = vcmp.ne.f32.partialorder %v41_v24, 1.0  ;;  %v100_v24 = vld [vmem:[%s8315_s1 + $0xf8] sm:$0xff] }
  0x50   :  { %v357_v52 = vadd.f32 0.1, %v303_v43  ;;  %v306_v53 = vmul.f32 100.0, %v252_v44  ;;  %v630_v54 = vsel %vm576_vm5, 10.0, %v3934_v7  ;;  %v251_v58 = vand.u32 2147483647, %v197_v45 }
  0x51   :  { %v4284_v60 = vmin.f32 %v733_v49, 100.0  ;;  %v736_v61 = vmax.f32 %v682_v50, 0.0  ;;  %vm575_vm7 = vcmp.ne.f32.partialorder %v95_v31, 1.0  ;;  %v200_v0 = vsub.f32 %v44_v46, %v98_v47  ;;  %v45_v50 = vld [vmem:[%s8314_s0 + $0xf0] sm:$0xff] }
  0x52   :  { %v519_v1 = vadd.f32 %v465_v35, %v357_v52  ;;  %v360_v2 = vadd.f32 0.1, %v306_v53  ;;  %v305_v4 = vmul.f32 100.0, %v251_v58  ;;  %v467_v8 = vsel %vm413_vm6, 10.0, %v3934_v7 }
  0x53   :  { %8559 = vst [vmem:[#allocation9_spill] sm:$0xff] %v4284_v60  ;;  %917 = vrot.lane.b32.xlu0 %v4284_v60, %s3935_s17  ;;  %v4295_v12 = vmin.f32 %v736_v61, 100.0  ;;  %v254_v14 = vand.u32 2147483647, %v200_v0  ;;  %vm416_vm8 = vcmp.ne.f32.partialorder %v44_v46, 1.0  ;;  %vm578_vm9 = vcmp.ne.f32.partialorder %v98_v47, 1.0 }
  0x54   :  { %v681_v15 = vadd.f32 %v627_v42, %v519_v1  ;;  %v522_v16 = vadd.f32 %v468_v51, %v360_v2  ;;  %v359_v19 = vadd.f32 0.1, %v305_v4  ;;  %v629_v20 = vsel %vm575_vm7, 10.0, %v3934_v7  ;;  %v99_v51 = vld [vmem:[%s8315_s1 + $0xf0] sm:$0xff]  ;;  %v48_v2 = vld [vmem:[%s8314_s0 + $0x108] sm:$0xff] }
  0x55   :  { %8560 = vst [vmem:[#allocation10_spill] sm:$0xff] %v4295_v12  ;;  %923 = vrot.lane.b32.xlu1 %v4295_v12, %s3935_s17  ;;  %v308_v25 = vmul.f32 100.0, %v254_v14  ;;  %v470_v26 = vsel %vm416_vm8, 10.0, %v3934_v7  ;;  %v199_v29 = vsub.f32 %v43_v10, %v97_v11  ;;  %vm415_vm10 = vcmp.ne.f32.partialorder %v43_v10, 1.0  ;;  %v102_v4 = vld [vmem:[%s8315_s1 + $0x108] sm:$0xff] }
  0x56   :  { %v735_v30 = vmax.f32 %v681_v15, 0.0  ;;  %v684_v32 = vadd.f32 %v630_v54, %v522_v16  ;;  %v521_v31 = vadd.f32 %v467_v8, %v359_v19  ;;  %v632_v35 = vsel %vm578_vm9, 10.0, %v3934_v7  ;;  %v47_v19 = vld [vmem:[%s8314_s0 + $0x100] sm:$0xff] }
  0x57   :  { %v362_v36 = vadd.f32 0.1, %v308_v25  ;;  %v253_v40 = vand.u32 2147483647, %v199_v29  ;;  %vm577_vm11 = vcmp.ne.f32.partialorder %v97_v11, 1.0  ;;  %v202_v41 = vsub.f32 %v46_v23, %v100_v24 }
  0x58   :  { %v4309_v42 = vmin.f32 %v735_v30, 100.0  ;;  %v738_v43 = vmax.f32 %v684_v32, 0.0  ;;  %v683_v44 = vadd.f32 %v629_v20, %v521_v31  ;;  %v469_v45 = vsel %vm415_vm10, 10.0, %v3934_v7  ;;  %v101_v20 = vld [vmem:[%s8315_s1 + $0x100] sm:$0xff]  ;;  %v50_v31 = vld [vmem:[%s8314_s0 + $0x118] sm:$0xf] }
  0x59   :  { %v524_v46 = vadd.f32 %v470_v26, %v362_v36  ;;  %v307_v47 = vmul.f32 100.0, %v253_v40  ;;  %v256_v49 = vand.u32 2147483647, %v202_v41  ;;  %vm418_vm12 = vcmp.ne.f32.partialorder %v46_v23, 1.0  ;;  %v104_v41 = vld [vmem:[%s8315_s1 + $0x118] sm:$0xf] }
  0x5a   :  { %8561 = vst [vmem:[#allocation11_spill] sm:$0xff] %v4309_v42  ;;  %921 = vrot.lane.b32.xlu0 %v4309_v42, %s3935_s17  ;;  %v4320_v52 = vmin.f32 %v738_v43, 100.0  ;;  %v737_v53 = vmax.f32 %v683_v44, 0.0  ;;  %v631_v54 = vsel %vm577_vm11, 10.0, %v3934_v7  ;;  %vm580_vm13 = vcmp.ne.f32.partialorder %v100_v24, 1.0 }
  0x5b   :  { %v686_v58 = vadd.f32 %v632_v35, %v524_v46  ;;  %v361_v61 = vadd.f32 0.1, %v307_v47  ;;  %v310_v0 = vmul.f32 100.0, %v256_v49  ;;  %v472_v1 = vsel %vm418_vm12, 10.0, %v3934_v7 }
  0x5c   :  { %8562 = vst [vmem:[#allocation12_spill] sm:$0xff] %v4320_v52  ;;  %927 = vrot.lane.b32.xlu1 %v4320_v52, %s3935_s17  ;;  %v4332_v8 = vmin.f32 %v737_v53, 100.0  ;;  %v201_v10 = vsub.f32 %v45_v50, %v99_v51  ;;  %vm417_vm14 = vcmp.ne.f32.partialorder %v45_v50, 1.0  ;;  %vm579_vm15 = vcmp.ne.f32.partialorder %v99_v51, 1.0 }
  0x5d   :  { %v740_v11 = vmax.f32 %v686_v58, 0.0  ;;  %v523_v14 = vadd.f32 %v469_v45, %v361_v61  ;;  %v364_v15 = vadd.f32 0.1, %v310_v0  ;;  %v634_v16 = vsel %vm580_vm13, 10.0, %v3934_v7 }
  0x5e   :  { %925 = vrot.lane.b32.xlu0 %v4332_v8, %s3935_s17  ;;  %v255_v23 = vand.u32 2147483647, %v201_v10  ;;  %v471_v24 = vsel %vm417_vm14, 10.0, %v3934_v7  ;;  %v204_v25 = vsub.f32 %v48_v2, %v102_v4  ;;  %vm420_vm0 = vcmp.ne.f32.partialorder %v48_v2, 1.0  ;;  %v49_v2 = vld [vmem:[%s8314_s0 + $0x110] sm:$0xff] }
  0x5f   :  { %v4344_v26 = vmin.f32 %v740_v11, 100.0  ;;  %v685_v29 = vadd.f32 %v631_v54, %v523_v14  ;;  %v526_v30 = vadd.f32 %v472_v1, %v364_v15  ;;  %v633_v32 = vsel %vm579_vm15, 10.0, %v3934_v7 }
  0x60   :  { %v309_v35 = vmul.f32 100.0, %v255_v23  ;;  %v258_v36 = vand.u32 2147483647, %v204_v25  ;;  %vm582_vm1 = vcmp.ne.f32.partialorder %v102_v4, 1.0  ;;  %v203_v40 = vsub.f32 %v47_v19, %v101_v20  ;;  %v103_v4 = vld [vmem:[%s8315_s1 + $0x110] sm:$0xff]  ;;  %v52_v23 = vld [vmem:[%s8314_s0 + $0x128] sm:$0xff] }
  0x61   :  { %931 = vrot.lane.b32.xlu1 %v4344_v26, %s3935_s17  ;;  %v739_v43 = vmax.f32 %v685_v29, 0.0  ;;  %v688_v44 = vadd.f32 %v634_v16, %v526_v30  ;;  %v474_v45 = vsel %vm420_vm0, 10.0, %v3934_v7  ;;  %vm419_vm2 = vcmp.ne.f32.partialorder %v47_v19, 1.0 }
  0x62   :  { %v363_v46 = vadd.f32 0.1, %v309_v35  ;;  %v312_v47 = vmul.f32 100.0, %v258_v36  ;;  %v636_v49 = vsel %vm582_vm1, 10.0, %v3934_v7  ;;  %v257_v50 = vand.u32 2147483647, %v203_v40 }
  0x63   :  { %v4357_v51 = vmin.f32 %v739_v43, 100.0  ;;  %v742_v53 = vmax.f32 %v688_v44, 0.0  ;;  %vm581_vm3 = vcmp.ne.f32.partialorder %v101_v20, 1.0  ;;  %v206_v54 = vsub.f32 %v50_v31, %v104_v41 }
  0x64   :  { %v525_v58 = vadd.f32 %v471_v24, %v363_v46  ;;  %v366_v61 = vadd.f32 0.1, %v312_v47  ;;  %v311_v0 = vmul.f32 100.0, %v257_v50  ;;  %v473_v1 = vsel %vm419_vm2, 10.0, %v3934_v7  ;;  %v106_v24 = vld [vmem:[%s8315_s1 + $0x128] sm:$0xff] }
  0x65   :  { %929 = vrot.lane.b32.xlu0 %v4357_v51, %s3935_s17  ;;  %v4368_v10 = vmin.f32 %v742_v53, 100.0  ;;  %v260_v11 = vand.u32 2147483647, %v206_v54  ;;  %vm422_vm4 = vcmp.ne.f32.partialorder %v50_v31, 1.0  ;;  %vm584_vm5 = vcmp.ne.f32.partialorder %v104_v41, 1.0  ;;  %v105_v54 = vld [vmem:[%s8315_s1 + $0x120] sm:$0xff] }
  0x66   :  { %v687_v14 = vadd.f32 %v633_v32, %v525_v58  ;;  %v528_v15 = vadd.f32 %v474_v45, %v366_v61  ;;  %v365_v16 = vadd.f32 0.1, %v311_v0  ;;  %v635_v19 = vsel %vm581_vm3, 10.0, %v3934_v7 }
  0x67   :  { %935 = vrot.lane.b32.xlu1 %v4368_v10, %s3935_s17  ;;  %v314_v25 = vmul.f32 100.0, %v260_v11  ;;  %v476_v29 = vsel %vm422_vm4, 10.0, %v3934_v7  ;;  %v205_v30 = vsub.f32 %v49_v2, %v103_v4  ;;  %vm421_vm6 = vcmp.ne.f32.partialorder %v49_v2, 1.0 }
  0x68   :  { %v741_v32 = vmax.f32 %v687_v14, 0.0  ;;  %v690_v31 = vadd.f32 %v636_v49, %v528_v15  ;;  %v527_v20 = vadd.f32 %v473_v1, %v365_v16  ;;  %v638_v35 = vsel %vm584_vm5, 10.0, %v3934_v7  ;;  %v51_v49 = vld [vmem:[%s8314_s0 + $0x120] sm:$0xff]  ;;  %v54_v14 = vld [vmem:[%s8314_s0 + $0x138] sm:$0xff] }
  0x69   :  { %v368_v36 = vadd.f32 0.1, %v314_v25  ;;  %v259_v40 = vand.u32 2147483647, %v205_v30  ;;  %vm583_vm7 = vcmp.ne.f32.partialorder %v103_v4, 1.0  ;;  %v208_v41 = vsub.f32 %v52_v23, %v106_v24  ;;  %v108_v15 = vld [vmem:[%s8315_s1 + $0x138] sm:$0xff] }
  0x6a   :  { %v4382_v43 = vmin.f32 %v741_v32, 100.0  ;;  %v744_v44 = vmax.f32 %v690_v31, 0.0  ;;  %v689_v45 = vadd.f32 %v635_v19, %v527_v20  ;;  %v475_v46 = vsel %vm421_vm6, 10.0, %v3934_v7  ;;  %v53_v30 = vld [vmem:[%s8314_s0 + $0x130] sm:$0xff] }
  0x6b   :  { %v530_v47 = vadd.f32 %v476_v29, %v368_v36  ;;  %v313_v50 = vmul.f32 100.0, %v259_v40  ;;  %v262_v53 = vand.u32 2147483647, %v208_v41  ;;  %vm424_vm8 = vcmp.ne.f32.partialorder %v52_v23, 1.0  ;;  %v107_v32 = vld [vmem:[%s8315_s1 + $0x130] sm:$0xff] }
  0x6c   :  { %933 = vrot.lane.b32.xlu0 %v4382_v43, %s3935_s17  ;;  %v4393_v58 = vmin.f32 %v744_v44, 100.0  ;;  %v743_v61 = vmax.f32 %v689_v45, 0.0  ;;  %v637_v0 = vsel %vm583_vm7, 10.0, %v3934_v7  ;;  %vm586_vm9 = vcmp.ne.f32.partialorder %v106_v24, 1.0 }
  0x6d   :  { %v692_v1 = vadd.f32 %v638_v35, %v530_v47  ;;  %v367_v2 = vadd.f32 0.1, %v313_v50  ;;  %v316_v4 = vmul.f32 100.0, %v262_v53  ;;  %v478_v11 = vsel %vm424_vm8, 10.0, %v3934_v7  ;;  %v56_v50 = vld [vmem:[%s8314_s0 + $0x148] sm:$0xff] }
  0x6e   :  { %939 = vrot.lane.b32.xlu1 %v4393_v58, %s3935_s17  ;;  %v4405_v16 = vmin.f32 %v743_v61, 100.0  ;;  %v207_v19 = vsub.f32 %v51_v49, %v105_v54  ;;  %vm423_vm10 = vcmp.ne.f32.partialorder %v51_v49, 1.0  ;;  %vm585_vm11 = vcmp.ne.f32.partialorder %v105_v54, 1.0  ;;  %v110_v53 = vld [vmem:[%s8315_s1 + $0x148] sm:$0xff] }
  0x6f   :  { %v746_v23 = vmax.f32 %v692_v1, 0.0  ;;  %v529_v24 = vadd.f32 %v475_v46, %v367_v2  ;;  %v370_v25 = vadd.f32 0.1, %v316_v4  ;;  %v640_v29 = vsel %vm586_vm9, 10.0, %v3934_v7 }
  0x70   :  { %8563 = vst [vmem:[#allocation13_spill] sm:$0xff] %v4405_v16  ;;  %937 = vrot.lane.b32.xlu0 %v4405_v16, %s3935_s17  ;;  %v261_v31 = vand.u32 2147483647, %v207_v19  ;;  %v477_v20 = vsel %vm423_vm10, 10.0, %v3934_v7  ;;  %v210_v35 = vsub.f32 %v54_v14, %v108_v15  ;;  %vm426_vm12 = vcmp.ne.f32.partialorder %v54_v14, 1.0 }
  0x71   :  { %v4417_v36 = vmin.f32 %v746_v23, 100.0  ;;  %v691_v40 = vadd.f32 %v637_v0, %v529_v24  ;;  %v532_v41 = vadd.f32 %v478_v11, %v370_v25  ;;  %v639_v44 = vsel %vm585_vm11, 10.0, %v3934_v7 }
  0x72   :  { %v315_v45 = vmul.f32 100.0, %v261_v31  ;;  %v264_v46 = vand.u32 2147483647, %v210_v35  ;;  %vm588_vm13 = vcmp.ne.f32.partialorder %v108_v15, 1.0  ;;  %v209_v47 = vsub.f32 %v53_v30, %v107_v32 }
  0x73   :  { %8564 = vst [vmem:[#allocation14_spill] sm:$0xff] %v4417_v36  ;;  %943 = vrot.lane.b32.xlu1 %v4417_v36, %s3935_s17  ;;  %v745_v49 = vmax.f32 %v691_v40, 0.0  ;;  %v694_v54 = vadd.f32 %v640_v29, %v532_v41  ;;  %v480_v61 = vsel %vm426_vm12, 10.0, %v3934_v7  ;;  %vm425_vm14 = vcmp.ne.f32.partialorder %v53_v30, 1.0  ;;  %v55_v29 = vld [vmem:[%s8314_s0 + $0x140] sm:$0xff] }
  0x74   :  { %v369_v0 = vadd.f32 0.1, %v315_v45  ;;  %v318_v1 = vmul.f32 100.0, %v264_v46  ;;  %v642_v2 = vsel %vm588_vm13, 10.0, %v3934_v7  ;;  %v263_v4 = vand.u32 2147483647, %v209_v47 }
  0x75   :  { %v4430_v11 = vmin.f32 %v745_v49, 100.0  ;;  %v748_v14 = vmax.f32 %v694_v54, 0.0  ;;  %vm587_vm15 = vcmp.ne.f32.partialorder %v107_v32, 1.0  ;;  %v212_v15 = vsub.f32 %v56_v50, %v110_v53  ;;  %v109_v30 = vld [vmem:[%s8315_s1 + $0x140] sm:$0xff]  ;;  %v58_v46 = vld [vmem:[%s8314_s0 + $0x158] sm:$0xff] }
  0x76   :  { %v531_v19 = vadd.f32 %v477_v20, %v369_v0  ;;  %v372_v23 = vadd.f32 0.1, %v318_v1  ;;  %v317_v24 = vmul.f32 100.0, %v263_v4  ;;  %v479_v25 = vsel %vm425_vm14, 10.0, %v3934_v7  ;;  %v112_v47 = vld [vmem:[%s8315_s1 + $0x158] sm:$0xff] }
  0x77   :  { %941 = vrot.lane.b32.xlu0 %v4430_v11, %s3935_s17  ;;  %v4441_v31 = vmin.f32 %v748_v14, 100.0  ;;  %v266_v35 = vand.u32 2147483647, %v212_v15  ;;  %vm428_vm0 = vcmp.ne.f32.partialorder %v56_v50, 1.0  ;;  %vm590_vm1 = vcmp.ne.f32.partialorder %v110_v53, 1.0 }
  0x78   :  { %v693_v20 = vadd.f32 %v639_v44, %v531_v19  ;;  %v534_v40 = vadd.f32 %v480_v61, %v372_v23  ;;  %v371_v41 = vadd.f32 0.1, %v317_v24  ;;  %v641_v45 = vsel %vm587_vm15, 10.0, %v3934_v7 }
  0x79   :  { %8565 = vst [vmem:[#allocation15_spill] sm:$0xff] %v4441_v31  ;;  %947 = vrot.lane.b32.xlu1 %v4441_v31, %s3935_s17  ;;  %v320_v49 = vmul.f32 100.0, %v266_v35  ;;  %v482_v50 = vsel %vm428_vm0, 10.0, %v3934_v7  ;;  %v211_v44 = vsub.f32 %v55_v29, %v109_v30  ;;  %vm427_vm2 = vcmp.ne.f32.partialorder %v55_v29, 1.0 }
  0x7a   :  { %v747_v53 = vmax.f32 %v693_v20, 0.0  ;;  %v696_v54 = vadd.f32 %v642_v2, %v534_v40  ;;  %v533_v32 = vadd.f32 %v479_v25, %v371_v41  ;;  %v644_v61 = vsel %vm590_vm1, 10.0, %v3934_v7  ;;  %v57_v2 = vld [vmem:[%s8314_s0 + $0x150] sm:$0xff] }
  0x7b   :  { %v374_v0 = vadd.f32 0.1, %v320_v49  ;;  %v265_v1 = vand.u32 2147483647, %v211_v44  ;;  %vm589_vm3 = vcmp.ne.f32.partialorder %v109_v30, 1.0  ;;  %v214_v4 = vsub.f32 %v58_v46, %v112_v47  ;;  %v111_v25 = vld [vmem:[%s8315_s1 + $0x150] sm:$0xff] }
  0x7c   :  { %v4455_v14 = vmin.f32 %v747_v53, 100.0  ;;  %v750_v15 = vmax.f32 %v696_v54, 0.0  ;;  %v695_v19 = vadd.f32 %v641_v45, %v533_v32  ;;  %v481_v23 = vsel %vm427_vm2, 10.0, %v3934_v7  ;;  %v60_v49 = vld [vmem:[%s8314_s0 + $0x168] sm:$0xff] }
  0x7d   :  { %v536_v24 = vadd.f32 %v482_v50, %v374_v0  ;;  %v319_v35 = vmul.f32 100.0, %v265_v1  ;;  %v268_v31 = vand.u32 2147483647, %v214_v4  ;;  %vm430_vm4 = vcmp.ne.f32.partialorder %v58_v46, 1.0  ;;  %v114_v50 = vld [vmem:[%s8315_s1 + $0x168] sm:$0xff] }
  0x7e   :  { %8566 = vst [vmem:[#allocation16_spill] sm:$0xff] %v4455_v14  ;;  %945 = vrot.lane.b32.xlu0 %v4455_v14, %s3935_s17  ;;  %v4466_v29 = vmin.f32 %v750_v15, 100.0  ;;  %v749_v30 = vmax.f32 %v695_v19, 0.0  ;;  %v643_v20 = vsel %vm589_vm3, 10.0, %v3934_v7  ;;  %vm592_vm5 = vcmp.ne.f32.partialorder %v112_v47, 1.0 }
  0x7f   :  { %v698_v40 = vadd.f32 %v644_v61, %v536_v24  ;;  %v373_v41 = vadd.f32 0.1, %v319_v35  ;;  %v322_v45 = vmul.f32 100.0, %v268_v31  ;;  %v484_v46 = vsel %vm430_vm4, 10.0, %v3934_v7  ;;  %v59_v31 = vld [vmem:[%s8314_s0 + $0x160] sm:$0xf] }
  0x80   :  { %8567 = vst [vmem:[#allocation17_spill] sm:$0xff] %v4466_v29  ;;  %951 = vrot.lane.b32.xlu1 %v4466_v29, %s3935_s17  ;;  %v4478_v44 = vmin.f32 %v749_v30, 100.0  ;;  %v213_v53 = vsub.f32 %v57_v2, %v111_v25  ;;  %vm429_vm6 = vcmp.ne.f32.partialorder %v57_v2, 1.0  ;;  %vm591_vm7 = vcmp.ne.f32.partialorder %v111_v25, 1.0  ;;  %v113_v1 = vld [vmem:[%s8315_s1 + $0x160] sm:$0xf] }
  0x81   :  { %v752_v54 = vmax.f32 %v698_v40, 0.0  ;;  %v535_v32 = vadd.f32 %v481_v23, %v373_v41  ;;  %v376_v61 = vadd.f32 0.1, %v322_v45  ;;  %v646_v0 = vsel %vm592_vm5, 10.0, %v3934_v7  ;;  %v62_v40 = vld [vmem:[%s8314_s0 + $0x178] sm:$0xff] }
  0x82   :  { %8568 = vst [vmem:[#allocation18_spill] sm:$0xff] %v4478_v44  ;;  %949 = vrot.lane.b32.xlu0 %v4478_v44, %s3935_s17  ;;  %v267_v4 = vand.u32 2147483647, %v213_v53  ;;  %v483_v15 = vsel %vm429_vm6, 10.0, %v3934_v7  ;;  %v216_v19 = vsub.f32 %v60_v49, %v114_v50  ;;  %vm432_vm8 = vcmp.ne.f32.partialorder %v60_v49, 1.0  ;;  %v116_v41 = vld [vmem:[%s8315_s1 + $0x178] sm:$0xff] }
  0x83   :  { %v4491_v24 = vmin.f32 %v752_v54, 100.0  ;;  %v697_v35 = vadd.f32 %v643_v20, %v535_v32  ;;  %v538_v23 = vadd.f32 %v484_v46, %v376_v61  ;;  %v645_v2 = vsel %vm591_vm7, 10.0, %v3934_v7 }
  0x84   :  { %v321_v47 = vmul.f32 100.0, %v267_v4  ;;  %v270_v25 = vand.u32 2147483647, %v216_v19  ;;  %vm594_vm9 = vcmp.ne.f32.partialorder %v114_v50, 1.0  ;;  %v215_v30 = vsub.f32 %v59_v31, %v113_v1 }
  0x85   :  { %8569 = vst [vmem:[#allocation19_spill] sm:$0xff] %v4491_v24  ;;  %v4500_v45 = vpop.permute.xlu1 %877  ;;  %955 = vrot.lane.b32.xlu1 %v4491_v24, %s3935_s17  ;;  %v751_v20 = vmax.f32 %v697_v35, 0.0  ;;  %v700_v46 = vadd.f32 %v646_v0, %v538_v23  ;;  %v486_v49 = vsel %vm432_vm8, 10.0, %v3934_v7  ;;  %vm431_vm10 = vcmp.ne.f32.partialorder %v59_v31, 1.0  ;;  %v4505_v50 = vpop.permute.xlu0 %873  ;;  %v61_v31 = vld [vmem:[%s8314_s0 + $0x170] sm:$0xff] }
  0x86   :  { %8570 = vst [vmem:[#allocation20_spill] sm:$0xff] %v4500_v45  ;;  %8571 = vst [vmem:[#allocation21_spill] sm:$0xff] %v4505_v50  ;;  %v375_v53 = vadd.f32 0.1, %v321_v47  ;;  %v324_v54 = vmul.f32 100.0, %v270_v25  ;;  %v648_v32 = vsel %vm594_vm9, 10.0, %v3934_v7  ;;  %v218_v44 = vsub.f32 %v62_v40, %v116_v41 }
  0x87   :  { %v269_v61 = vand.u32 2147483647, %v215_v30  ;;  %v4508_v4 = vmin.f32 %v751_v20, 100.0  ;;  %v754_v19 = vmax.f32 %v700_v46, 0.0  ;;  %v485_v45 = vsel %vm431_vm10, 10.0, %v3934_v7  ;;  %v115_v0 = vld [vmem:[%s8315_s1 + $0x170] sm:$0xff] }
  0x88   :  { %v537_v29 = vadd.f32 %v483_v15, %v375_v53  ;;  %v378_v24 = vadd.f32 0.1, %v324_v54  ;;  %vm593_vm11 = vcmp.ne.f32.partialorder %v113_v1, 1.0  ;;  %v272_v25 = vand.u32 2147483647, %v218_v44  ;;  %v64_v46 = vld [vmem:[%s8314_s0 + $0x188] sm:$0xff] }
  0x89   :  { %8572 = vst [vmem:[#allocation22_spill] sm:$0xff] %v4508_v4  ;;  %v323_v35 = vmul.f32 100.0, %v269_v61  ;;  %v4517_v23 = vpop.permute.xlu1 %879  ;;  %953 = vrot.lane.b32.xlu0 %v4508_v4, %s3935_s17  ;;  %v4521_v47 = vmin.f32 %v754_v19, 100.0  ;;  %vm434_vm12 = vcmp.ne.f32.partialorder %v62_v40, 1.0  ;;  %vm596_vm13 = vcmp.ne.f32.partialorder %v116_v41, 1.0  ;;  %v118_v53 = vld [vmem:[%s8315_s1 + $0x188] sm:$0xff]  ;;  %v4529_v54 = vpop.permute.xlu0 %875 }
  0x8a   :  { %8573 = vst [vmem:[#allocation23_spill] sm:$0xff] %v4517_v23  ;;  %v699_v15 = vadd.f32 %v645_v2, %v537_v29  ;;  %v540_v30 = vadd.f32 %v486_v49, %v378_v24  ;;  %8575 = vst [vmem:[#allocation25_spill] sm:$0xff] %v4529_v54  ;;  %v647_v44 = vsel %vm593_vm11, 10.0, %v3934_v7  ;;  %v326_v40 = vmul.f32 100.0, %v272_v25 }
  0x8b   :  { %8574 = vst [vmem:[#allocation24_spill] sm:$0xff] %v4521_v47  ;;  %v377_v20 = vadd.f32 0.1, %v323_v35  ;;  %959 = vrot.lane.b32.xlu1 %v4521_v47, %s3935_s17  ;;  %v488_v29 = vsel %vm434_vm12, 10.0, %v3934_v7  ;;  %v217_v24 = vsub.f32 %v61_v31, %v115_v0  ;;  %v650_v61 = vsel %vm596_vm13, 10.0, %v3934_v7 }
  0x8c   :  { %v753_v2 = vmax.f32 %v699_v15, 0.0  ;;  %v702_v41 = vadd.f32 %v648_v32, %v540_v30  ;;  %v380_v19 = vadd.f32 0.1, %v326_v40  ;;  %vm433_vm14 = vcmp.ne.f32.partialorder %v61_v31, 1.0  ;;  %v117_v32 = vld [vmem:[%s8315_s1 + $0x180] sm:$0xff] }
  0x8d   :  { %v539_v49 = vadd.f32 %v485_v45, %v377_v20  ;;  %v271_v35 = vand.u32 2147483647, %v217_v24  ;;  %v220_v23 = vsub.f32 %v64_v46, %v118_v53  ;;  %v4537_v54 = vpop.permute.xlu1 %883  ;;  %vm595_vm15 = vcmp.ne.f32.partialorder %v115_v0, 1.0  ;;  %v63_v45 = vld [vmem:[%s8314_s0 + $0x180] sm:$0xff]  ;;  %v66_v24 = vld [vmem:[%s8314_s0 + $0x198] sm:$0xff] }
  0x8e   :  { %8576 = vst [vmem:[#allocation26_spill] sm:$0xff] %v4537_v54  ;;  %v4539_v50 = vmin.f32 %v753_v2, 100.0  ;;  %v756_v47 = vmax.f32 %v702_v41, 0.0  ;;  %v542_v25 = vadd.f32 %v488_v29, %v380_v19  ;;  %vm436_vm0 = vcmp.ne.f32.partialorder %v64_v46, 1.0  ;;  %v65_v19 = vld [vmem:[%s8314_s0 + $0x190] sm:$0xff] }
  0x8f   :  { %v701_v1 = vadd.f32 %v647_v44, %v539_v49  ;;  %v325_v4 = vmul.f32 100.0, %v271_v35  ;;  %v274_v14 = vand.u32 2147483647, %v220_v23  ;;  %v487_v0 = vsel %vm433_vm14, 10.0, %v3934_v7  ;;  %v4553_v23 = vpop.permute.xlu0 %881  ;;  %v119_v35 = vld [vmem:[%s8315_s1 + $0x190] sm:$0xff] }
  0x90   :  { %957 = vrot.lane.b32.xlu0 %v4539_v50, %s3935_s17  ;;  %v4549_v15 = vmin.f32 %v756_v47, 100.0  ;;  %vm598_vm1 = vcmp.ne.f32.partialorder %v118_v53, 1.0  ;;  %8577 = vst [vmem:[#allocation27_spill] sm:$0xff] %v4553_v23  ;;  %v704_v20 = vadd.f32 %v650_v61, %v542_v25  ;;  %v649_v40 = vsel %vm595_vm15, 10.0, %v3934_v7  ;;  %v120_v47 = vld [vmem:[%s8315_s1 + $0x198] sm:$0xff] }
  0x91   :  { %v755_v30 = vmax.f32 %v701_v1, 0.0  ;;  %v379_v44 = vadd.f32 0.1, %v325_v4  ;;  %v328_v29 = vmul.f32 100.0, %v274_v14  ;;  %v490_v2 = vsel %vm436_vm0, 10.0, %v3934_v7 }
  0x92   :  { %963 = vrot.lane.b32.xlu1 %v4549_v15, %s3935_s17  ;;  %v219_v4 = vsub.f32 %v63_v45, %v117_v32  ;;  %vm435_vm2 = vcmp.ne.f32.partialorder %v63_v45, 1.0  ;;  %v758_v41 = vmax.f32 %v704_v20, 0.0  ;;  %v652_v61 = vsel %vm598_vm1, 10.0, %v3934_v7 }
  0x93   :  { %v4564_v31 = vmin.f32 %v755_v30, 100.0  ;;  %v541_v14 = vadd.f32 %v487_v0, %v379_v44  ;;  %v382_v49 = vadd.f32 0.1, %v328_v29  ;;  %v4576_v1 = vpop.permute.xlu1 %887  ;;  %vm597_vm3 = vcmp.ne.f32.partialorder %v117_v32, 1.0  ;;  %v68_v44 = vld [vmem:[%s8314_s0 + $0x1a8] sm:$0xf] }
  0x94   :  { %8579 = vst [vmem:[#allocation29_spill] sm:$0xff] %v4576_v1  ;;  %v273_v46 = vand.u32 2147483647, %v219_v4  ;;  %v222_v25 = vsub.f32 %v66_v24, %v120_v47  ;;  %vm438_vm4 = vcmp.ne.f32.partialorder %v66_v24, 1.0  ;;  %v4580_v30 = vmin.f32 %v758_v41, 100.0  ;;  %v67_v24 = vld [vmem:[%s8314_s0 + $0x1a0] sm:$0xff] }
  0x95   :  { %8578 = vst [vmem:[#allocation28_spill] sm:$0xff] %v4564_v31  ;;  %961 = vrot.lane.b32.xlu0 %v4564_v31, %s3935_s17  ;;  %v703_v53 = vadd.f32 %v649_v40, %v541_v14  ;;  %v544_v0 = vadd.f32 %v490_v2, %v382_v49  ;;  %v489_v20 = vsel %vm435_vm2, 10.0, %v3934_v7  ;;  %vm600_vm5 = vcmp.ne.f32.partialorder %v120_v47, 1.0  ;;  %v122_v4 = vld [vmem:[%s8315_s1 + $0x1a8] sm:$0xf]  ;;  %s3936_s0 = smov 1  }
  0x96   :  { %8580 = vst [vmem:[#allocation30_spill] sm:$0xff] %v4580_v30  ;;  %v327_v29 = vmul.f32 100.0, %v273_v46  ;;  %v276_v1 = vand.u32 2147483647, %v222_v25  ;;  %v221_v23 = vsub.f32 %v65_v19, %v119_v35  ;;  %v4590_v54 = vpop.permute.xlu0 %885  ;;  %967 = vrot.lane.b32.xlu1 %v4580_v30, %s3935_s17  ;;  %v651_v2 = vsel %vm597_vm3, 10.0, %v3934_v7 }
  0x97   :  { %8581 = vst [vmem:[#allocation31_spill] sm:$0xff] %v4590_v54  ;;  %v757_v40 = vmax.f32 %v703_v53, 0.0  ;;  %v706_v45 = vadd.f32 %v652_v61, %v544_v0  ;;  %v492_v41 = vsel %vm438_vm4, 10.0, %v3934_v7  ;;  %vm437_vm6 = vcmp.ne.f32.partialorder %v65_v19, 1.0 }
  0x98   :  { %v381_v14 = vadd.f32 0.1, %v327_v29  ;;  %v330_v49 = vmul.f32 100.0, %v276_v1  ;;  %v275_v46 = vand.u32 2147483647, %v221_v23  ;;  %v4598_v25 = vpop.permute.xlu1 %891  ;;  %v654_v30 = vsel %vm600_vm5, 10.0, %v3934_v7 }
  0x99   :  { %8582 = vst [vmem:[#allocation32_spill] sm:$0xff] %v4598_v25  ;;  %v4600_v31 = vmin.f32 %v757_v40, 100.0  ;;  %v760_v54 = vmax.f32 %v706_v45, 0.0  ;;  %v224_v53 = vsub.f32 %v68_v44, %v122_v4  ;;  %vm599_vm7 = vcmp.ne.f32.partialorder %v119_v35, 1.0  ;;  %v121_v23 = vld [vmem:[%s8315_s1 + $0x1a0] sm:$0xff] }
  0x9a   :  { %v543_v61 = vadd.f32 %v489_v20, %v381_v14  ;;  %v384_v0 = vadd.f32 0.1, %v330_v49  ;;  %v329_v32 = vmul.f32 100.0, %v275_v46  ;;  %v491_v47 = vsel %vm437_vm6, 10.0, %v3934_v7  ;;  %v4615_v40 = vpop.permute.xlu0 %889 }
  0x9b   :  { %8583 = vst [vmem:[#allocation33_spill] sm:$0xff] %v4600_v31  ;;  %965 = vrot.lane.b32.xlu0 %v4600_v31, %s3935_s17  ;;  %v4612_v19 = vmin.f32 %v760_v54, 100.0  ;;  %v278_v1 = vand.u32 2147483647, %v224_v53  ;;  %vm440_vm8 = vcmp.ne.f32.partialorder %v68_v44, 1.0  ;;  %8585 = vst [vmem:[#allocation35_spill] sm:$0xff] %v4615_v40  ;;  %v223_v49 = vsub.f32 %v67_v24, %v121_v23 }
  0x9c   :  { %v705_v20 = vadd.f32 %v651_v2, %v543_v61  ;;  %v546_v29 = vadd.f32 %v492_v41, %v384_v0  ;;  %v383_v35 = vadd.f32 0.1, %v329_v32  ;;  %v653_v45 = vsel %vm599_vm7, 10.0, %v3934_v7 }
  0x9d   :  { %8584 = vst [vmem:[#allocation34_spill] sm:$0xff] %v4612_v19  ;;  %971 = vrot.lane.b32.xlu1 %v4612_v19, %s3935_s17  ;;  %v332_v14 = vmul.f32 100.0, %v278_v1  ;;  %vm602_vm9 = vcmp.ne.f32.partialorder %v122_v4, 1.0  ;;  %v494_v31 = vsel %vm440_vm8, 10.0, %v3934_v7  ;;  %v4621_v53 = vpop.permute.xlu1 %895  ;;  %v277_v2 = vand.u32 2147483647, %v223_v49 }
  0x9e   :  { %v759_v46 = vmax.f32 %v705_v20, 0.0  ;;  %v708_v54 = vadd.f32 %v654_v30, %v546_v29  ;;  %v545_v25 = vadd.f32 %v491_v47, %v383_v35  ;;  %8586 = vst [vmem:[#allocation36_spill] sm:$0xff] %v4621_v53  ;;  %vm439_vm10 = vcmp.ne.f32.partialorder %v67_v24, 1.0 }
  0x9f   :  { %v386_v44 = vadd.f32 0.1, %v332_v14  ;;  %v656_v32 = vsel %vm602_vm9, 10.0, %v3934_v7  ;;  %v331_v1 = vmul.f32 100.0, %v277_v2  ;;  %vm601_vm11 = vcmp.ne.f32.partialorder %v121_v23, 1.0 }
  0xa0   :  { %v4623_v41 = vmin.f32 %v759_v46, 100.0  ;;  %v762_v61 = vmax.f32 %v708_v54, 0.0  ;;  %v707_v0 = vadd.f32 %v653_v45, %v545_v25  ;;  %v493_v47 = vsel %vm439_vm10, 10.0, %v3934_v7 }
  0xa1   :  { %v548_v40 = vadd.f32 %v494_v31, %v386_v44  ;;  %v4631_v20 = vpop.permute.xlu0 %893  ;;  %v385_v29 = vadd.f32 0.1, %v331_v1  ;;  %v655_v31 = vsel %vm601_vm11, 10.0, %v3934_v7  ;;  %vm1785_vm12 = vcmask 1041408  }
  0xa2   :  { %8587 = vst [vmem:[#allocation37_spill] sm:$0xff] %v4623_v41  ;;  %969 = vrot.lane.b32.xlu0 %v4623_v41, %s3935_s17  ;;  %v4628_v30 = vmin.f32 %v762_v61, 100.0  ;;  %v761_v4 = vmax.f32 %v707_v0, 0.0  ;;  %8589 = vst [vmem:[#allocation39_spill] sm:$0xff] %v4631_v20  ;;  %vm2201_vm13 = vcmask 1046528   ;;  %vm2412_vm14 = vcmask 1045504  }
  0xa3   :  { %v710_v24 = vadd.f32 %v656_v32, %v548_v40  ;;  %v4638_v23 = vpop.permute.xlu1 %899  ;;  %v547_v45 = vadd.f32 %v493_v47, %v385_v29  ;;  %vm1990_vm15 = vcmask 1040384   ;;  %vm3301_vm0 = vcmask 523266  }
  0xa4   :  { %8588 = vst [vmem:[#allocation38_spill] sm:$0xff] %v4628_v30  ;;  %975 = vrot.lane.b32.xlu1 %v4628_v30, %s3935_s17  ;;  %v4635_v25 = vmin.f32 %v761_v4, 100.0  ;;  %8591 = vst [vmem:[#allocation41_spill] sm:$0xff] %v4638_v23  ;;  %vm3305_vm1 = vcmask 523264   ;;  %vm3327_vm2 = vcmask 517120   ;;  %vm3532_vm3 = vcmask 113712  }
  0xa5   :  { %v764_v35 = vmax.f32 %v710_v24, 0.0  ;;  %v709_v49 = vadd.f32 %v655_v31, %v547_v45  ;;  %vm3539_vm4 = vcmask 179312   ;;  %vm3546_vm5 = vcmask 244912  }
  0xa6   :  { %8590 = vst [vmem:[#allocation40_spill] sm:$0xff] %v4635_v25  ;;  %973 = vrot.lane.b32.xlu0 %v4635_v25, %s3935_s17  ;;  %vm3553_vm6 = vcmask 310512   ;;  %vm3560_vm7 = vcmask 376112   ;;  %vm3567_vm8 = vcmask 441712   ;;  %vm3574_vm9 = vcmask 507312  }
  0xa7   :  { %v4642_v14 = vmin.f32 %v764_v35, 100.0  ;;  %v763_v40 = vmax.f32 %v709_v49, 0.0  ;;  %vm3581_vm10 = vcmask 572912   ;;  %vm3803_vm11 = vcmask 1041409  }
  0xa8   :  { %v4644_v46 = vpop.permute.xlu0 %897 }
  0xa9   :  { %8592 = vst [vmem:[#allocation42_spill] sm:$0xff] %v4642_v14  ;;  %979 = vrot.lane.b32.xlu1 %v4642_v14, %s3935_s17  ;;  %v4650_v44 = vmin.f32 %v763_v40, 100.0 }
  0xaa   :  { %v4648_v54 = vpop.permute.xlu1 %903 }
  0xab   :  { %8593 = vst [vmem:[#allocation43_spill] sm:$0xff] %v4648_v54  ;;  %8594 = vst [vmem:[#allocation44_spill] sm:$0xff] %v4650_v44  ;;  %977 = vrot.lane.b32.xlu0 %v4650_v44, %s3935_s17 }
  0xac   :  { %v4656_v7 = vpop.permute.xlu0 %901 }
  0xad   :  { %1091 = vrot.lane.b32.xlu1 %v4036_v13, %s3936_s0  ;;  %8595 = vst [vmem:[#allocation45_spill] sm:$0xff] %v4656_v7 }
  0xaf   :  { %v4658_v2 = vpop.permute.xlu1 %907  ;;  %1089 = vrot.lane.b32.xlu0 %v4016_v63, %s3936_s0 }
  0xb0   :  { %8596 = vst [vmem:[#allocation46_spill] sm:$0xff] %v4658_v2 }
  0xb1   :  { %1095 = vrot.lane.b32.xlu1 %v4026_v5, %s3936_s0 }
  0xb3   :  { %v4664_v61 = vpop.permute.xlu0 %905  ;;  %1093 = vrot.lane.b32.xlu0 %v4013_v59, %s3936_s0 }
  0xb4   :  { %8597 = vst [vmem:[#allocation47_spill] sm:$0xff] %v4664_v61 }
  0xb5   :  { %1099 = vrot.lane.b32.xlu1 %v4042_v17, %s3936_s0  ;;  %v4670_v0 = vpop.permute.xlu1 %911 }
  0xb6   :  { %8598 = vst [vmem:[#allocation48_spill] sm:$0xff] %v4670_v0  ;;  %v8634_v0 = vld [vmem:[#allocation30_spill] sm:$0xff] }
  0xb7   :  { %1097 = vrot.lane.b32.xlu0 %v4060_v33, %s3936_s0 }
  0xb9   :  { %1103 = vrot.lane.b32.xlu1 %v4083_v57, %s3936_s0 }
  0xba   :  { %v4676_v32 = vpop.permute.xlu0 %909 }
  0xbb   :  { %8599 = vst [vmem:[#allocation49_spill] sm:$0xff] %v4676_v32  ;;  %1101 = vrot.lane.b32.xlu0 %v4088_v6, %s3936_s0 }
  0xbc   :  { %v4678_v1 = vpop.permute.xlu1 %915 }
  0xbd   :  { %8600 = vst [vmem:[#allocation50_spill] sm:$0xff] %v4678_v1  ;;  %1107 = vrot.lane.b32.xlu1 %v4099_v18, %s3936_s0 }
  0xbe   :  { %v4684_v4 = vpop.permute.xlu0 %913 }
  0xbf   :  { %8601 = vst [vmem:[#allocation51_spill] sm:$0xff] %v4684_v4  ;;  %1105 = vrot.lane.b32.xlu0 %v4111_v27, %s3936_s0 }
  0xc1   :  { %1111 = vrot.lane.b32.xlu1 %v4123_v39, %s3936_s0  ;;  %v4690_v47 = vpop.permute.xlu1 %919 }
  0xc2   :  { %8602 = vst [vmem:[#allocation52_spill] sm:$0xff] %v4690_v47  ;;  %v8626_v47 = vld [vmem:[#allocation19_spill] sm:$0xff] }
  0xc3   :  { %1109 = vrot.lane.b32.xlu0 %v4136_v55, %s3936_s0 }
  0xc5   :  { %1115 = vrot.lane.b32.xlu1 %v4147_v3, %s3936_s0  ;;  %v4696_v24 = vpop.permute.xlu0 %917 }
  0xc6   :  { %8603 = vst [vmem:[#allocation53_spill] sm:$0xff] %v4696_v24 }
  0xc7   :  { %v4698_v29 = vpop.permute.xlu1 %923  ;;  %1113 = vrot.lane.b32.xlu0 %v4161_v28, %s3936_s0 }
  0xc8   :  { %8604 = vst [vmem:[#allocation54_spill] sm:$0xff] %v4698_v29  ;;  %v8623_v29 = vld [vmem:[#allocation17_spill] sm:$0xff] }
  0xc9   :  { %1119 = vrot.lane.b32.xlu1 %v4172_v38, %s3936_s0 }
  0xcb   :  { %1117 = vrot.lane.b32.xlu0 %v4184_v48, %s3936_s0 }
  0xcc   :  { %v4704_v31 = vpop.permute.xlu0 %921 }
  0xcd   :  { %8605 = vst [vmem:[#allocation55_spill] sm:$0xff] %v4704_v31  ;;  %1123 = vrot.lane.b32.xlu1 %v4197_v62, %s3936_s0 }
  0xce   :  { %v4710_v35 = vpop.permute.xlu1 %927 }
  0xcf   :  { %8606 = vst [vmem:[#allocation56_spill] sm:$0xff] %v4710_v35  ;;  %1121 = vrot.lane.b32.xlu0 %v4210_v22, %s3936_s0 }
  0xd0   :  { %v4716_v45 = vpop.permute.xlu0 %925 }
  0xd1   :  { %1127 = vrot.lane.b32.xlu1 %v4221_v34, %s3936_s0  ;;  %8607 = vst [vmem:[#allocation57_spill] sm:$0xff] %v4716_v45 }
  0xd3   :  { %v4718_v49 = vpop.permute.xlu1 %931  ;;  %1125 = vrot.lane.b32.xlu0 %v4235_v56, %s3936_s0 }
  0xd4   :  { %8608 = vst [vmem:[#allocation58_spill] sm:$0xff] %v4718_v49 }
  0xd5   :  { %1131 = vrot.lane.b32.xlu1 %v4246_v9, %s3936_s0 }
  0xd7   :  { %v4724_v40 = vpop.permute.xlu0 %929  ;;  %1129 = vrot.lane.b32.xlu0 %v4258_v21, %s3936_s0 }
  0xd8   :  { %8609 = vst [vmem:[#allocation59_spill] sm:$0xff] %v4724_v40 }
  0xd9   :  { %1135 = vrot.lane.b32.xlu1 %v4271_v37, %s3936_s0  ;;  %v4730_v35 = vpop.permute.xlu1 %935 }
  0xda   :  { %8610 = vst [vmem:[#allocation60_spill] sm:$0xff] %v4730_v35 }
  0xdb   :  { %1133 = vrot.lane.b32.xlu0 %v4284_v60, %s3936_s0  ;;  %v8750_v54 = vld [vmem:[#allocation58_spill] sm:$0xff] }
  0xdd   :  { %1139 = vrot.lane.b32.xlu1 %v4295_v12, %s3936_s0 }
  0xde   :  { %v4736_v49 = vpop.permute.xlu0 %933 }
  0xdf   :  { %8611 = vst [vmem:[#allocation61_spill] sm:$0xff] %v4736_v49  ;;  %1137 = vrot.lane.b32.xlu0 %v4309_v42, %s3936_s0 }
  0xe0   :  { %v4738_v45 = vpop.permute.xlu1 %939 }
  0xe1   :  { %8612 = vst [vmem:[#allocation62_spill] sm:$0xff] %v4738_v45  ;;  %1143 = vrot.lane.b32.xlu1 %v4320_v52, %s3936_s0 }
  0xe2   :  { %v4744_v40 = vpop.permute.xlu0 %937 }
  0xe3   :  { %8613 = vst [vmem:[#allocation63_spill] sm:$0xff] %v4744_v40  ;;  %1141 = vrot.lane.b32.xlu0 %v4332_v8, %s3936_s0 }
  0xe5   :  { %1147 = vrot.lane.b32.xlu1 %v4344_v26, %s3936_s0  ;;  %v4750_v35 = vpop.permute.xlu1 %943 }
  0xe6   :  { %8614 = vst [vmem:[#allocation64_spill] sm:$0xff] %v4750_v35 }
  0xe7   :  { %1145 = vrot.lane.b32.xlu0 %v4357_v51, %s3936_s0 }
  0xe9   :  { %1151 = vrot.lane.b32.xlu1 %v4368_v10, %s3936_s0  ;;  %v4756_v45 = vpop.permute.xlu0 %941 }
  0xea   :  { %8615 = vst [vmem:[#allocation65_spill] sm:$0xff] %v4756_v45 }
  0xeb   :  { %v4758_v49 = vpop.permute.xlu1 %947  ;;  %1149 = vrot.lane.b32.xlu0 %v4382_v43, %s3936_s0 }
  0xec   :  { %8616 = vst [vmem:[#allocation66_spill] sm:$0xff] %v4758_v49  ;;  %v8619_v49 = vld [vmem:[#allocation15_spill] sm:$0xff] }
  0xed   :  { %1155 = vrot.lane.b32.xlu1 %v4393_v58, %s3936_s0 }
  0xef   :  { %1153 = vrot.lane.b32.xlu0 %v4405_v16, %s3936_s0 }
  0xf0   :  { %v4764_v40 = vpop.permute.xlu0 %945 }
  0xf1   :  { %8617 = vst [vmem:[#allocation67_spill] sm:$0xff] %v4764_v40  ;;  %1159 = vrot.lane.b32.xlu1 %v4417_v36, %s3936_s0  ;;  %v8622_v40 = vld [vmem:[#allocation16_spill] sm:$0xff] }
  0xf2   :  { %v4770_v35 = vpop.permute.xlu1 %951 }
  0xf3   :  { %8618 = vst [vmem:[#allocation68_spill] sm:$0xff] %v4770_v35  ;;  %1157 = vrot.lane.b32.xlu0 %v4430_v11, %s3936_s0  ;;  %v8625_v35 = vld [vmem:[#allocation18_spill] sm:$0xff] }
  0xf4   :  { %v4776_v45 = vpop.permute.xlu0 %949 }
  0xf5   :  { %1163 = vrot.lane.b32.xlu1 %v8619_v49, %s3936_s0  ;;  %8620 = vst [vmem:[#allocation15_spill] sm:$0xff] %v4776_v45  ;;  %v8628_v45 = vld [vmem:[#allocation22_spill] sm:$0xff] }
  0xf7   :  { %v4778_v31 = vpop.permute.xlu1 %955  ;;  %1161 = vrot.lane.b32.xlu0 %v8622_v40, %s3936_s0 }
  0xf8   :  { %8621 = vst [vmem:[#allocation69_spill] sm:$0xff] %v4778_v31  ;;  %v8629_v31 = vld [vmem:[#allocation24_spill] sm:$0xff] }
  0xf9   :  { %1167 = vrot.lane.b32.xlu1 %v8623_v29, %s3936_s0 }
  0xfb   :  { %v4784_v24 = vpop.permute.xlu0 %953  ;;  %1165 = vrot.lane.b32.xlu0 %v8625_v35, %s3936_s0 }
  0xfc   :  { %8624 = vst [vmem:[#allocation16_spill] sm:$0xff] %v4784_v24 }
  0xfd   :  { %1171 = vrot.lane.b32.xlu1 %v8626_v47, %s3936_s0  ;;  %v4790_v4 = vpop.permute.xlu1 %959 }
  0xfe   :  { %8627 = vst [vmem:[#allocation17_spill] sm:$0xff] %v4790_v4  ;;  %v8633_v4 = vld [vmem:[#allocation28_spill] sm:$0xff] }
  0xff   :  { %1169 = vrot.lane.b32.xlu0 %v8628_v45, %s3936_s0 }
 0x101   :  { %1175 = vrot.lane.b32.xlu1 %v8629_v31, %s3936_s0 }
 0x102   :  { %v4796_v1 = vpop.permute.xlu0 %957 }
 0x103   :  { %8630 = vst [vmem:[#allocation70_spill] sm:$0xff] %v4796_v1  ;;  %1173 = vrot.lane.b32.xlu0 %v4539_v50, %s3936_s0  ;;  %v8636_v1 = vld [vmem:[#allocation33_spill] sm:$0xff] }
 0x104   :  { %v4798_v32 = vpop.permute.xlu1 %963 }
 0x105   :  { %8631 = vst [vmem:[#allocation71_spill] sm:$0xff] %v4798_v32  ;;  %1179 = vrot.lane.b32.xlu1 %v4549_v15, %s3936_s0 }
 0x107   :  { %v4804_v24 = vpop.permute.xlu0 %961  ;;  %1177 = vrot.lane.b32.xlu0 %v8633_v4, %s3936_s0 }
 0x108   :  { %8632 = vst [vmem:[#allocation72_spill] sm:$0xff] %v4804_v24  ;;  %v4810_v61 = vpop.permute.xlu1 %967 }
 0x109   :  { %1183 = vrot.lane.b32.xlu1 %v8634_v0, %s3936_s0  ;;  %8635 = vst [vmem:[#allocation73_spill] sm:$0xff] %v4810_v61 }
 0x10b   :  { %1181 = vrot.lane.b32.xlu0 %v8636_v1, %s3936_s0 }
 0x10d   :  { %1187 = vrot.lane.b32.xlu1 %v4612_v19, %s3936_s0  ;;  %v4816_v32 = vpop.permute.xlu0 %965 }
 0x10e   :  { %8637 = vst [vmem:[#allocation74_spill] sm:$0xff] %v4816_v32 }
 0x10f   :  { %v4818_v2 = vpop.permute.xlu1 %971  ;;  %1185 = vrot.lane.b32.xlu0 %v4623_v41, %s3936_s0 }
 0x110   :  { %8638 = vst [vmem:[#allocation75_spill] sm:$0xff] %v4818_v2 }
 0x111   :  { %1191 = vrot.lane.b32.xlu1 %v4628_v30, %s3936_s0 }
 0x113   :  { %1189 = vrot.lane.b32.xlu0 %v4635_v25, %s3936_s0 }
 0x114   :  { %v4824_v24 = vpop.permute.xlu0 %969 }
 0x115   :  { %8639 = vst [vmem:[#allocation76_spill] sm:$0xff] %v4824_v24  ;;  %1195 = vrot.lane.b32.xlu1 %v4642_v14, %s3936_s0 }
 0x116   :  { %v4830_v61 = vpop.permute.xlu1 %975 }
 0x117   :  { %8640 = vst [vmem:[#allocation77_spill] sm:$0xff] %v4830_v61  ;;  %1193 = vrot.lane.b32.xlu0 %v4650_v44, %s3936_s0 }
 0x118   :  { %v4834_v2 = vpop.permute.xlu0 %973 }
 0x119   :  { %8641 = vst [vmem:[#allocation78_spill] sm:$0xff] %v4834_v2  ;;  %1307 = vrot.lane.b32.xlu1 %v4036_v13, %s3937_s20 }
 0x11b   :  { %v4838_v32 = vpop.permute.xlu1 %979  ;;  %1305 = vrot.lane.b32.xlu0 %v4016_v63, %s3937_s20 }
 0x11c   :  { %8642 = vst [vmem:[#allocation79_spill] sm:$0xff] %v4838_v32 }
 0x11d   :  { %1311 = vrot.lane.b32.xlu1 %v4026_v5, %s3937_s20  ;;  %v4844_v24 = vpop.permute.xlu0 %977 }
 0x11e   :  { %8643 = vst [vmem:[#allocation80_spill] sm:$0xff] %v4844_v24 }
 0x11f   :  { %v4846_v61 = vpop.permute.xlu1 %1091  ;;  %1309 = vrot.lane.b32.xlu0 %v4013_v59, %s3937_s20 }
 0x120   :  { %8644 = vst [vmem:[#allocation81_spill] sm:$0xff] %v4846_v61 }
 0x121   :  { %1315 = vrot.lane.b32.xlu1 %v4042_v17, %s3937_s20  ;;  %v4852_v2 = vpop.permute.xlu0 %1089 }
 0x122   :  { %8645 = vst [vmem:[#allocation82_spill] sm:$0xff] %v4852_v2 }
 0x123   :  { %v4854_v7 = vpop.permute.xlu1 %1095  ;;  %1313 = vrot.lane.b32.xlu0 %v4060_v33, %s3937_s20 }
 0x124   :  { %8646 = vst [vmem:[#allocation83_spill] sm:$0xff] %v4854_v7 }
 0x125   :  { %1319 = vrot.lane.b32.xlu1 %v4083_v57, %s3937_s20  ;;  %v4860_v32 = vpop.permute.xlu0 %1093 }
 0x126   :  { %8647 = vst [vmem:[#allocation84_spill] sm:$0xff] %v4860_v32 }
 0x127   :  { %v4862_v24 = vpop.permute.xlu1 %1099  ;;  %1317 = vrot.lane.b32.xlu0 %v4088_v6, %s3937_s20 }
 0x128   :  { %8648 = vst [vmem:[#allocation85_spill] sm:$0xff] %v4862_v24 }
 0x129   :  { %1323 = vrot.lane.b32.xlu1 %v4099_v18, %s3937_s20  ;;  %v4868_v61 = vpop.permute.xlu0 %1097 }
 0x12a   :  { %8649 = vst [vmem:[#allocation86_spill] sm:$0xff] %v4868_v61 }
 0x12b   :  { %v4870_v2 = vpop.permute.xlu1 %1103  ;;  %1321 = vrot.lane.b32.xlu0 %v4111_v27, %s3937_s20 }
 0x12c   :  { %8650 = vst [vmem:[#allocation87_spill] sm:$0xff] %v4870_v2 }
 0x12d   :  { %1327 = vrot.lane.b32.xlu1 %v4123_v39, %s3937_s20  ;;  %v4876_v7 = vpop.permute.xlu0 %1101 }
 0x12e   :  { %8651 = vst [vmem:[#allocation88_spill] sm:$0xff] %v4876_v7 }
 0x12f   :  { %v4878_v32 = vpop.permute.xlu1 %1107  ;;  %1325 = vrot.lane.b32.xlu0 %v4136_v55, %s3937_s20 }
 0x130   :  { %8652 = vst [vmem:[#allocation89_spill] sm:$0xff] %v4878_v32 }
 0x131   :  { %1331 = vrot.lane.b32.xlu1 %v4147_v3, %s3937_s20  ;;  %v4884_v24 = vpop.permute.xlu0 %1105 }
 0x132   :  { %8653 = vst [vmem:[#allocation90_spill] sm:$0xff] %v4884_v24 }
 0x133   :  { %v4886_v61 = vpop.permute.xlu1 %1111  ;;  %1329 = vrot.lane.b32.xlu0 %v4161_v28, %s3937_s20 }
 0x134   :  { %8654 = vst [vmem:[#allocation91_spill] sm:$0xff] %v4886_v61 }
 0x135   :  { %1335 = vrot.lane.b32.xlu1 %v4172_v38, %s3937_s20  ;;  %v4892_v2 = vpop.permute.xlu0 %1109 }
 0x136   :  { %8655 = vst [vmem:[#allocation92_spill] sm:$0xff] %v4892_v2 }
 0x137   :  { %v4894_v7 = vpop.permute.xlu1 %1115  ;;  %1333 = vrot.lane.b32.xlu0 %v4184_v48, %s3937_s20 }
 0x138   :  { %8656 = vst [vmem:[#allocation93_spill] sm:$0xff] %v4894_v7 }
 0x139   :  { %1339 = vrot.lane.b32.xlu1 %v4197_v62, %s3937_s20  ;;  %v4900_v32 = vpop.permute.xlu0 %1113 }
 0x13a   :  { %8657 = vst [vmem:[#allocation94_spill] sm:$0xff] %v4900_v32 }
 0x13b   :  { %v4902_v24 = vpop.permute.xlu1 %1119  ;;  %1337 = vrot.lane.b32.xlu0 %v4210_v22, %s3937_s20 }
 0x13c   :  { %8658 = vst [vmem:[#allocation95_spill] sm:$0xff] %v4902_v24 }
 0x13d   :  { %1343 = vrot.lane.b32.xlu1 %v4221_v34, %s3937_s20  ;;  %v4908_v61 = vpop.permute.xlu0 %1117 }
 0x13e   :  { %8659 = vst [vmem:[#allocation96_spill] sm:$0xff] %v4908_v61 }
 0x13f   :  { %v4910_v2 = vpop.permute.xlu1 %1123  ;;  %1341 = vrot.lane.b32.xlu0 %v4235_v56, %s3937_s20 }
 0x140   :  { %8660 = vst [vmem:[#allocation97_spill] sm:$0xff] %v4910_v2 }
 0x141   :  { %1347 = vrot.lane.b32.xlu1 %v4246_v9, %s3937_s20  ;;  %v4916_v7 = vpop.permute.xlu0 %1121 }
 0x142   :  { %8661 = vst [vmem:[#allocation98_spill] sm:$0xff] %v4916_v7 }
 0x143   :  { %v4918_v32 = vpop.permute.xlu1 %1127  ;;  %1345 = vrot.lane.b32.xlu0 %v4258_v21, %s3937_s20 }
 0x144   :  { %8662 = vst [vmem:[#allocation99_spill] sm:$0xff] %v4918_v32 }
 0x145   :  { %1351 = vrot.lane.b32.xlu1 %v4271_v37, %s3937_s20  ;;  %v4924_v24 = vpop.permute.xlu0 %1125 }
 0x146   :  { %8663 = vst [vmem:[#allocation100_spill] sm:$0xff] %v4924_v24 }
 0x147   :  { %v4926_v61 = vpop.permute.xlu1 %1131  ;;  %1349 = vrot.lane.b32.xlu0 %v4284_v60, %s3937_s20 }
 0x148   :  { %8664 = vst [vmem:[#allocation101_spill] sm:$0xff] %v4926_v61 }
 0x149   :  { %1355 = vrot.lane.b32.xlu1 %v4295_v12, %s3937_s20  ;;  %v4932_v2 = vpop.permute.xlu0 %1129 }
 0x14a   :  { %8665 = vst [vmem:[#allocation102_spill] sm:$0xff] %v4932_v2 }
 0x14b   :  { %v4934_v7 = vpop.permute.xlu1 %1135  ;;  %1353 = vrot.lane.b32.xlu0 %v4309_v42, %s3937_s20 }
 0x14c   :  { %8666 = vst [vmem:[#allocation103_spill] sm:$0xff] %v4934_v7 }
 0x14d   :  { %1359 = vrot.lane.b32.xlu1 %v4320_v52, %s3937_s20  ;;  %v4940_v32 = vpop.permute.xlu0 %1133 }
 0x14e   :  { %8667 = vst [vmem:[#allocation104_spill] sm:$0xff] %v4940_v32 }
 0x14f   :  { %v4942_v24 = vpop.permute.xlu1 %1139  ;;  %1357 = vrot.lane.b32.xlu0 %v4332_v8, %s3937_s20 }
 0x150   :  { %8668 = vst [vmem:[#allocation105_spill] sm:$0xff] %v4942_v24 }
 0x151   :  { %1363 = vrot.lane.b32.xlu1 %v4344_v26, %s3937_s20  ;;  %v4948_v61 = vpop.permute.xlu0 %1137 }
 0x152   :  { %8669 = vst [vmem:[#allocation106_spill] sm:$0xff] %v4948_v61 }
 0x153   :  { %v4950_v2 = vpop.permute.xlu1 %1143  ;;  %1361 = vrot.lane.b32.xlu0 %v4357_v51, %s3937_s20 }
 0x154   :  { %8670 = vst [vmem:[#allocation107_spill] sm:$0xff] %v4950_v2 }
 0x155   :  { %1367 = vrot.lane.b32.xlu1 %v4368_v10, %s3937_s20  ;;  %v4956_v7 = vpop.permute.xlu0 %1141 }
 0x156   :  { %8671 = vst [vmem:[#allocation108_spill] sm:$0xff] %v4956_v7 }
 0x157   :  { %v4958_v32 = vpop.permute.xlu1 %1147  ;;  %1365 = vrot.lane.b32.xlu0 %v4382_v43, %s3937_s20 }
 0x158   :  { %8672 = vst [vmem:[#allocation109_spill] sm:$0xff] %v4958_v32 }
 0x159   :  { %1371 = vrot.lane.b32.xlu1 %v4393_v58, %s3937_s20  ;;  %v4964_v24 = vpop.permute.xlu0 %1145 }
 0x15a   :  { %8673 = vst [vmem:[#allocation110_spill] sm:$0xff] %v4964_v24 }
 0x15b   :  { %v4966_v61 = vpop.permute.xlu1 %1151  ;;  %1369 = vrot.lane.b32.xlu0 %v4405_v16, %s3937_s20 }
 0x15c   :  { %8674 = vst [vmem:[#allocation111_spill] sm:$0xff] %v4966_v61 }
 0x15d   :  { %1375 = vrot.lane.b32.xlu1 %v4417_v36, %s3937_s20  ;;  %v4972_v2 = vpop.permute.xlu0 %1149 }
 0x15e   :  { %8675 = vst [vmem:[#allocation112_spill] sm:$0xff] %v4972_v2 }
 0x15f   :  { %v4974_v7 = vpop.permute.xlu1 %1155  ;;  %1373 = vrot.lane.b32.xlu0 %v4430_v11, %s3937_s20 }
 0x160   :  { %8676 = vst [vmem:[#allocation113_spill] sm:$0xff] %v4974_v7 }
 0x161   :  { %1379 = vrot.lane.b32.xlu1 %v8619_v49, %s3937_s20  ;;  %v4980_v32 = vpop.permute.xlu0 %1153 }
 0x162   :  { %8677 = vst [vmem:[#allocation114_spill] sm:$0xff] %v4980_v32 }
 0x163   :  { %v4982_v24 = vpop.permute.xlu1 %1159  ;;  %1377 = vrot.lane.b32.xlu0 %v8622_v40, %s3937_s20 }
 0x164   :  { %8678 = vst [vmem:[#allocation115_spill] sm:$0xff] %v4982_v24 }
 0x165   :  { %1383 = vrot.lane.b32.xlu1 %v8623_v29, %s3937_s20  ;;  %v4988_v61 = vpop.permute.xlu0 %1157 }
 0x166   :  { %8679 = vst [vmem:[#allocation116_spill] sm:$0xff] %v4988_v61 }
 0x167   :  { %v4990_v2 = vpop.permute.xlu1 %1163  ;;  %1381 = vrot.lane.b32.xlu0 %v8625_v35, %s3937_s20 }
 0x168   :  { %8680 = vst [vmem:[#allocation117_spill] sm:$0xff] %v4990_v2 }
 0x169   :  { %1387 = vrot.lane.b32.xlu1 %v8626_v47, %s3937_s20  ;;  %v4996_v7 = vpop.permute.xlu0 %1161  ;;  %v8789_v47 = vld [vmem:[#allocation81_spill] sm:$0xff] }
 0x16a   :  { %8681 = vst [vmem:[#allocation118_spill] sm:$0xff] %v4996_v7 }
 0x16b   :  { %v4998_v32 = vpop.permute.xlu1 %1167  ;;  %1385 = vrot.lane.b32.xlu0 %v8628_v45, %s3937_s20  ;;  %v8788_v45 = vld [vmem:[#allocation44_spill] sm:$0xff] }
 0x16c   :  { %8682 = vst [vmem:[#allocation119_spill] sm:$0xff] %v4998_v32 }
 0x16d   :  { %1391 = vrot.lane.b32.xlu1 %v8629_v31, %s3937_s20  ;;  %v5004_v24 = vpop.permute.xlu0 %1165 }
 0x16e   :  { %8683 = vst [vmem:[#allocation120_spill] sm:$0xff] %v5004_v24 }
 0x16f   :  { %v5006_v61 = vpop.permute.xlu1 %1171  ;;  %1389 = vrot.lane.b32.xlu0 %v4539_v50, %s3937_s20 }
 0x170   :  { %8684 = vst [vmem:[#allocation121_spill] sm:$0xff] %v5006_v61 }
 0x171   :  { %1395 = vrot.lane.b32.xlu1 %v4549_v15, %s3937_s20  ;;  %v5012_v2 = vpop.permute.xlu0 %1169 }
 0x172   :  { %8685 = vst [vmem:[#allocation122_spill] sm:$0xff] %v5012_v2 }
 0x173   :  { %v5014_v7 = vpop.permute.xlu1 %1175  ;;  %1393 = vrot.lane.b32.xlu0 %v8633_v4, %s3937_s20  ;;  %v8795_v4 = vld [vmem:[#allocation23_spill] sm:$0xff] }
 0x174   :  { %8686 = vst [vmem:[#allocation123_spill] sm:$0xff] %v5014_v7 }
 0x175   :  { %1399 = vrot.lane.b32.xlu1 %v8634_v0, %s3937_s20  ;;  %v5020_v32 = vpop.permute.xlu0 %1173  ;;  %v8730_v0 = vld [vmem:[#allocation27_spill] sm:$0xff] }
 0x176   :  { %8687 = vst [vmem:[#allocation124_spill] sm:$0xff] %v5020_v32 }
 0x177   :  { %v5022_v24 = vpop.permute.xlu1 %1179  ;;  %1397 = vrot.lane.b32.xlu0 %v8636_v1, %s3937_s20 }
 0x178   :  { %8688 = vst [vmem:[#allocation125_spill] sm:$0xff] %v5022_v24 }
 0x179   :  { %1403 = vrot.lane.b32.xlu1 %v4612_v19, %s3937_s20  ;;  %v5028_v61 = vpop.permute.xlu0 %1177 }
 0x17a   :  { %8689 = vst [vmem:[#allocation126_spill] sm:$0xff] %v5028_v61 }
 0x17b   :  { %v5030_v2 = vpop.permute.xlu1 %1183  ;;  %1401 = vrot.lane.b32.xlu0 %v4623_v41, %s3937_s20  ;;  %v8727_v41 = vld [vmem:[#allocation26_spill] sm:$0xff] }
 0x17c   :  { %8690 = vst [vmem:[#allocation127_spill] sm:$0xff] %v5030_v2 }
 0x17d   :  { %1407 = vrot.lane.b32.xlu1 %v4628_v30, %s3937_s20  ;;  %v5036_v7 = vpop.permute.xlu0 %1181  ;;  %v8726_v30 = vld [vmem:[#allocation25_spill] sm:$0xff] }
 0x17e   :  { %8691 = vst [vmem:[#allocation128_spill] sm:$0xff] %v5036_v7  ;;  %v8790_v53 = vmax.f32 %v4036_v13, %v8726_v30  ;;  %v8800_v30 = vld [vmem:[#allocation20_spill] sm:$0xff] }
 0x17f   :  { %v5038_v32 = vpop.permute.xlu1 %1187  ;;  %1405 = vrot.lane.b32.xlu0 %v4635_v25, %s3937_s20  ;;  %v8733_v25 = vld [vmem:[#allocation32_spill] sm:$0xff] }
 0x180   :  { %8692 = vst [vmem:[#allocation129_spill] sm:$0xff] %v5038_v32  ;;  %v5304_v35 = vmax.f32 %v8790_v53, %v8789_v47  ;;  %v8799_v53 = vld [vmem:[#allocation5_spill] sm:$0xff] }
 0x181   :  { %1411 = vrot.lane.b32.xlu1 %v4642_v14, %s3937_s20  ;;  %v5044_v24 = vpop.permute.xlu0 %1185  ;;  %v8801_v47 = vmax.f32 %v8799_v53, %v8800_v30 }
 0x182   :  { %8693 = vst [vmem:[#allocation130_spill] sm:$0xff] %v5044_v24 }
 0x183   :  { %v5046_v61 = vpop.permute.xlu1 %1191  ;;  %1409 = vrot.lane.b32.xlu0 %v4650_v44, %s3937_s20  ;;  %v8732_v44 = vld [vmem:[#allocation31_spill] sm:$0xff] }
 0x184   :  { %8694 = vst [vmem:[#allocation131_spill] sm:$0xff] %v5046_v61  ;;  %v8810_v53 = vmax.f32 %v4088_v6, %v8732_v44 }
 0x185   :  { %1523 = vrot.lane.b32.xlu1 %v4036_v13, %s3938_s21  ;;  %v5052_v7 = vpop.permute.xlu0 %1189  ;;  %v8798_v13 = vld [vmem:[#allocation84_spill] sm:$0xff] }
 0x186   :  { %8695 = vst [vmem:[#allocation132_spill] sm:$0xff] %v5052_v7 }
 0x187   :  { %v5054_v32 = vpop.permute.xlu1 %1195  ;;  %1521 = vrot.lane.b32.xlu0 %v4016_v63, %s3938_s21 }
 0x188   :  { %8696 = vst [vmem:[#allocation133_spill] sm:$0xff] %v5054_v32 }
 0x189   :  { %1527 = vrot.lane.b32.xlu1 %v4026_v5, %s3938_s21  ;;  %v5060_v24 = vpop.permute.xlu0 %1193  ;;  %v8742_v5 = vld [vmem:[#allocation50_spill] sm:$0xff] }
 0x18a   :  { %8697 = vst [vmem:[#allocation134_spill] sm:$0xff] %v5060_v24 }
 0x18b   :  { %v5062_v61 = vpop.permute.xlu1 %1307  ;;  %1525 = vrot.lane.b32.xlu0 %v4013_v59, %s3938_s21  ;;  %v8778_v59 = vld [vmem:[#allocation37_spill] sm:$0xff] }
 0x18c   :  { %8698 = vst [vmem:[#allocation135_spill] sm:$0xff] %v5062_v61 }
 0x18d   :  { %1531 = vrot.lane.b32.xlu1 %v4042_v17, %s3938_s21  ;;  %v5068_v2 = vpop.permute.xlu0 %1305 }
 0x18e   :  { %8699 = vst [vmem:[#allocation136_spill] sm:$0xff] %v5068_v2 }
 0x18f   :  { %v5070_v7 = vpop.permute.xlu1 %1311  ;;  %1529 = vrot.lane.b32.xlu0 %v4060_v33, %s3938_s21 }
 0x190   :  { %8700 = vst [vmem:[#allocation137_spill] sm:$0xff] %v5070_v7 }
 0x191   :  { %1535 = vrot.lane.b32.xlu1 %v4083_v57, %s3938_s21  ;;  %v5076_v32 = vpop.permute.xlu0 %1309 }
 0x192   :  { %8701 = vst [vmem:[#allocation138_spill] sm:$0xff] %v5076_v32 }
 0x193   :  { %v5078_v24 = vpop.permute.xlu1 %1315  ;;  %1533 = vrot.lane.b32.xlu0 %v4088_v6, %s3938_s21 }
 0x194   :  { %8702 = vst [vmem:[#allocation139_spill] sm:$0xff] %v5078_v24 }
 0x195   :  { %1539 = vrot.lane.b32.xlu1 %v4099_v18, %s3938_s21  ;;  %v5084_v61 = vpop.permute.xlu0 %1313 }
 0x196   :  { %8703 = vst [vmem:[#allocation140_spill] sm:$0xff] %v5084_v61 }
 0x197   :  { %v5086_v2 = vpop.permute.xlu1 %1319  ;;  %1537 = vrot.lane.b32.xlu0 %v4111_v27, %s3938_s21 }
 0x198   :  { %8704 = vst [vmem:[#allocation141_spill] sm:$0xff] %v5086_v2 }
 0x199   :  { %1543 = vrot.lane.b32.xlu1 %v4123_v39, %s3938_s21  ;;  %v5092_v7 = vpop.permute.xlu0 %1317 }
 0x19a   :  { %8705 = vst [vmem:[#allocation142_spill] sm:$0xff] %v5092_v7 }
 0x19b   :  { %v5094_v32 = vpop.permute.xlu1 %1323  ;;  %1541 = vrot.lane.b32.xlu0 %v4136_v55, %s3938_s21  ;;  %v8787_v55 = vld [vmem:[#allocation80_spill] sm:$0xff] }
 0x19c   :  { %8706 = vst [vmem:[#allocation143_spill] sm:$0xff] %v5094_v32 }
 0x19d   :  { %1547 = vrot.lane.b32.xlu1 %v4147_v3, %s3938_s21  ;;  %v5100_v24 = vpop.permute.xlu0 %1321 }
 0x19e   :  { %8707 = vst [vmem:[#allocation144_spill] sm:$0xff] %v5100_v24 }
 0x19f   :  { %v5102_v61 = vpop.permute.xlu1 %1327  ;;  %1545 = vrot.lane.b32.xlu0 %v4161_v28, %s3938_s21 }
 0x1a0   :  { %8708 = vst [vmem:[#allocation145_spill] sm:$0xff] %v5102_v61 }
 0x1a1   :  { %1551 = vrot.lane.b32.xlu1 %v4172_v38, %s3938_s21  ;;  %v5108_v2 = vpop.permute.xlu0 %1325 }
 0x1a2   :  { %8709 = vst [vmem:[#allocation146_spill] sm:$0xff] %v5108_v2 }
 0x1a3   :  { %v5110_v7 = vpop.permute.xlu1 %1331  ;;  %1549 = vrot.lane.b32.xlu0 %v4184_v48, %s3938_s21 }
 0x1a4   :  { %8710 = vst [vmem:[#allocation147_spill] sm:$0xff] %v5110_v7 }
 0x1a5   :  { %1555 = vrot.lane.b32.xlu1 %v4197_v62, %s3938_s21  ;;  %v5116_v32 = vpop.permute.xlu0 %1329 }
 0x1a6   :  { %8711 = vst [vmem:[#allocation148_spill] sm:$0xff] %v5116_v32 }
 0x1a7   :  { %v5118_v24 = vpop.permute.xlu1 %1335  ;;  %1553 = vrot.lane.b32.xlu0 %v4210_v22, %s3938_s21 }
 0x1a8   :  { %8712 = vst [vmem:[#allocation149_spill] sm:$0xff] %v5118_v24 }
 0x1a9   :  { %1559 = vrot.lane.b32.xlu1 %v4221_v34, %s3938_s21  ;;  %v5124_v61 = vpop.permute.xlu0 %1333 }
 0x1aa   :  { %8713 = vst [vmem:[#allocation150_spill] sm:$0xff] %v5124_v61 }
 0x1ab   :  { %v5126_v2 = vpop.permute.xlu1 %1339  ;;  %1557 = vrot.lane.b32.xlu0 %v4235_v56, %s3938_s21 }
 0x1ac   :  { %8714 = vst [vmem:[#allocation151_spill] sm:$0xff] %v5126_v2 }
 0x1ad   :  { %1563 = vrot.lane.b32.xlu1 %v4246_v9, %s3938_s21  ;;  %v5132_v7 = vpop.permute.xlu0 %1337 }
 0x1ae   :  { %8715 = vst [vmem:[#allocation152_spill] sm:$0xff] %v5132_v7 }
 0x1af   :  { %v5134_v32 = vpop.permute.xlu1 %1343  ;;  %1561 = vrot.lane.b32.xlu0 %v4258_v21, %s3938_s21 }
 0x1b0   :  { %8716 = vst [vmem:[#allocation153_spill] sm:$0xff] %v5134_v32 }
 0x1b1   :  { %1567 = vrot.lane.b32.xlu1 %v4271_v37, %s3938_s21  ;;  %v5140_v24 = vpop.permute.xlu0 %1341 }
 0x1b2   :  { %8717 = vst [vmem:[#allocation154_spill] sm:$0xff] %v5140_v24 }
 0x1b3   :  { %v5142_v61 = vpop.permute.xlu1 %1347  ;;  %1565 = vrot.lane.b32.xlu0 %v4284_v60, %s3938_s21  ;;  %v8785_v60 = vld [vmem:[#allocation79_spill] sm:$0xff] }
 0x1b4   :  { %8718 = vst [vmem:[#allocation155_spill] sm:$0xff] %v5142_v61 }
 0x1b5   :  { %1571 = vrot.lane.b32.xlu1 %v4295_v12, %s3938_s21  ;;  %v5148_v2 = vpop.permute.xlu0 %1345 }
 0x1b6   :  { %8719 = vst [vmem:[#allocation156_spill] sm:$0xff] %v5148_v2  ;;  %v8731_v2 = vld [vmem:[#allocation29_spill] sm:$0xff] }
 0x1b7   :  { %v5150_v7 = vpop.permute.xlu1 %1351  ;;  %1569 = vrot.lane.b32.xlu0 %v4309_v42, %s3938_s21  ;;  %v8793_v42 = vld [vmem:[#allocation83_spill] sm:$0xff] }
 0x1b8   :  { %8720 = vst [vmem:[#allocation157_spill] sm:$0xff] %v5150_v7  ;;  %v8724_v7 = vld [vmem:[#allocation21_spill] sm:$0xff] }
 0x1b9   :  { %1575 = vrot.lane.b32.xlu1 %v4320_v52, %s3938_s21  ;;  %v5156_v32 = vpop.permute.xlu0 %1349  ;;  %v8782_v52 = vld [vmem:[#allocation38_spill] sm:$0xff] }
 0x1ba   :  { %8721 = vst [vmem:[#allocation158_spill] sm:$0xff] %v5156_v32  ;;  %v8734_v32 = vld [vmem:[#allocation35_spill] sm:$0xff] }
 0x1bb   :  { %v5158_v24 = vpop.permute.xlu1 %1355  ;;  %1573 = vrot.lane.b32.xlu0 %v4332_v8, %s3938_s21 }
 0x1bc   :  { %8722 = vst [vmem:[#allocation159_spill] sm:$0xff] %v5158_v24  ;;  %v8743_v24 = vld [vmem:[#allocation51_spill] sm:$0xff] }
 0x1bd   :  { %1579 = vrot.lane.b32.xlu1 %v4344_v26, %s3938_s21  ;;  %v5174_v19 = vpop.permute.xlu0 %1353 }
 0x1be   :  { %8728 = vst [vmem:[#allocation21_spill] sm:$0xff] %v5174_v19 }
 0x1bf   :  { %v5176_v1 = vpop.permute.xlu1 %1359  ;;  %1577 = vrot.lane.b32.xlu0 %v4357_v51, %s3938_s21 }
 0x1c0   :  { %8729 = vst [vmem:[#allocation25_spill] sm:$0xff] %v5176_v1  ;;  %v8744_v1 = vld [vmem:[#allocation52_spill] sm:$0xff] }
 0x1c1   :  { %1583 = vrot.lane.b32.xlu1 %v4368_v10, %s3938_s21  ;;  %v5212_v23 = vpop.permute.xlu0 %1357 }
 0x1c2   :  { %8740 = vst [vmem:[#allocation26_spill] sm:$0xff] %v5212_v23  ;;  %v5326_v23 = vmax.f32 %v8801_v47, %v8798_v13  ;;  %v8809_v13 = vld [vmem:[#allocation88_spill] sm:$0xff] }
 0x1c3   :  { %v5214_v14 = vpop.permute.xlu1 %1363  ;;  %1581 = vrot.lane.b32.xlu0 %v4382_v43, %s3938_s21  ;;  %v5350_v30 = vmax.f32 %v8810_v53, %v8809_v13  ;;  %v8827_v53 = vld [vmem:[#allocation93_spill] sm:$0xff] }
 0x1c4   :  { %8741 = vst [vmem:[#allocation27_spill] sm:$0xff] %v5214_v14  ;;  %v8786_v14 = vld [vmem:[#allocation42_spill] sm:$0xff] }
 0x1c5   :  { %1587 = vrot.lane.b32.xlu1 %v4393_v58, %s3938_s21  ;;  %v5250_v61 = vpop.permute.xlu0 %1361  ;;  %8811 = vst [vmem:[#allocation52_spill] sm:$0xff] %v5350_v30 }
 0x1c6   :  { %8757 = vst [vmem:[#allocation29_spill] sm:$0xff] %v5250_v61  ;;  %v8794_v61 = vld [vmem:[#allocation6_spill] sm:$0xff] }
 0x1c7   :  { %v5252_v19 = vpop.permute.xlu1 %1367  ;;  %1585 = vrot.lane.b32.xlu0 %v4405_v16, %s3938_s21  ;;  %v8775_v16 = vld [vmem:[#allocation75_spill] sm:$0xff]  ;;  %v8796_v12 = vmax.f32 %v8794_v61, %v8795_v4 }
 0x1c8   :  { %8758 = vst [vmem:[#allocation31_spill] sm:$0xff] %v5252_v19  ;;  %v8807_v4 = vld [vmem:[#allocation87_spill] sm:$0xff] }
 0x1c9   :  { %1591 = vrot.lane.b32.xlu1 %v4417_v36, %s3938_s21  ;;  %v8776_v36 = vld [vmem:[#allocation34_spill] sm:$0xff]  ;;  %v5288_v31 = vpop.permute.xlu0 %1365  ;;  %v5316_v19 = vmax.f32 %v8796_v12, %v8793_v42  ;;  %v8805_v42 = vmax.f32 %v4060_v33, %v8730_v0  ;;  %v8815_v0 = vmax.f32 %v4111_v27, %v8734_v32  ;;  %v8828_v27 = vld [vmem:[#allocation41_spill] sm:$0xff] }
 0x1ca   :  { %8779 = vst [vmem:[#allocation32_spill] sm:$0xff] %v5288_v31  ;;  %v8791_v31 = vld [vmem:[#allocation82_spill] sm:$0xff]  ;;  %v8829_v32 = vmax.f32 %v4147_v3, %v8828_v27  ;;  %v8840_v3 = vld [vmem:[#allocation97_spill] sm:$0xff] }
 0x1cb   :  { %v5290_v39 = vpop.permute.xlu1 %1371  ;;  %8797 = vst [vmem:[#allocation50_spill] sm:$0xff] %v5316_v19  ;;  %1589 = vrot.lane.b32.xlu0 %v4430_v11, %s3938_s21  ;;  %v8804_v12 = vld [vmem:[#allocation86_spill] sm:$0xff] }
 0x1cc   :  { %8780 = vst [vmem:[#allocation35_spill] sm:$0xff] %v5290_v39  ;;  %v8792_v39 = vmax.f32 %v4016_v63, %v8724_v7  ;;  %v8802_v63 = vld [vmem:[#allocation85_spill] sm:$0xff]  ;;  %v5338_v61 = vmax.f32 %v8805_v42, %v8804_v12  ;;  %v8814_v33 = vld [vmem:[#allocation90_spill] sm:$0xff] }
 0x1cd   :  { %1595 = vrot.lane.b32.xlu1 %v8619_v49, %s3938_s21  ;;  %v5370_v6 = vpop.permute.xlu0 %1369 }
 0x1ce   :  { %v5310_v20 = vmax.f32 %v8792_v39, %v8791_v31  ;;  %v8803_v39 = vmax.f32 %v4042_v17, %v8727_v41  ;;  %8806 = vst [vmem:[#allocation51_spill] sm:$0xff] %v5338_v61  ;;  %v8808_v31 = vmax.f32 %v4083_v57, %v8731_v2  ;;  %v8812_v17 = vld [vmem:[#allocation89_spill] sm:$0xff]  ;;  %v8813_v41 = vmax.f32 %v4099_v18, %v8733_v25  ;;  %v8816_v57 = vld [vmem:[#allocation91_spill] sm:$0xff]  ;;  %v8824_v18 = vld [vmem:[#allocation8_spill] sm:$0xff] }
 0x1cf   :  { %v8817_v2 = vld [vmem:[#allocation7_spill] sm:$0xff]  ;;  %8821 = vst [vmem:[#allocation75_spill] sm:$0xff] %v5370_v6  ;;  %v5372_v44 = vpop.permute.xlu1 %1375  ;;  %1593 = vrot.lane.b32.xlu0 %v8622_v40, %s3938_s21  ;;  %v8921_v6 = vld [vmem:[#allocation65_spill] sm:$0xff] }
 0x1d0   :  { %v5332_v7 = vmax.f32 %v8803_v39, %v8802_v63  ;;  %v5344_v19 = vmax.f32 %v8808_v31, %v8807_v4  ;;  %v5356_v47 = vmax.f32 %v8813_v41, %v8812_v17  ;;  %v5362_v63 = vmax.f32 %v8815_v0, %v8814_v33  ;;  %v8818_v39 = vld [vmem:[#allocation36_spill] sm:$0xff]  ;;  %8822 = vst [vmem:[#allocation34_spill] sm:$0xff] %v5372_v44  ;;  %v8825_v25 = vld [vmem:[#allocation39_spill] sm:$0xff]  ;;  %v8831_v41 = vld [vmem:[#allocation94_spill] sm:$0xff] }
 0x1d1   :  { %v8819_v12 = vmax.f32 %v8817_v2, %v8818_v39  ;;  %v8823_v4 = vld [vmem:[#allocation92_spill] sm:$0xff]  ;;  %v8826_v31 = vmax.f32 %v8824_v18, %v8825_v25  ;;  %v5384_v17 = vmax.f32 %v8829_v32, %v8827_v53  ;;  %v8832_v33 = vmax.f32 %v4161_v28, %v4644_v46  ;;  %v8835_v2 = vld [vmem:[#allocation43_spill] sm:$0xff]  ;;  %v8838_v18 = vld [vmem:[#allocation45_spill] sm:$0xff]  ;;  %1599 = vrot.lane.b32.xlu1 %v8623_v29, %s3938_s21 }
 0x1d2   :  { %v8836_v39 = vmax.f32 %v4172_v38, %v8835_v2  ;;  %v8839_v25 = vmax.f32 %v4184_v48, %v8838_v18  ;;  %v8841_v53 = vld [vmem:[#allocation46_spill] sm:$0xff]  ;;  %v8844_v46 = vld [vmem:[#allocation47_spill] sm:$0xff]  ;;  %v8848_v48 = vld [vmem:[#allocation48_spill] sm:$0xff] }
 0x1d3   :  { %v5368_v42 = vmax.f32 %v8819_v12, %v8816_v57  ;;  %v5378_v13 = vmax.f32 %v8826_v31, %v8823_v4  ;;  %8830 = vst [vmem:[#allocation37_spill] sm:$0xff] %v5384_v17  ;;  %v5390_v0 = vmax.f32 %v8832_v33, %v8831_v41  ;;  %v8834_v57 = vld [vmem:[#allocation95_spill] sm:$0xff]  ;;  %v8837_v4 = vld [vmem:[#allocation96_spill] sm:$0xff]  ;;  %v8842_v27 = vmax.f32 %v4197_v62, %v8841_v53  ;;  %v8843_v28 = vld [vmem:[#allocation98_spill] sm:$0xff] }
 0x1d4   :  { %v5396_v12 = vmax.f32 %v8836_v39, %v8834_v57  ;;  %v5402_v31 = vmax.f32 %v8839_v25, %v8837_v4  ;;  %v8845_v41 = vmax.f32 %v4210_v22, %v8844_v46  ;;  %v8847_v38 = vld [vmem:[#allocation99_spill] sm:$0xff]  ;;  %v8849_v57 = vmax.f32 %v4221_v34, %v8848_v48  ;;  %v8851_v62 = vld [vmem:[#allocation100_spill] sm:$0xff]  ;;  %v8852_v39 = vld [vmem:[#allocation49_spill] sm:$0xff] }
 0x1d5   :  { %8820 = vst [vmem:[#allocation58_spill] sm:$0xff] %v5368_v42  ;;  %8833 = vst [vmem:[#allocation38_spill] sm:$0xff] %v5390_v0  ;;  %v5408_v32 = vmax.f32 %v8842_v27, %v8840_v3  ;;  %v8853_v4 = vmax.f32 %v4235_v56, %v8852_v39  ;;  %v8854_v22 = vld [vmem:[#allocation101_spill] sm:$0xff]  ;;  %v8855_v25 = vmax.f32 %v4246_v9, %v8742_v5  ;;  %v8857_v53 = vld [vmem:[#allocation102_spill] sm:$0xff] }
 0x1d6   :  { %v5414_v33 = vmax.f32 %v8845_v41, %v8843_v28  ;;  %v5424_v2 = vmax.f32 %v8849_v57, %v8847_v38  ;;  %v8858_v27 = vmax.f32 %v4258_v21, %v8743_v24  ;;  %v8860_v34 = vld [vmem:[#allocation103_spill] sm:$0xff]  ;;  %v8861_v46 = vmax.f32 %v4271_v37, %v8744_v1  ;;  %v8863_v56 = vld [vmem:[#allocation104_spill] sm:$0xff]  ;;  %v8864_v38 = vld [vmem:[#allocation9_spill] sm:$0xff]  ;;  %v5468_v37 = vpop.permute.xlu0 %1373  ;;  %v5470_v1 = vpop.permute.xlu1 %1379 }
 0x1d7   :  { %v5430_v18 = vmax.f32 %v8853_v4, %v8851_v62  ;;  %v5436_v3 = vmax.f32 %v8855_v25, %v8854_v22  ;;  %v8865_v48 = vld [vmem:[#allocation53_spill] sm:$0xff]  ;;  %v8869_v9 = vld [vmem:[#allocation10_spill] sm:$0xff]  ;;  %v8874_v24 = vld [vmem:[#allocation11_spill] sm:$0xff]  ;;  %8878 = vst [vmem:[#allocation23_spill] sm:$0xff] %v5468_v37 }
 0x1d8   :  { %8846 = vst [vmem:[#allocation79_spill] sm:$0xff] %v5414_v33  ;;  %8850 = vst [vmem:[#allocation42_spill] sm:$0xff] %v5424_v2  ;;  %v5442_v28 = vmax.f32 %v8858_v27, %v8857_v53  ;;  %v5448_v41 = vmax.f32 %v8861_v46, %v8860_v34  ;;  %v8866_v57 = vmax.f32 %v8864_v38, %v8865_v48  ;;  %v8868_v5 = vld [vmem:[#allocation105_spill] sm:$0xff]  ;;  %v8870_v39 = vld [vmem:[#allocation54_spill] sm:$0xff] }
 0x1d9   :  { %8856 = vst [vmem:[#allocation80_spill] sm:$0xff] %v5436_v3  ;;  %v8871_v4 = vmax.f32 %v8869_v9, %v8870_v39  ;;  %v8873_v21 = vld [vmem:[#allocation106_spill] sm:$0xff]  ;;  %v8875_v25 = vld [vmem:[#allocation55_spill] sm:$0xff]  ;;  %8879 = vst [vmem:[#allocation84_spill] sm:$0xff] %v5470_v1 }
 0x1da   :  { %8859 = vst [vmem:[#allocation44_spill] sm:$0xff] %v5442_v28  ;;  %8862 = vst [vmem:[#allocation81_spill] sm:$0xff] %v5448_v41  ;;  %v5454_v62 = vmax.f32 %v8866_v57, %v8863_v56  ;;  %v8876_v53 = vmax.f32 %v8874_v24, %v8875_v25  ;;  %v5475_v34 = vld [vmem:[%s8316_s2 + $0x8] sm:$0xff]  ;;  %v8880_v46 = vld [vmem:[#allocation107_spill] sm:$0xff]  ;;  %v8890_v24 = vmax.f32 %v4344_v26, %v8750_v54 }
 0x1db   :  { %v5460_v22 = vmax.f32 %v8871_v4, %v8868_v5  ;;  %v8881_v56 = vld [vmem:[#allocation12_spill] sm:$0xff]  ;;  %v8886_v9 = vld [vmem:[#allocation57_spill] sm:$0xff]  ;;  %v8893_v1 = vld [vmem:[#allocation59_spill] sm:$0xff] }
 0x1dc   :  { %8867 = vst [vmem:[#allocation82_spill] sm:$0xff] %v5454_v62  ;;  %v5466_v27 = vmax.f32 %v8876_v53, %v8873_v21  ;;  %v8882_v38 = vld [vmem:[#allocation56_spill] sm:$0xff]  ;;  %v8887_v39 = vmax.f32 %v4332_v8, %v8886_v9  ;;  %v8889_v21 = vld [vmem:[#allocation109_spill] sm:$0xff]  ;;  %v8892_v53 = vld [vmem:[#allocation110_spill] sm:$0xff]  ;;  %v8894_v37 = vmax.f32 %v4357_v51, %v8893_v1 }
 0x1dd   :  { %8872 = vst [vmem:[#allocation83_spill] sm:$0xff] %v5460_v22  ;;  %v8883_v48 = vmax.f32 %v8881_v56, %v8882_v38  ;;  %v8885_v5 = vld [vmem:[#allocation108_spill] sm:$0xff]  ;;  %v5493_v25 = vmax.f32 %v8890_v24, %v8889_v21  ;;  %v8896_v8 = vld [vmem:[#allocation111_spill] sm:$0xff]  ;;  %v8901_v54 = vld [vmem:[#allocation61_spill] sm:$0xff] }
 0x1de   :  { %8877 = vst [vmem:[#allocation6_spill] sm:$0xff] %v5466_v27  ;;  %v5487_v4 = vmax.f32 %v8887_v39, %v8885_v5  ;;  %v5499_v44 = vmax.f32 %v8894_v37, %v8892_v53  ;;  %v8897_v56 = vld [vmem:[#allocation60_spill] sm:$0xff]  ;;  %v8902_v5 = vmax.f32 %v4382_v43, %v8901_v54  ;;  %v8904_v51 = vld [vmem:[#allocation113_spill] sm:$0xff]  ;;  %v8905_v37 = vld [vmem:[#allocation62_spill] sm:$0xff] }
 0x1df   :  { %v5481_v57 = vmax.f32 %v8883_v48, %v8880_v46  ;;  %8891 = vst [vmem:[#allocation85_spill] sm:$0xff] %v5493_v25  ;;  %v5504_v46 = vld [vmem:[%s8316_s2 + $0x48] sm:$0xff]  ;;  %v8898_v38 = vmax.f32 %v4368_v10, %v8897_v56  ;;  %v8900_v26 = vld [vmem:[#allocation112_spill] sm:$0xff]  ;;  %v8906_v1 = vmax.f32 %v4393_v58, %v8905_v37  ;;  %v8909_v24 = vld [vmem:[#allocation19_spill] sm:$0xff] }
 0x1e0   :  { %8888 = vst [vmem:[#allocation20_spill] sm:$0xff] %v5487_v4  ;;  %8895 = vst [vmem:[#allocation86_spill] sm:$0xff] %v5499_v44  ;;  %v5516_v9 = vmax.f32 %v8902_v5, %v8900_v26  ;;  %v8908_v21 = vld [vmem:[#allocation18_spill] sm:$0xff]  ;;  %1603 = vrot.lane.b32.xlu1 %v8909_v24, %s3938_s21  ;;  %v5531_v10 = vld [vmem:[%s8316_s2] sm:$0xff] }
 0x1e1   :  { %8884 = vst [vmem:[#allocation5_spill] sm:$0xff] %v5481_v57  ;;  %v5510_v48 = vmax.f32 %v8898_v38, %v8896_v8  ;;  %v5522_v39 = vmax.f32 %v8906_v1, %v8904_v51  ;;  %1597 = vrot.lane.b32.xlu0 %v8908_v21, %s3938_s21  ;;  %v5536_v43 = vld [vmem:[%s8316_s2 + $0xc8] sm:$0xff]  ;;  %v8912_v8 = vld [vmem:[#allocation63_spill] sm:$0xff]  ;;  %v8917_v5 = vld [vmem:[#allocation64_spill] sm:$0xff] }
 0x1e2   :  { %8903 = vst [vmem:[#allocation88_spill] sm:$0xff] %v5516_v9  ;;  %v8910_v53 = vld [vmem:[#allocation114_spill] sm:$0xff]  ;;  %v8911_v58 = vld [vmem:[#allocation13_spill] sm:$0xff]  ;;  %v8915_v26 = vld [vmem:[#allocation115_spill] sm:$0xff]  ;;  %v8984_v44 = vrot.slane %v5536_v43, 6 }
 0x1e3   :  { %8899 = vst [vmem:[#allocation87_spill] sm:$0xff] %v5510_v48  ;;  %8907 = vst [vmem:[#allocation89_spill] sm:$0xff] %v5522_v39  ;;  %v8913_v56 = vmax.f32 %v8911_v58, %v8912_v8  ;;  %v8916_v54 = vld [vmem:[#allocation14_spill] sm:$0xff]  ;;  %v8920_v1 = vld [vmem:[#allocation116_spill] sm:$0xff]  ;;  %v8922_v39 = vmax.f32 %v4430_v11, %v8921_v6  ;;  %v5574_v6 = vpop.permute.xlu0 %1377 }
 0x1e4   :  { %v8918_v51 = vmax.f32 %v8916_v54, %v8917_v5  ;;  %v5559_v48 = vld [vmem:[%s8316_s2 + $0x40] sm:$0xff]  ;;  %v8925_v8 = vld [vmem:[#allocation66_spill] sm:$0xff]  ;;  %v8929_v5 = vld [vmem:[#allocation67_spill] sm:$0xff]  ;;  %8932 = vst [vmem:[#allocation8_spill] sm:$0xff] %v5574_v6  ;;  %1611 = vrot.lane.b32.xlu1 %v4549_v15, %s3938_s21 }
 0x1e5   :  { %v5542_v38 = vmax.f32 %v8913_v56, %v8910_v53  ;;  %v5554_v9 = vmax.f32 %v8922_v39, %v8920_v1  ;;  %v8924_v58 = vld [vmem:[#allocation117_spill] sm:$0xff]  ;;  %v8926_v56 = vmax.f32 %v8619_v49, %v8925_v8  ;;  %v5576_v39 = vpop.permute.xlu1 %1383  ;;  %v2687_v49 = vrot.slane %v5504_v46, 6  ;;  %v8936_v8 = vld [vmem:[#allocation68_spill] sm:$0xff]  ;;  %v5810_v57 = vld [vmem:[%s8316_s2 + $0x150] sm:$0xff] }
 0x1e6   :  { %v5548_v37 = vmax.f32 %v8918_v51, %v8915_v26  ;;  %v8928_v26 = vld [vmem:[#allocation118_spill] sm:$0xff]  ;;  %v8930_v51 = vmax.f32 %v8622_v40, %v8929_v5  ;;  %8933 = vst [vmem:[#allocation39_spill] sm:$0xff] %v5576_v39  ;;  %v5581_v1 = vld [vmem:[%s8316_s2 + $0xc0] sm:$0xff]  ;;  %v8935_v40 = vld [vmem:[#allocation119_spill] sm:$0xff] }
 0x1e7   :  { %8914 = vst [vmem:[#allocation90_spill] sm:$0xff] %v5542_v38  ;;  %8923 = vst [vmem:[#allocation7_spill] sm:$0xff] %v5554_v9  ;;  %v5566_v54 = vmax.f32 %v8926_v56, %v8924_v58  ;;  %v5587_v58 = vld [vmem:[%s8316_s2 + $0x108] sm:$0xff]  ;;  %v8937_v56 = vmax.f32 %v8623_v29, %v8936_v8  ;;  %v8939_v5 = vld [vmem:[#allocation120_spill] sm:$0xff]  ;;  %v8985_v25 = vrot.slane %v5581_v1, 6 }
 0x1e8   :  { %8919 = vst [vmem:[#allocation91_spill] sm:$0xff] %v5548_v37  ;;  %v5572_v11 = vmax.f32 %v8930_v51, %v8928_v26  ;;  %8934 = vst [vmem:[#allocation93_spill] sm:$0xff] %v5581_v1  ;;  %v8940_v51 = vld [vmem:[#allocation15_spill] sm:$0xff]  ;;  %v5605_v46 = vld [vmem:[%s8316_s2 + $0x100] sm:$0xff] }
 0x1e9   :  { %8927 = vst [vmem:[#allocation36_spill] sm:$0xff] %v5566_v54  ;;  %v5593_v26 = vmax.f32 %v8937_v56, %v8935_v40  ;;  %v8941_v53 = vmax.f32 %v8908_v21, %v8940_v51  ;;  %8943 = vst [vmem:[#allocation95_spill] sm:$0xff] %v5605_v46  ;;  %v5611_v29 = vld [vmem:[%s8316_s2 + $0x50] sm:$0xff]  ;;  %v8944_v40 = vld [vmem:[#allocation121_spill] sm:$0xff]  ;;  %v5710_v4 = vsel %vm1785_vm12, %v8985_v25, %v8984_v44 }
 0x1ea   :  { %8931 = vst [vmem:[#allocation92_spill] sm:$0xff] %v5572_v11  ;;  %v8945_v8 = vld [vmem:[#allocation69_spill] sm:$0xff]  ;;  %v8948_v56 = vld [vmem:[#allocation122_spill] sm:$0xff]  ;;  %v8950_v51 = vld [vmem:[#allocation16_spill] sm:$0xff]  ;;  %v8994_v25 = vmax.f32 %v8776_v36, %v8775_v16 }
 0x1eb   :  { %8938 = vst [vmem:[#allocation41_spill] sm:$0xff] %v5593_v26  ;;  %v5599_v39 = vmax.f32 %v8941_v53, %v8939_v5  ;;  %v8946_v21 = vmax.f32 %v8909_v24, %v8945_v8  ;;  %v8949_v5 = vld [vmem:[#allocation22_spill] sm:$0xff]  ;;  %v8953_v26 = vld [vmem:[#allocation123_spill] sm:$0xff]  ;;  %v8954_v54 = vld [vmem:[#allocation24_spill] sm:$0xff] }
 0x1ec   :  { %v8951_v11 = vmax.f32 %v8949_v5, %v8950_v51  ;;  %v8955_v6 = vld [vmem:[#allocation17_spill] sm:$0xff]  ;;  %1601 = vrot.lane.b32.xlu0 %v8949_v5, %s3938_s21  ;;  %v8959_v8 = vld [vmem:[#allocation70_spill] sm:$0xff]  ;;  %v2732_v51 = vrot.slane %v5587_v58, 6  ;;  %v5674_v5 = vpop.permute.xlu1 %1387  ;;  %v8972_v58 = vrot.slane %v5559_v48, 6  ;;  %8986 = vst [vmem:[#allocation102_spill] sm:$0xff] %v5710_v4  ;;  %v8997_v16 = vld [vmem:[#allocation76_spill] sm:$0xff] }
 0x1ed   :  { %8942 = vst [vmem:[#allocation94_spill] sm:$0xff] %v5599_v39  ;;  %v5617_v53 = vmax.f32 %v8946_v21, %v8944_v40  ;;  %v8956_v9 = vmax.f32 %v8954_v54, %v8955_v6  ;;  %v5639_v40 = vld [vmem:[%s8316_s2 + $0x10] sm:$0xff]  ;;  %v8960_v21 = vmax.f32 %v4539_v50, %v8959_v8  ;;  %v5659_v24 = vld [vmem:[%s8316_s2 + $0x80] sm:$0xff]  ;;  %8971 = vst [vmem:[#allocation48_spill] sm:$0xff] %v5674_v5 }
 0x1ee   :  { %v5623_v39 = vmax.f32 %v8951_v11, %v8948_v56  ;;  %v8958_v11 = vld [vmem:[#allocation124_spill] sm:$0xff]  ;;  %8965 = vst [vmem:[#allocation98_spill] sm:$0xff] %v5659_v24  ;;  %v8966_v8 = vld [vmem:[#allocation125_spill] sm:$0xff]  ;;  %v5686_v38 = vld [vmem:[%s8316_s2 + $0x110] sm:$0xff] }
 0x1ef   :  { %8947 = vst [vmem:[#allocation43_spill] sm:$0xff] %v5617_v53  ;;  %v5629_v37 = vmax.f32 %v8956_v9, %v8953_v26  ;;  %v5645_v6 = vmax.f32 %v8960_v21, %v8958_v11  ;;  %v8962_v9 = vrot.slane %v5475_v34, 6  ;;  %v8963_v26 = vrot.slane %v5531_v10, 6  ;;  %v5664_v11 = vld [vmem:[%s8316_s2 + $0x88] sm:$0xff]  ;;  %v8967_v21 = vld [vmem:[#allocation71_spill] sm:$0xff] }
 0x1f0   :  { %8952 = vst [vmem:[#allocation96_spill] sm:$0xff] %v5623_v39  ;;  %v2689_v53 = vrot.slane %v5611_v29, 6  ;;  %v8979_v5 = vld [vmem:[#allocation127_spill] sm:$0xff]  ;;  %v8980_v39 = vld [vmem:[#allocation30_spill] sm:$0xff]  ;;  %v8993_v44 = vld [vmem:[#allocation129_spill] sm:$0xff]  ;;  %1605 = vrot.lane.b32.xlu0 %v4539_v50, %s3938_s21  ;;  %v2702_v4 = vrot.slane %v5664_v11, 6 }
 0x1f1   :  { %8957 = vst [vmem:[#allocation45_spill] sm:$0xff] %v5629_v37  ;;  %8961 = vst [vmem:[#allocation97_spill] sm:$0xff] %v5645_v6  ;;  %v5652_v56 = vsel %vm1785_vm12, %v8963_v26, %v8962_v9  ;;  %v8968_v6 = vmax.f32 %v4549_v15, %v8967_v21  ;;  %v5672_v26 = vpop.permute.xlu0 %1381  ;;  %v5679_v37 = vsel %vm1785_vm12, %v8972_v58, %v2687_v49  ;;  %v5691_v15 = vld [vmem:[%s8316_s2 + $0xd0] sm:$0xff]  ;;  %v8976_v21 = vld [vmem:[#allocation72_spill] sm:$0xff]  ;;  %1615 = vrot.lane.b32.xlu1 %v8980_v39, %s3938_s21 }
 0x1f2   :  { %8964 = vst [vmem:[#allocation46_spill] sm:$0xff] %v5652_v56  ;;  %8970 = vst [vmem:[#allocation99_spill] sm:$0xff] %v5672_v26  ;;  %v8981_v26 = vld [vmem:[#allocation73_spill] sm:$0xff]  ;;  %v2674_v56 = vrot.slane %v5639_v40, 6  ;;  %v5733_v40 = vmax.f32 %v8994_v25, %v8993_v44  ;;  %v9000_v50 = vrot.slane %v5605_v46, 6  ;;  %v2719_v11 = vrot.slane %v5691_v15, 6 }
 0x1f3   :  { %v5670_v9 = vmax.f32 %v8968_v6, %v8966_v8  ;;  %8973 = vst [vmem:[#allocation100_spill] sm:$0xff] %v5679_v37  ;;  %v8974_v6 = vld [vmem:[#allocation126_spill] sm:$0xff]  ;;  %v8975_v8 = vld [vmem:[#allocation28_spill] sm:$0xff]  ;;  %v8982_v29 = vmax.f32 %v8980_v39, %v8981_v26  ;;  %v9044_v61 = vld [vmem:[#allocation143_spill] sm:$0xff] }
 0x1f4   :  { %v5721_v26 = vld [vmem:[%s8316_s2 + $0x148] sm:$0xff]  ;;  %8995 = vst [vmem:[#allocation9_spill] sm:$0xff] %v5733_v40  ;;  %v5755_v25 = vsel %vm1785_vm12, %v9000_v50, %v2732_v51  ;;  %v9002_v40 = vld [vmem:[#allocation131_spill] sm:$0xff]  ;;  %v5775_v50 = vsel %vm1785_vm12, %v2687_v49, %v2689_v53 }
 0x1f5   :  { %8969 = vst [vmem:[#allocation47_spill] sm:$0xff] %v5670_v9  ;;  %v8977_v9 = vmax.f32 %v8975_v8, %v8976_v21  ;;  %v5703_v37 = vmax.f32 %v8982_v29, %v8979_v5  ;;  %v8988_v5 = vld [vmem:[#allocation128_spill] sm:$0xff]  ;;  %v8990_v21 = vld [vmem:[#allocation74_spill] sm:$0xff]  ;;  %9001 = vst [vmem:[#allocation105_spill] sm:$0xff] %v5755_v25  ;;  %v2747_v39 = vrot.slane %v5721_v26, 6  ;;  %v9015_v26 = vmax.f32 %v8786_v14, %v8785_v60 }
 0x1f6   :  { %9008 = vst [vmem:[#allocation11_spill] sm:$0xff] %v5775_v50  ;;  %v5782_v25 = vld [vmem:[%s8316_s2 + $0xd8] sm:$0xff]  ;;  %v9014_v50 = vld [vmem:[#allocation133_spill] sm:$0xff]  ;;  %1619 = vrot.lane.b32.xlu1 %v8776_v36, %s3938_s21  ;;  %v9063_v0 = vld [vmem:[#allocation150_spill] sm:$0xff] }
 0x1f7   :  { %v5697_v58 = vmax.f32 %v8977_v9, %v8974_v6  ;;  %8983 = vst [vmem:[#allocation101_spill] sm:$0xff] %v5703_v37  ;;  %v5716_v9 = vld [vmem:[%s8316_s2 + $0x140] sm:$0xff]  ;;  %v5799_v15 = vmax.f32 %v9015_v26, %v9014_v50  ;;  %v9022_v60 = vld [vmem:[#allocation135_spill] sm:$0xff]  ;;  %v9025_v26 = vrot.slane %v5686_v38, 6  ;;  %v9103_v22 = vld [vmem:[#allocation26_spill] sm:$0xff] }
 0x1f8   :  { %8987 = vst [vmem:[#allocation103_spill] sm:$0xff] %v5716_v9  ;;  %v8989_v6 = vld [vmem:[#allocation33_spill] sm:$0xff]  ;;  %v9064_v17 = vld [vmem:[#allocation151_spill] sm:$0xff] }
 0x1f9   :  { %8978 = vst [vmem:[#allocation49_spill] sm:$0xff] %v5697_v58  ;;  %v8991_v29 = vmax.f32 %v8989_v6, %v8990_v21  ;;  %v8996_v21 = vld [vmem:[#allocation130_spill] sm:$0xff]  ;;  %v5762_v58 = vld [vmem:[%s8316_s2 + $0x18] sm:$0xff]  ;;  %9016 = vst [vmem:[#allocation107_spill] sm:$0xff] %v5799_v15  ;;  %1613 = vrot.lane.b32.xlu0 %v8989_v6, %s3938_s21  ;;  %v9027_v6 = vrot.slane %v5536_v43, 6 }
 0x1fa   :  { %v5855_v50 = vld [vmem:[%s8316_s2 + $0x20] sm:$0xff]  ;;  %v9035_v43 = vld [vmem:[#allocation138_spill] sm:$0xff]  ;;  %1607 = vrot.lane.b32.xlu1 %v8954_v54, %s3938_s21 }
 0x1fb   :  { %v5727_v37 = vmax.f32 %v8991_v29, %v8988_v5  ;;  %v5744_v5 = vld [vmem:[%s8316_s2 + $0x58] sm:$0xff]  ;;  %v8998_v29 = vmax.f32 %v8778_v59, %v8997_v16  ;;  %v5843_v36 = vsel %vm1785_vm12, %v9027_v6, %v2719_v11  ;;  %v9031_v6 = vld [vmem:[#allocation50_spill] sm:$0xff]  ;;  %v9098_v62 = vld [vmem:[#allocation93_spill] sm:$0xff] }
 0x1fc   :  { %v2691_v1 = vrot.slane %v5744_v5, 6  ;;  %9028 = vst [vmem:[#allocation109_spill] sm:$0xff] %v5843_v36 }
 0x1fd   :  { %8992 = vst [vmem:[#allocation104_spill] sm:$0xff] %v5727_v37  ;;  %v5750_v44 = vmax.f32 %v8998_v29, %v8996_v21  ;;  %v9003_v37 = vld [vmem:[#allocation77_spill] sm:$0xff]  ;;  %v5770_v29 = vpop.permute.xlu0 %1385  ;;  %1617 = vrot.lane.b32.xlu0 %v8778_v59, %s3938_s21 }
 0x1fe   :  { %v9004_v16 = vmax.f32 %v8782_v52, %v9003_v37  ;;  %9006 = vst [vmem:[#allocation54_spill] sm:$0xff] %v5770_v29  ;;  %v5787_v37 = vld [vmem:[%s8316_s2 + $0x90] sm:$0xff]  ;;  %v9017_v29 = vrot.slane %v5475_v34, 6  ;;  %v9023_v34 = vrot.slane %v5659_v24, 6  ;;  %v9040_v59 = vld [vmem:[#allocation141_spill] sm:$0xff]  ;;  %1625 = vrot.lane.b32.xlu1 %v8788_v45, %s3938_s21 }
 0x1ff   :  { %8999 = vst [vmem:[#allocation53_spill] sm:$0xff] %v5750_v44  ;;  %v5772_v44 = vpop.permute.xlu1 %1391 }
 0x200   :  { %v5768_v21 = vmax.f32 %v9004_v16, %v9002_v40  ;;  %9007 = vst [vmem:[#allocation106_spill] sm:$0xff] %v5772_v44  ;;  %v9009_v40 = vld [vmem:[#allocation132_spill] sm:$0xff]  ;;  %v5804_v46 = vsel %vm1785_vm12, %v9017_v29, %v2674_v56  ;;  %v5827_v5 = vsel %vm1785_vm12, %v9023_v34, %v2702_v4  ;;  %v2676_v29 = vrot.slane %v5762_v58, 6 }
 0x201   :  { %v9010_v16 = vld [vmem:[#allocation40_spill] sm:$0xff]  ;;  %9018 = vst [vmem:[#allocation12_spill] sm:$0xff] %v5804_v46  ;;  %9024 = vst [vmem:[#allocation108_spill] sm:$0xff] %v5827_v5  ;;  %v2704_v34 = vrot.slane %v5787_v37, 6  ;;  %v9033_v37 = vrot.slane %v5716_v9, 6  ;;  %v2749_v5 = vrot.slane %v5810_v57, 6 }
 0x202   :  { %9005 = vst [vmem:[#allocation10_spill] sm:$0xff] %v5768_v21  ;;  %v9011_v21 = vld [vmem:[#allocation78_spill] sm:$0xff]  ;;  %v5850_v58 = vld [vmem:[%s8316_s2 + $0x60] sm:$0xff]  ;;  %v5887_v57 = vld [vmem:[%s8316_s2 + $0x98] sm:$0xff]  ;;  %v5896_v15 = vsel %vm1785_vm12, %v2674_v56, %v2676_v29  ;;  %1621 = vrot.lane.b32.xlu0 %v9010_v16, %s3938_s21 }
 0x203   :  { %v9012_v44 = vmax.f32 %v9010_v16, %v9011_v21  ;;  %v9020_v21 = vmax.f32 %v8788_v45, %v8787_v55  ;;  %v5833_v55 = vld [vmem:[%s8316_s2 + $0x118] sm:$0xff]  ;;  %v5868_v24 = vsel %vm1785_vm12, %v9033_v37, %v2747_v39  ;;  %v5874_v46 = vld [vmem:[%s8316_s2 + $0xe0] sm:$0xff]  ;;  %9039 = vst [vmem:[#allocation60_spill] sm:$0xff] %v5896_v15  ;;  %v5922_v15 = vld [vmem:[%s8316_s2 + $0x68] sm:$0xff] }
 0x204   :  { %9034 = vst [vmem:[#allocation59_spill] sm:$0xff] %v5868_v24  ;;  %v2736_v9 = vrot.slane %v5833_v55, 6  ;;  %v2678_v55 = vrot.slane %v5855_v50, 6  ;;  %v5908_v24 = vld [vmem:[%s8316_s2 + $0x120] sm:$0xff]  ;;  %v2723_v50 = vrot.slane %v5874_v46, 6  ;;  %v2706_v46 = vrot.slane %v5887_v57, 6 }
 0x205   :  { %v5793_v49 = vmax.f32 %v9012_v44, %v9009_v40  ;;  %v9019_v44 = vld [vmem:[#allocation134_spill] sm:$0xff] }
 0x206   :  { %v5816_v40 = vmax.f32 %v9020_v21, %v9019_v44  ;;  %v5838_v44 = vsel %vm1785_vm12, %v2732_v51, %v9025_v26  ;;  %v2721_v21 = vrot.slane %v5782_v25, 6  ;;  %v9029_v51 = vld [vmem:[#allocation136_spill] sm:$0xff]  ;;  %v9030_v26 = vld [vmem:[#allocation137_spill] sm:$0xff]  ;;  %v5863_v25 = vpop.permute.xlu1 %1395  ;;  %v5998_v37 = vsel %vm1785_vm12, %v2704_v34, %v2706_v46  ;;  %1623 = vrot.lane.b32.xlu0 %v8782_v52, %s3938_s21 }
 0x207   :  { %9013 = vst [vmem:[#allocation55_spill] sm:$0xff] %v5793_v49  ;;  %9026 = vst [vmem:[#allocation57_spill] sm:$0xff] %v5838_v44  ;;  %v5861_v44 = vpop.permute.xlu0 %1389  ;;  %v5881_v49 = vsel %vm1785_vm12, %v2689_v53, %v2691_v1  ;;  %v2693_v53 = vrot.slane %v5850_v58, 6  ;;  %v5916_v58 = vsel %vm1785_vm12, %v2702_v4, %v2704_v34  ;;  %v5933_v4 = vsel %vm1785_vm12, %v2747_v39, %v2749_v5  ;;  %v5953_v57 = vld [vmem:[%s8316_s2 + $0xe8] sm:$0xff] }
 0x208   :  { %9021 = vst [vmem:[#allocation56_spill] sm:$0xff] %v5816_v40  ;;  %9032 = vst [vmem:[#allocation110_spill] sm:$0xff] %v5861_v44  ;;  %v5903_v40 = vld [vmem:[%s8316_s2 + $0x158] sm:$0xff]  ;;  %v5913_v56 = vsel %vm1785_vm12, %v2719_v11, %v2721_v21  ;;  %v2738_v39 = vrot.slane %v5908_v24, 6  ;;  %v5983_v45 = vsel %vm1785_vm12, %v2721_v21, %v2723_v50  ;;  %v2725_v21 = vrot.slane %v5953_v57, 6 }
 0x209   :  { %9037 = vst [vmem:[#allocation111_spill] sm:$0xff] %v5881_v49  ;;  %9041 = vst [vmem:[#allocation112_spill] sm:$0xff] %v5913_v56  ;;  %v9048_v49 = vrot.slane %v5686_v38, 6  ;;  %v2751_v30 = vrot.slane %v5903_v40, 6  ;;  %v5967_v24 = vsel %vm1785_vm12, %v2691_v1, %v2693_v53  ;;  %v2695_v40 = vrot.slane %v5922_v15, 6  ;;  %v5989_v15 = vld [vmem:[%s8316_s2 + $0x128] sm:$0xff] }
 0x20a   :  { %9042 = vst [vmem:[#allocation61_spill] sm:$0xff] %v5916_v58  ;;  %v5930_v11 = vpop.permute.xlu1 %1399  ;;  %9046 = vst [vmem:[#allocation62_spill] sm:$0xff] %v5933_v4  ;;  %v5939_v58 = vld [vmem:[%s8316_s2 + $0x28] sm:$0xff]  ;;  %v5958_v4 = vld [vmem:[%s8316_s2 + $0xa0] sm:$0xff]  ;;  %v6018_v57 = vsel %vm1785_vm12, %v2736_v9, %v2738_v39  ;;  %1609 = vrot.lane.b32.xlu0 %v8975_v8, %s3938_s21  ;;  %v9080_v38 = vrot.slane %v5559_v48, 6 }
 0x20b   :  { %v5928_v54 = vpop.permute.xlu0 %1393  ;;  %v5946_v36 = vsel %vm1785_vm12, %v9048_v49, %v2736_v9  ;;  %9051 = vst [vmem:[#allocation19_spill] sm:$0xff] %v5967_v24  ;;  %v5970_v49 = vsel %vm1785_vm12, %v2676_v29, %v2678_v55  ;;  %9055 = vst [vmem:[#allocation13_spill] sm:$0xff] %v5983_v45  ;;  %v2680_v1 = vrot.slane %v5939_v58, 6  ;;  %v2708_v42 = vrot.slane %v5958_v4, 6  ;;  %v6005_v58 = vld [vmem:[%s8316_s2 + $0x70] sm:$0xff]  ;;  %v9060_v45 = vld [vmem:[#allocation149_spill] sm:$0xff] }
 0x20c   :  { %9045 = vst [vmem:[#allocation113_spill] sm:$0xff] %v5928_v54  ;;  %9049 = vst [vmem:[#allocation18_spill] sm:$0xff] %v5946_v36  ;;  %v5976_v36 = vld [vmem:[%s8316_s2 + $0x160] sm:$0xff]  ;;  %v6015_v34 = vsel %vm1785_vm12, %v2749_v5, %v2751_v30  ;;  %v9065_v9 = vrot.slane %v5531_v10, 6  ;;  %v6036_v5 = vsel %vm1785_vm12, %v2693_v53, %v2695_v40  ;;  %v6042_v29 = vld [vmem:[%s8316_s2 + $0xa8] sm:$0xff]  ;;  %v2697_v52 = vrot.slane %v6005_v58, 6 }
 0x20d   :  { %9052 = vst [vmem:[#allocation114_spill] sm:$0xff] %v5970_v49  ;;  %9059 = vst [vmem:[#allocation14_spill] sm:$0xff] %v5998_v37  ;;  %v6010_v49 = vld [vmem:[%s8316_s2 + $0x30] sm:$0xff]  ;;  %v2753_v4 = vrot.slane %v5976_v36, 6  ;;  %v2740_v36 = vrot.slane %v5989_v15, 6  ;;  %v6054_v53 = vld [vmem:[%s8316_s2 + $0x168] sm:$0xff]  ;;  %v6068_v58 = vsel %vm1785_vm12, %v2723_v50, %v2725_v21 }
 0x20e   :  { %v5995_v56 = vpop.permute.xlu1 %1403  ;;  %9061 = vst [vmem:[#allocation64_spill] sm:$0xff] %v6015_v34  ;;  %9062 = vst [vmem:[#allocation116_spill] sm:$0xff] %v6018_v57  ;;  %v6024_v37 = vld [vmem:[%s8316_s2 + $0xf0] sm:$0xff]  ;;  %2761 = vrot.lane.b32.xlu1 %v9065_v9, %s3935_s17  ;;  %v6047_v57 = vsel %vm1785_vm12, %v2678_v55, %v2680_v1  ;;  %v2682_v10 = vrot.slane %v6010_v49, 6  ;;  %v6071_v49 = vsel %vm1785_vm12, %v2706_v46, %v2708_v42  ;;  %v6077_v34 = vld [vmem:[%s8316_s2 + $0x78] sm:$0xff]  ;;  %v2710_v50 = vrot.slane %v6042_v29, 6 }
 0x20f   :  { %v5993_v24 = vpop.permute.xlu0 %1397  ;;  %9058 = vst [vmem:[#allocation115_spill] sm:$0xff] %v5995_v56  ;;  %9066 = vst [vmem:[#allocation65_spill] sm:$0xff] %v6036_v5  ;;  %v6059_v15 = vld [vmem:[%s8316_s2 + $0x130] sm:$0xff]  ;;  %v6084_v2 = vsel %vm1785_vm12, %v2751_v30, %v2753_v4  ;;  %v6100_v30 = vsel %vm1785_vm12, %v2738_v39, %v2740_v36  ;;  %v2755_v29 = vrot.slane %v6054_v53, 6  ;;  %v6139_v53 = vld [vmem:[%s8316_s2 + $0x138] sm:$0xff] }
 0x210   :  { %9057 = vst [vmem:[#allocation63_spill] sm:$0xff] %v5993_v24  ;;  %9068 = vst [vmem:[#allocation117_spill] sm:$0xff] %v6047_v57  ;;  %v2727_v57 = vrot.slane %v6024_v37, 6  ;;  %v6090_v37 = vld [vmem:[%s8316_s2 + $0x38] sm:$0xff]  ;;  %v2742_v9 = vrot.slane %v6059_v15, 6  ;;  %v145_v8 = vld [vmem:[%s8316_s2 + $0xb0] sm:$0xff]  ;;  %v6118_v39 = vsel %vm1785_vm12, %v2680_v1, %v2682_v10 }
 0x211   :  { %9072 = vst [vmem:[#allocation67_spill] sm:$0xff] %v6068_v58  ;;  %9073 = vst [vmem:[#allocation119_spill] sm:$0xff] %v6071_v49  ;;  %v169_v15 = vld [vmem:[%s8316_s2 + $0x170] sm:$0xff]  ;;  %v2712_v46 = vrot.slane %v145_v8, 6  ;;  %v9099_v58 = vrot.slane %v9098_v62, 6  ;;  %v9106_v1 = vld [vmem:[#allocation85_spill] sm:$0xff] }
 0x212   :  { %v6065_v55 = vpop.permute.xlu1 %1407  ;;  %9074 = vst [vmem:[#allocation68_spill] sm:$0xff] %v6077_v34  ;;  %9077 = vst [vmem:[#allocation120_spill] sm:$0xff] %v6084_v2  ;;  %2779 = vrot.lane.b32.xlu1 %v9080_v38, %s3935_s17  ;;  %v6107_v2 = vld [vmem:[%s8316_s2 + $0xf8] sm:$0xff]  ;;  %v6115_v38 = vsel %vm1785_vm12, %v2695_v40, %v2697_v52  ;;  %v6133_v40 = vsel %vm1785_vm12, %v2725_v21, %v2727_v57  ;;  %v6163_v8 = vsel %vm1785_vm12, %v2740_v36, %v2742_v9 }
 0x213   :  { %v6063_v5 = vpop.permute.xlu0 %1401  ;;  %9071 = vst [vmem:[#allocation118_spill] sm:$0xff] %v6065_v55  ;;  %9078 = vst [vmem:[#allocation15_spill] sm:$0xff] %v6090_v37  ;;  %v6150_v21 = vld [vmem:[%s8316_s2 + $0xb8] sm:$0xff]  ;;  %v2757_v28 = vrot.slane %v169_v15, 6  ;;  %v9107_v62 = vrot.slane %v6077_v34, 6  ;;  %v9110_v15 = vld [vmem:[#allocation86_spill] sm:$0xff]  ;;  %v6203_v41 = vsel %vm1785_vm12, %v2710_v50, %v2712_v46 }
 0x214   :  { %9070 = vst [vmem:[#allocation66_spill] sm:$0xff] %v6063_v5  ;;  %9081 = vst [vmem:[#allocation121_spill] sm:$0xff] %v6100_v30  ;;  %v9097_v30 = vld [vmem:[#allocation46_spill] sm:$0xff]  ;;  %v9114_v27 = vrot.slane %v6090_v37, 6 }
 0x215   :  { %9082 = vst [vmem:[#allocation69_spill] sm:$0xff] %v6107_v2  ;;  %9084 = vst [vmem:[#allocation122_spill] sm:$0xff] %v6115_v38  ;;  %v6144_v38 = vsel %vm1785_vm12, %v2708_v42, %v2710_v50  ;;  %2763 = vrot.lane.b32.xlu0 %v9097_v30, %s3935_s17  ;;  %v6160_v42 = vsel %vm1785_vm12, %v2753_v4, %v2755_v29  ;;  %v9105_v30 = vld [vmem:[#allocation27_spill] sm:$0xff]  ;;  %v6177_v4 = vsel %vm1785_vm12, %v2697_v52, %v9107_v62  ;;  %v9130_v37 = vld [vmem:[#allocation34_spill] sm:$0xff] }
 0x216   :  { %9085 = vst [vmem:[#allocation22_spill] sm:$0xff] %v6118_v39  ;;  %v6130_v48 = vpop.permute.xlu1 %1411  ;;  %9090 = vst [vmem:[#allocation24_spill] sm:$0xff] %v6133_v40  ;;  %2815 = vrot.lane.b32.xlu1 %v9099_v58, %s3935_s17  ;;  %v9104_v39 = vld [vmem:[#allocation20_spill] sm:$0xff]  ;;  %v9109_v58 = vld [vmem:[#allocation29_spill] sm:$0xff]  ;;  %v6189_v40 = vsel %vm1785_vm12, %v2682_v10, %v9114_v27  ;;  %v9116_v52 = vmax.f32 %v5304_v35, %v9022_v60 }
 0x217   :  { %v6128_v33 = vpop.permute.xlu0 %1405  ;;  %9089 = vst [vmem:[#allocation123_spill] sm:$0xff] %v6130_v48  ;;  %9091 = vst [vmem:[#allocation17_spill] sm:$0xff] %v6139_v53  ;;  %v9124_v35 = vld [vmem:[#allocation100_spill] sm:$0xff]  ;;  %v9125_v60 = vld [vmem:[#allocation95_spill] sm:$0xff] }
 0x218   :  { %9088 = vst [vmem:[#allocation16_spill] sm:$0xff] %v6128_v33  ;;  %9093 = vst [vmem:[#allocation124_spill] sm:$0xff] %v6144_v38  ;;  %v6168_v38 = vld [vmem:[%s8316_s2 + $0x178] sm:$0xff]  ;;  %v9155_v34 = vld [vmem:[#allocation102_spill] sm:$0xff] }
 0x219   :  { %9094 = vst [vmem:[#allocation70_spill] sm:$0xff] %v6150_v21  ;;  %9100 = vst [vmem:[#allocation125_spill] sm:$0xff] %v6160_v42  ;;  %2781 = vrot.lane.b32.xlu0 %v9124_v35, %s3935_s17  ;;  %v9134_v42 = vrot.slane %v6139_v53, 6  ;;  %v9150_v27 = vld [vmem:[#allocation43_spill] sm:$0xff]  ;;  %v9159_v10 = vld [vmem:[#allocation101_spill] sm:$0xff] }
 0x21a   :  { %9101 = vst [vmem:[#allocation71_spill] sm:$0xff] %v6163_v8  ;;  %9102 = vst [vmem:[#allocation126_spill] sm:$0xff] %v6168_v38  ;;  %v1524_v16 = vpop.permute.xlu1 %1523  ;;  %v9117_v8 = vrot.slane %v6107_v2, 6  ;;  %v9131_v2 = vld [vmem:[#allocation91_spill] sm:$0xff] }
 0x21b   :  { %9108 = vst [vmem:[#allocation28_spill] sm:$0xff] %v6177_v4  ;;  %v6184_v3 = vpop.permute.xlu0 %1409  ;;  %9115 = vst [vmem:[#allocation127_spill] sm:$0xff] %v6189_v40  ;;  %v6195_v62 = vmax.f32 %v9116_v52, %v1524_v16  ;;  %v9126_v16 = vrot.slane %v9125_v60, 6  ;;  %v6227_v35 = vsel %vm1785_vm12, %v2742_v9, %v9134_v42  ;;  %v9136_v40 = vld [vmem:[#allocation84_spill] sm:$0xff] }
 0x21c   :  { %9113 = vst [vmem:[#allocation72_spill] sm:$0xff] %v6184_v3  ;;  %v6200_v36 = vsel %vm1785_vm12, %v2727_v57, %v9117_v8  ;;  %9119 = vst [vmem:[#allocation73_spill] sm:$0xff] %v6203_v41  ;;  %v6216_v57 = vsel %vm1785_vm12, %v2755_v29, %v2757_v28  ;;  %v9137_v60 = vld [vmem:[#allocation36_spill] sm:$0xff]  ;;  %v9142_v41 = vrot.slane %v6150_v21, 6 }
 0x21d   :  { %9118 = vst [vmem:[#allocation30_spill] sm:$0xff] %v6200_v36  ;;  %2833 = vrot.lane.b32.xlu1 %v9126_v16, %s3935_s17  ;;  %9127 = vst [vmem:[#allocation128_spill] sm:$0xff] %v6216_v57  ;;  %v9133_v36 = vld [vmem:[#allocation7_spill] sm:$0xff]  ;;  %v9139_v29 = vld [vmem:[#allocation92_spill] sm:$0xff]  ;;  %v1787_v42 = vrot.slane %v6195_v62, 6  ;;  %v9146_v16 = vmax.f32 %v5310_v20, %v9029_v51  ;;  %v9147_v57 = vrot.slane %v6168_v38, 6  ;;  %2817 = vrot.lane.b32.xlu0 %v9155_v34, %s3935_s17 }
 0x21e   :  { %9135 = vst [vmem:[#allocation33_spill] sm:$0xff] %v6227_v35  ;;  %v1528_v8 = vpop.permute.xlu1 %1527  ;;  %v6238_v4 = vsel %vm1785_vm12, %v2712_v46, %v9142_v41  ;;  %v9149_v21 = vld [vmem:[#allocation48_spill] sm:$0xff]  ;;  %v9151_v46 = vld [vmem:[#allocation54_spill] sm:$0xff]  ;;  %v9157_v51 = vld [vmem:[#allocation47_spill] sm:$0xff]  ;;  %v9165_v41 = vmax.f32 %v5326_v23, %v9035_v43  ;;  %v1992_v5 = vrot.slane %v6195_v62, 7 }
 0x21f   :  { %v1522_v50 = vpop.permute.xlu0 %1521  ;;  %9143 = vst [vmem:[#allocation74_spill] sm:$0xff] %v6238_v4  ;;  %v6251_v52 = vsel %vm1785_vm12, %v2757_v28, %v9147_v57  ;;  %v9152_v4 = vld [vmem:[#allocation96_spill] sm:$0xff]  ;;  %v9167_v38 = vld [vmem:[#allocation105_spill] sm:$0xff]  ;;  %v9168_v20 = vld [vmem:[#allocation11_spill] sm:$0xff] }
 0x220   :  { %v6246_v35 = vmax.f32 %v9146_v16, %v1522_v50  ;;  %9148 = vst [vmem:[#allocation129_spill] sm:$0xff] %v6251_v52  ;;  %v9160_v34 = vld [vmem:[#allocation104_spill] sm:$0xff]  ;;  %v9164_v16 = vmax.f32 %v9031_v6, %v9030_v26  ;;  %v9171_v23 = vld [vmem:[#allocation139_spill] sm:$0xff] }
 0x221   :  { %1627 = vrot.lane.b32.xlu1 %v8786_v14, %s3938_s21  ;;  %2835 = vrot.lane.b32.xlu0 %v9167_v38, %s3935_s17  ;;  %v9172_v3 = vmax.f32 %v5332_v7, %v9171_v23  ;;  %v9173_v50 = vld [vmem:[#allocation12_spill] sm:$0xff]  ;;  %v9175_v14 = vld [vmem:[#allocation51_spill] sm:$0xff] }
 0x222   :  { %v1786_v49 = vrot.slane %v6246_v35, 6  ;;  %v1532_v44 = vpop.permute.xlu1 %1531  ;;  %v6283_v54 = vmax.f32 %v9164_v16, %v1528_v8  ;;  %v1991_v6 = vrot.slane %v6246_v35, 7  ;;  %v2202_v38 = vrot.slane %v6246_v35, 1  ;;  %v9176_v7 = vld [vmem:[#allocation140_spill] sm:$0xff] }
 0x223   :  { %v1526_v52 = vpop.permute.xlu0 %1525  ;;  %v6318_v8 = vmax.f32 %v9172_v3, %v1532_v44  ;;  %v9177_v3 = vmax.f32 %v9175_v14, %v9176_v7  ;;  %v9182_v7 = vld [vmem:[#allocation98_spill] sm:$0xff] }
 0x224   :  { %v6288_v9 = vmax.f32 %v9165_v41, %v1526_v52  ;;  %v1788_v53 = vsel %vm1785_vm12, %v1786_v49, %v1787_v42  ;;  %v1930_v26 = vmax.f32 %v6246_v35, %v1786_v49  ;;  %v2414_v49 = vrot.slane %v6195_v62, 2 }
 0x225   :  { %2783 = vrot.lane.b32.xlu1 %v9168_v20, %s3935_s17  ;;  %v1931_v16 = vmax.f32 %v6195_v62, %v1788_v53  ;;  %v2203_v20 = vrot.slane %v6195_v62, 1  ;;  %v2413_v52 = vrot.slane %v6246_v35, 2  ;;  %2765 = vrot.lane.b32.xlu0 %v9173_v50, %s3935_s17  ;;  %v9174_v62 = vld [vmem:[#allocation108_spill] sm:$0xff]  ;;  %v1993_v43 = vsel %vm1990_vm15, %v1991_v6, %v1992_v5 }
 0x226   :  { %v1789_v41 = vrot.slane %v6288_v9, 6  ;;  %v1536_v55 = vpop.permute.xlu1 %1535  ;;  %v2205_v57 = vrot.slane %v6288_v9, 1  ;;  %v2147_v33 = vmax.f32 %v1930_v26, %v1991_v6  ;;  %v2416_v35 = vrot.slane %v6288_v9, 2 }
 0x227   :  { %v1530_v28 = vpop.permute.xlu0 %1529  ;;  %v2148_v56 = vmax.f32 %v1931_v16, %v1993_v43  ;;  %v2204_v24 = vsel %vm2201_vm13, %v2202_v38, %v2203_v20  ;;  %v9178_v43 = vmax.f32 %v5344_v19, %v9040_v59  ;;  %v9181_v14 = vrot.slane %v6288_v9, 7  ;;  %v9184_v59 = vld [vmem:[#allocation57_spill] sm:$0xff] }
 0x228   :  { %v1790_v48 = vsel %vm1785_vm12, %v1787_v42, %v1789_v41  ;;  %v2207_v42 = vrot.slane %v6283_v54, 1  ;;  %v6331_v44 = vmax.f32 %v9177_v3, %v1530_v28  ;;  %v2206_v26 = vsel %vm2201_vm13, %v2203_v20, %v2205_v57  ;;  %v9186_v3 = vld [vmem:[#allocation142_spill] sm:$0xff] }
 0x229   :  { %2799 = vrot.lane.b32.xlu1 %v9174_v62, %s3935_s17  ;;  %v1932_v6 = vmax.f32 %v6288_v9, %v1790_v48  ;;  %v6339_v16 = vmax.f32 %v9178_v43, %v1536_v55  ;;  %v9180_v62 = vmax.f32 %v5356_v47, %v9044_v61  ;;  %v2415_v28 = vsel %vm2412_vm14, %v2413_v52, %v2414_v49  ;;  %v9185_v55 = vld [vmem:[#allocation52_spill] sm:$0xff] }
 0x22a   :  { %v1540_v50 = vpop.permute.xlu1 %1539  ;;  %v1995_v38 = vsel %vm1990_vm15, %v1992_v5, %v9181_v14  ;;  %v9183_v19 = vrot.slane %v9182_v7, 6  ;;  %v2358_v61 = vmax.f32 %v2147_v33, %v2204_v24  ;;  %v9187_v52 = vmax.f32 %v9185_v55, %v9186_v3  ;;  %v9192_v55 = vld [vmem:[#allocation109_spill] sm:$0xff]  ;;  %v9193_v3 = vld [vmem:[#allocation59_spill] sm:$0xff] }
 0x22b   :  { %v1534_v23 = vpop.permute.xlu0 %1533  ;;  %9179 = vst [vmem:[#allocation130_spill] sm:$0xff] %v6339_v16  ;;  %v6344_v53 = vmax.f32 %v9180_v62, %v1540_v50  ;;  %v2149_v47 = vmax.f32 %v1932_v6, %v1995_v38  ;;  %v2359_v43 = vmax.f32 %v2148_v56, %v2206_v26  ;;  %v2417_v5 = vsel %vm2412_vm14, %v2414_v49, %v2416_v35  ;;  %v9189_v6 = vld [vmem:[#allocation144_spill] sm:$0xff]  ;;  %v9205_v24 = vld [vmem:[#allocation103_spill] sm:$0xff] }
 0x22c   :  { %2797 = vrot.lane.b32.xlu0 %v9183_v19, %s3935_s17  ;;  %v6360_v50 = vmax.f32 %v9187_v52, %v1534_v23  ;;  %v9188_v62 = vrot.slane %v6283_v54, 6  ;;  %v2208_v33 = vsel %vm2201_vm13, %v2205_v57, %v2207_v42  ;;  %v8524_v56 = vrot.slane %v6339_v16, 6  ;;  %v9212_v19 = vld [vmem:[#allocation148_spill] sm:$0xff] }
 0x22d   :  { %2837 = vrot.lane.b32.xlu1 %v9184_v59, %s3935_s17  ;;  %v1801_v49 = vrot.slane %v6344_v53, 6  ;;  %v2360_v26 = vmax.f32 %v2149_v47, %v2208_v33  ;;  %v6382_v57 = vmax.f32 %v2358_v61, %v2415_v28  ;;  %v6388_v33 = vmax.f32 %v2359_v43, %v2417_v5  ;;  %v9199_v43 = vld [vmem:[#allocation146_spill] sm:$0xff] }
 0x22e   :  { %v1792_v14 = vsel %vm1785_vm12, %v1789_v41, %v9188_v62  ;;  %v1544_v59 = vpop.permute.xlu1 %1543  ;;  %v9190_v41 = vmax.f32 %v5362_v63, %v9189_v6  ;;  %v8525_v62 = vrot.slane %v6331_v44, 1  ;;  %v9195_v63 = vrot.slane %v6283_v54, 2  ;;  %v9196_v6 = vld [vmem:[#allocation58_spill] sm:$0xff] }
 0x22f   :  { %v1538_v48 = vpop.permute.xlu0 %1537  ;;  %v1933_v52 = vmax.f32 %v6283_v54, %v1792_v14  ;;  %9194 = vst [vmem:[#allocation131_spill] sm:$0xff] %v6388_v33  ;;  %v2008_v14 = vrot.slane %v6344_v53, 7  ;;  %v2219_v20 = vrot.slane %v6344_v53, 1  ;;  %v2430_v23 = vrot.slane %v6344_v53, 2 }
 0x230   :  { %v6376_v38 = vmax.f32 %v9190_v41, %v1538_v48  ;;  %2819 = vrot.lane.b32.xlu0 %v9192_v55, %s3935_s17  ;;  %v2419_v48 = vsel %vm2412_vm14, %v2416_v35, %v9195_v63  ;;  %v9197_v41 = vld [vmem:[#allocation145_spill] sm:$0xff]  ;;  %v9200_v5 = vmax.f32 %v5378_v13, %v9199_v43  ;;  %v1939_v35 = vmax.f32 %v6344_v53, %v1801_v49  ;;  %v9211_v43 = vld [vmem:[#allocation38_spill] sm:$0xff] }
 0x231   :  { %2853 = vrot.lane.b32.xlu1 %v9193_v3, %s3935_s17  ;;  %v9198_v55 = vmax.f32 %v9196_v6, %v9197_v41  ;;  %v6407_v63 = vmax.f32 %v2360_v26, %v2419_v48  ;;  %v9203_v6 = vrot.slane %v6288_v9, 7  ;;  %v9206_v13 = vrot.slane %v9205_v24, 6 }
 0x232   :  { %9191 = vst [vmem:[#allocation76_spill] sm:$0xff] %v6376_v38  ;;  %v1548_v61 = vpop.permute.xlu1 %1547  ;;  %v6429_v9 = vsel %vm2201_vm13, %v2207_v42, %v8525_v62  ;;  %v2156_v26 = vmax.f32 %v1939_v35, %v2008_v14  ;;  %v9216_v35 = vrot.slane %v6331_v44, 2 }
 0x233   :  { %v6396_v3 = vmax.f32 %v9198_v55, %v1544_v59  ;;  %v1542_v28 = vpop.permute.xlu0 %1541  ;;  %9201 = vst [vmem:[#allocation77_spill] sm:$0xff] %v6407_v63  ;;  %v9202_v59 = vrot.slane %v6283_v54, 7  ;;  %v6417_v55 = vmax.f32 %v6376_v38, %v8524_v56 }
 0x234   :  { %v6404_v47 = vmax.f32 %v9200_v5, %v1542_v28  ;;  %2851 = vrot.lane.b32.xlu0 %v9206_v13, %s3935_s17  ;;  %v9207_v28 = vld [vmem:[#allocation111_spill] sm:$0xff]  ;;  %v9213_v5 = vmax.f32 %v9211_v43, %v9212_v19  ;;  %v9221_v19 = vrot.slane %v6283_v54, 7 }
 0x235   :  { %v1997_v41 = vsel %vm1990_vm15, %v9203_v6, %v9202_v59  ;;  %9204 = vst [vmem:[#allocation132_spill] sm:$0xff] %v6417_v55  ;;  %2785 = vrot.lane.b32.xlu1 %v9207_v28, %s3935_s17  ;;  %v1804_v59 = vrot.slane %v6396_v3, 6  ;;  %v9208_v6 = vld [vmem:[#allocation37_spill] sm:$0xff] }
 0x236   :  { %v6424_v53 = vmax.f32 %v1933_v52, %v1997_v41  ;;  %v1802_v24 = vrot.slane %v6404_v47, 6  ;;  %v9209_v41 = vld [vmem:[#allocation147_spill] sm:$0xff]  ;;  %v1552_v56 = vpop.permute.xlu1 %1551  ;;  %v2220_v62 = vrot.slane %v6404_v47, 1  ;;  %v2009_v48 = vrot.slane %v6404_v47, 7  ;;  %v9214_v52 = vld [vmem:[#allocation60_spill] sm:$0xff] }
 0x237   :  { %v9210_v13 = vmax.f32 %v9208_v6, %v9209_v41  ;;  %v1546_v42 = vpop.permute.xlu0 %1545  ;;  %v2222_v41 = vrot.slane %v6396_v3, 1  ;;  %v2431_v43 = vrot.slane %v6404_v47, 2 }
 0x238   :  { %v6448_v7 = vmax.f32 %v9213_v5, %v1546_v42  ;;  %v1803_v55 = vsel %vm1785_vm12, %v1801_v49, %v1802_v24  ;;  %2767 = vrot.lane.b32.xlu0 %v9214_v52, %s3935_s17  ;;  %v9217_v49 = vrot.slane %v6283_v54, 2  ;;  %v9218_v52 = vrot.slane %v6331_v44, 6 }
 0x239   :  { %v6441_v28 = vmax.f32 %v9210_v13, %v1548_v61  ;;  %v9215_v61 = vld [vmem:[#allocation112_spill] sm:$0xff]  ;;  %v1940_v6 = vmax.f32 %v6404_v47, %v1803_v55  ;;  %v9219_v55 = vrot.slane %v6283_v54, 6  ;;  %v2221_v63 = vsel %vm2201_vm13, %v2219_v20, %v2220_v62  ;;  %v9223_v13 = vld [vmem:[#allocation61_spill] sm:$0xff] }
 0x23a   :  { %2821 = vrot.lane.b32.xlu1 %v9215_v61, %s3935_s17  ;;  %v6466_v5 = vsel %vm2412_vm14, %v9217_v49, %v9216_v35  ;;  %v9220_v61 = vrot.slane %v6331_v44, 7  ;;  %v9222_v35 = vmax.f32 %v5396_v12, %v9060_v45  ;;  %v1556_v16 = vpop.permute.xlu1 %1555  ;;  %v9224_v12 = vld [vmem:[#allocation62_spill] sm:$0xff]  ;;  %v2223_v54 = vsel %vm2201_vm13, %v2220_v62, %v2222_v41 }
 0x23b   :  { %v6473_v42 = vsel %vm1785_vm12, %v9219_v55, %v9218_v52  ;;  %v1550_v38 = vpop.permute.xlu0 %1549  ;;  %v2367_v52 = vmax.f32 %v2156_v26, %v2221_v63  ;;  %v2432_v55 = vsel %vm2412_vm14, %v2430_v23, %v2431_v43  ;;  %v9228_v26 = vld [vmem:[#allocation42_spill] sm:$0xff] }
 0x23c   :  { %v6480_v47 = vsel %vm1990_vm15, %v9221_v19, %v9220_v61  ;;  %v6486_v49 = vmax.f32 %v9222_v35, %v1552_v56  ;;  %v2010_v19 = vsel %vm1990_vm15, %v2008_v14, %v2009_v48  ;;  %v1805_v61 = vsel %vm1785_vm12, %v1802_v24, %v1804_v59  ;;  %2801 = vrot.lane.b32.xlu0 %v9223_v13, %s3935_s17  ;;  %v9229_v35 = vld [vmem:[#allocation153_spill] sm:$0xff] }
 0x23d   :  { %v2157_v45 = vmax.f32 %v1940_v6, %v2010_v19  ;;  %v1941_v56 = vmax.f32 %v6396_v3, %v1805_v61  ;;  %v2224_v14 = vrot.slane %v6448_v7, 1  ;;  %v9225_v6 = vmax.f32 %v5402_v31, %v9063_v0 }
 0x23e   :  { %2855 = vrot.lane.b32.xlu1 %v9224_v12, %s3935_s17  ;;  %v9226_v61 = vmax.f32 %v5408_v32, %v9064_v17  ;;  %v1560_v23 = vpop.permute.xlu1 %1559  ;;  %v9230_v20 = vmax.f32 %v9228_v26, %v9229_v35  ;;  %v9231_v13 = vrot.slane %v6396_v3, 7  ;;  %v9232_v31 = vrot.slane %v6448_v7, 6  ;;  %v9233_v32 = vld [vmem:[#allocation18_spill] sm:$0xff] }
 0x23f   :  { %v6509_v19 = vmax.f32 %v9225_v6, %v1550_v38  ;;  %v1554_v63 = vpop.permute.xlu0 %1553  ;;  %v9235_v6 = vld [vmem:[#allocation79_spill] sm:$0xff] }
 0x240   :  { %v6514_v12 = vmax.f32 %v9226_v61, %v1556_v16  ;;  %v6519_v24 = vmax.f32 %v9230_v20, %v1560_v23  ;;  %v2012_v0 = vsel %vm1990_vm15, %v2009_v48, %v9231_v13  ;;  %v1807_v38 = vsel %vm1785_vm12, %v1804_v59, %v9232_v31  ;;  %2839 = vrot.lane.b32.xlu0 %v9233_v32, %s3935_s17  ;;  %v9234_v16 = vld [vmem:[#allocation19_spill] sm:$0xff]  ;;  %v9236_v61 = vld [vmem:[#allocation152_spill] sm:$0xff] }
 0x241   :  { %v2368_v20 = vmax.f32 %v2157_v45, %v2223_v54  ;;  %v2158_v35 = vmax.f32 %v1941_v56, %v2012_v0  ;;  %v1942_v62 = vmax.f32 %v6448_v7, %v1807_v38  ;;  %v9237_v23 = vmax.f32 %v9235_v6, %v9236_v61  ;;  %v9245_v45 = vld [vmem:[#allocation13_spill] sm:$0xff]  ;;  %v9248_v54 = vld [vmem:[#allocation155_spill] sm:$0xff] }
 0x242   :  { %9227 = vst [vmem:[#allocation40_spill] sm:$0xff] %v6514_v12  ;;  %2787 = vrot.lane.b32.xlu1 %v9234_v16, %s3935_s17  ;;  %v6539_v13 = vmax.f32 %v2367_v52, %v2432_v55  ;;  %v9239_v59 = vrot.slane %v6396_v3, 2  ;;  %v2225_v31 = vsel %vm2201_vm13, %v2222_v41, %v2224_v14  ;;  %v1564_v0 = vpop.permute.xlu1 %1563  ;;  %v2435_v38 = vrot.slane %v6448_v7, 2  ;;  %v9240_v55 = vld [vmem:[#allocation154_spill] sm:$0xff] }
 0x243   :  { %v6537_v48 = vmax.f32 %v9237_v23, %v1554_v63  ;;  %v1558_v56 = vpop.permute.xlu0 %1557  ;;  %v1817_v52 = vrot.slane %v6519_v24, 6  ;;  %v9241_v16 = vmax.f32 %v5430_v18, %v9240_v55  ;;  %v9242_v41 = vrot.slane %v6448_v7, 7  ;;  %v9247_v23 = vld [vmem:[#allocation80_spill] sm:$0xff] }
 0x244   :  { %v2434_v26 = vsel %vm2412_vm14, %v2431_v43, %v9239_v59  ;;  %v9243_v6 = vrot.slane %v6396_v3, 7  ;;  %v9244_v59 = vld [vmem:[#allocation114_spill] sm:$0xff]  ;;  %v2369_v17 = vmax.f32 %v2158_v35, %v2225_v31  ;;  %v9250_v35 = vrot.slane %v6396_v3, 2  ;;  %v9251_v31 = vld [vmem:[#allocation44_spill] sm:$0xff] }
 0x245   :  { %9238 = vst [vmem:[#allocation78_spill] sm:$0xff] %v6537_v48  ;;  %v6554_v43 = vmax.f32 %v9241_v16, %v1558_v56  ;;  %2769 = vrot.lane.b32.xlu0 %v9244_v59, %s3935_s17  ;;  %v6566_v63 = vmax.f32 %v2368_v20, %v2434_v26  ;;  %v9249_v59 = vmax.f32 %v9247_v23, %v9248_v54  ;;  %v2237_v26 = vrot.slane %v6519_v24, 1  ;;  %v9255_v3 = vld [vmem:[#allocation14_spill] sm:$0xff] }
 0x246   :  { %v2014_v61 = vsel %vm1990_vm15, %v9243_v6, %v9242_v41  ;;  %2823 = vrot.lane.b32.xlu1 %v9245_v45, %s3935_s17  ;;  %v2026_v6 = vrot.slane %v6519_v24, 7  ;;  %v1568_v20 = vpop.permute.xlu1 %1567  ;;  %v2448_v41 = vrot.slane %v6519_v24, 2  ;;  %v9254_v54 = vrot.slane %v6441_v28, 1 }
 0x247   :  { %9246 = vst [vmem:[#allocation133_spill] sm:$0xff] %v6566_v63  ;;  %v2159_v18 = vmax.f32 %v1942_v62, %v2014_v61  ;;  %v1816_v16 = vrot.slane %v6554_v43, 6  ;;  %v6576_v32 = vmax.f32 %v9249_v59, %v1564_v0  ;;  %v1562_v45 = vpop.permute.xlu0 %1561  ;;  %v2436_v62 = vsel %vm2412_vm14, %v9250_v35, %v2435_v38  ;;  %v9252_v61 = vld [vmem:[#allocation156_spill] sm:$0xff] }
 0x248   :  { %v9253_v55 = vmax.f32 %v9251_v31, %v9252_v61  ;;  %v2227_v0 = vsel %vm2201_vm13, %v2224_v14, %v9254_v54  ;;  %v2025_v23 = vrot.slane %v6554_v43, 7  ;;  %v9256_v59 = vld [vmem:[#allocation64_spill] sm:$0xff]  ;;  %v6597_v35 = vmax.f32 %v2369_v17, %v2436_v62 }
 0x249   :  { %v1818_v12 = vsel %vm1785_vm12, %v1816_v16, %v1817_v52  ;;  %2803 = vrot.lane.b32.xlu0 %v9255_v3, %s3935_s17  ;;  %v2236_v48 = vrot.slane %v6554_v43, 1  ;;  %v9258_v14 = vrot.slane %v6441_v28, 2 }
 0x24a   :  { %v6585_v56 = vmax.f32 %v9253_v55, %v1562_v45  ;;  %2857 = vrot.lane.b32.xlu1 %v9256_v59, %s3935_s17  ;;  %9257 = vst [vmem:[#allocation134_spill] sm:$0xff] %v6597_v35  ;;  %v1948_v55 = vmax.f32 %v6554_v43, %v1816_v16  ;;  %v2370_v45 = vmax.f32 %v2159_v18, %v2227_v0  ;;  %v1572_v33 = vpop.permute.xlu1 %1571  ;;  %v9261_v59 = vld [vmem:[#allocation81_spill] sm:$0xff] }
 0x24b   :  { %v1949_v61 = vmax.f32 %v6519_v24, %v1818_v12  ;;  %v2438_v54 = vsel %vm2412_vm14, %v2435_v38, %v9258_v14  ;;  %v1566_v63 = vpop.permute.xlu0 %1565  ;;  %v9259_v18 = vmax.f32 %v6424_v53, %v6429_v9  ;;  %v9262_v14 = vld [vmem:[#allocation157_spill] sm:$0xff]  ;;  %v9264_v53 = vld [vmem:[#allocation116_spill] sm:$0xff] }
 0x24c   :  { %v8534_v31 = vrot.slane %v6585_v56, 6  ;;  %v2239_v17 = vrot.slane %v6585_v56, 1  ;;  %v2165_v0 = vmax.f32 %v1948_v55, %v2025_v23  ;;  %v9263_v3 = vmax.f32 %v9261_v59, %v9262_v14  ;;  %v9265_v9 = vld [vmem:[#allocation65_spill] sm:$0xff]  ;;  %v9268_v59 = vld [vmem:[#allocation158_spill] sm:$0xff] }
 0x24d   :  { %v6612_v16 = vmax.f32 %v9259_v18, %v6466_v5  ;;  %2841 = vrot.lane.b32.xlu0 %v9264_v53, %s3935_s17  ;;  %v2027_v5 = vsel %vm1990_vm15, %v2025_v23, %v2026_v6  ;;  %v2447_v18 = vrot.slane %v6554_v43, 2  ;;  %v6631_v55 = vmax.f32 %v2370_v45, %v2438_v54  ;;  %v9271_v54 = vld [vmem:[#allocation159_spill] sm:$0xff] }
 0x24e   :  { %v1820_v38 = vsel %vm1785_vm12, %v1817_v52, %v8534_v31  ;;  %v6623_v35 = vmax.f32 %v9263_v3, %v1568_v20  ;;  %2789 = vrot.lane.b32.xlu1 %v9265_v9, %s3935_s17  ;;  %v2166_v12 = vmax.f32 %v1949_v61, %v2027_v5  ;;  %v2450_v52 = vrot.slane %v6585_v56, 2  ;;  %v9267_v3 = vld [vmem:[#allocation82_spill] sm:$0xff]  ;;  %v1576_v9 = vpop.permute.xlu1 %1575  ;;  %v9270_v61 = vld [vmem:[#allocation83_spill] sm:$0xff]  ;;  %v9275_v20 = vld [vmem:[#allocation25_spill] sm:$0xff] }
 0x24f   :  { %9260 = vst [vmem:[#allocation135_spill] sm:$0xff] %v6612_v16  ;;  %9266 = vst [vmem:[#allocation136_spill] sm:$0xff] %v6631_v55  ;;  %v2238_v31 = vsel %vm2201_vm13, %v2236_v48, %v2237_v26  ;;  %v9269_v14 = vmax.f32 %v9267_v3, %v9268_v59  ;;  %v1570_v24 = vpop.permute.xlu0 %1569  ;;  %v2240_v23 = vsel %vm2201_vm13, %v2237_v26, %v2239_v17  ;;  %v8536_v45 = vrot.slane %v6576_v32, 2  ;;  %v9274_v48 = vld [vmem:[#allocation5_spill] sm:$0xff] }
 0x250   :  { %v1950_v43 = vmax.f32 %v6585_v56, %v1820_v38  ;;  %v9272_v5 = vmax.f32 %v9270_v61, %v9271_v54  ;;  %v9276_v16 = vmax.f32 %v9274_v48, %v9275_v20  ;;  %v9277_v3 = vrot.slane %v6585_v56, 7  ;;  %v9289_v38 = vld [vmem:[#allocation119_spill] sm:$0xff] }
 0x251   :  { %v6639_v53 = vmax.f32 %v9269_v14, %v1566_v63  ;;  %v2376_v63 = vmax.f32 %v2165_v0, %v2238_v31  ;;  %v9278_v14 = vld [vmem:[#allocation117_spill] sm:$0xff]  ;;  %v2449_v61 = vsel %vm2412_vm14, %v2447_v18, %v2448_v41  ;;  %v2377_v54 = vmax.f32 %v2166_v12, %v2240_v23 }
 0x252   :  { %v6647_v62 = vmax.f32 %v9272_v5, %v1572_v33  ;;  %v6652_v55 = vmax.f32 %v9276_v16, %v1576_v9  ;;  %v2029_v59 = vsel %vm1990_vm15, %v2026_v6, %v9277_v3  ;;  %2771 = vrot.lane.b32.xlu0 %v9278_v14, %s3935_s17  ;;  %v9279_v33 = vld [vmem:[#allocation67_spill] sm:$0xff]  ;;  %v9280_v16 = vld [vmem:[#allocation6_spill] sm:$0xff]  ;;  %v9281_v9 = vld [vmem:[#allocation21_spill] sm:$0xff]  ;;  %v2451_v6 = vsel %vm2412_vm14, %v2448_v41, %v2450_v52 }
 0x253   :  { %2825 = vrot.lane.b32.xlu1 %v9279_v33, %s3935_s17  ;;  %v2167_v20 = vmax.f32 %v1950_v43, %v2029_v59  ;;  %v9282_v31 = vmax.f32 %v9280_v16, %v9281_v9  ;;  %v9284_v5 = vrot.slane %v6441_v28, 6  ;;  %v9285_v48 = vrot.slane %v6448_v7, 6  ;;  %v1574_v18 = vpop.permute.xlu0 %1573  ;;  %v1580_v43 = vpop.permute.xlu1 %1579  ;;  %v9305_v14 = vld [vmem:[#allocation32_spill] sm:$0xff] }
 0x254   :  { %9273 = vst [vmem:[#allocation137_spill] sm:$0xff] %v6647_v62  ;;  %v9286_v59 = vrot.slane %v6576_v32, 1  ;;  %v1831_v23 = vrot.slane %v6652_v55, 6  ;;  %v6683_v16 = vmax.f32 %v2376_v63, %v2449_v61  ;;  %v9292_v41 = vmax.f32 %v9110_v15, %v9109_v58  ;;  %v9297_v61 = vld [vmem:[#allocation121_spill] sm:$0xff]  ;;  %v9298_v58 = vld [vmem:[#allocation122_spill] sm:$0xff] }
 0x255   :  { %v6667_v0 = vmax.f32 %v9282_v31, %v1570_v24  ;;  %v1809_v3 = vsel %vm1785_vm12, %v9285_v48, %v9284_v5  ;;  %v8535_v31 = vrot.slane %v6647_v62, 6  ;;  %v9287_v5 = vmax.f32 %v9104_v39, %v9103_v22  ;;  %v9307_v22 = vld [vmem:[#allocation22_spill] sm:$0xff] }
 0x256   :  { %v2242_v24 = vsel %vm2201_vm13, %v2239_v17, %v9286_v59  ;;  %2805 = vrot.lane.b32.xlu0 %v9289_v38, %s3935_s17  ;;  %v9290_v17 = vld [vmem:[#allocation120_spill] sm:$0xff]  ;;  %v2453_v59 = vsel %vm2412_vm14, %v2450_v52, %v8536_v45  ;;  %v1943_v63 = vmax.f32 %v6441_v28, %v1809_v3  ;;  %v9291_v39 = vmax.f32 %v9106_v1, %v9105_v30 }
 0x257   :  { %9283 = vst [vmem:[#allocation50_spill] sm:$0xff] %v6667_v0  ;;  %v2378_v9 = vmax.f32 %v2167_v20, %v2242_v24  ;;  %v6689_v48 = vmax.f32 %v9287_v5, %v1574_v18  ;;  %2859 = vrot.lane.b32.xlu1 %v9290_v17, %s3935_s17  ;;  %v6701_v24 = vmax.f32 %v2377_v54, %v2451_v6  ;;  %v1578_v18 = vpop.permute.xlu0 %1577  ;;  %v1584_v5 = vpop.permute.xlu1 %1583  ;;  %v2042_v17 = vrot.slane %v6652_v55, 7 }
 0x258   :  { %v6707_v38 = vmax.f32 %v9291_v39, %v1580_v43  ;;  %v2253_v52 = vrot.slane %v6652_v55, 1  ;;  %v2464_v3 = vrot.slane %v6652_v55, 2  ;;  %v6715_v54 = vmax.f32 %v9292_v41, %v1578_v18  ;;  %v9304_v18 = vld [vmem:[#allocation88_spill] sm:$0xff] }
 0x259   :  { %9288 = vst [vmem:[#allocation138_spill] sm:$0xff] %v6689_v48  ;;  %v1957_v6 = vmax.f32 %v6652_v55, %v1831_v23  ;;  %v6718_v20 = vmax.f32 %v2378_v9, %v2453_v59  ;;  %v9294_v1 = vrot.slane %v6441_v28, 7  ;;  %v9295_v30 = vrot.slane %v6448_v7, 7 }
 0x25a   :  { %v6728_v39 = vmax.f32 %v6689_v48, %v8535_v31  ;;  %2843 = vrot.lane.b32.xlu0 %v9297_v61, %s3935_s17  ;;  %v9299_v55 = vrot.slane %v6509_v19, 1  ;;  %v9300_v41 = vrot.slane %v6441_v28, 1  ;;  %v2254_v33 = vrot.slane %v6715_v54, 1 }
 0x25b   :  { %9293 = vst [vmem:[#allocation141_spill] sm:$0xff] %v6718_v20  ;;  %v2016_v43 = vsel %vm1990_vm15, %v9295_v30, %v9294_v1  ;;  %2791 = vrot.lane.b32.xlu1 %v9298_v58, %s3935_s17  ;;  %v1832_v1 = vrot.slane %v6715_v54, 6  ;;  %v9302_v58 = vld [vmem:[#allocation31_spill] sm:$0xff]  ;;  %v2043_v59 = vrot.slane %v6715_v54, 7  ;;  %v9306_v61 = vmax.f32 %v9304_v18, %v9305_v14  ;;  %v9316_v14 = vld [vmem:[#allocation124_spill] sm:$0xff]  ;;  %v9318_v20 = vld [vmem:[#allocation90_spill] sm:$0xff] }
 0x25c   :  { %9296 = vst [vmem:[#allocation143_spill] sm:$0xff] %v6728_v39  ;;  %v6734_v15 = vmax.f32 %v1943_v63, %v2016_v43  ;;  %v6741_v7 = vsel %vm2201_vm13, %v9300_v41, %v9299_v55  ;;  %v1834_v63 = vrot.slane %v6707_v38, 6  ;;  %v9301_v43 = vld [vmem:[#allocation87_spill] sm:$0xff]  ;;  %v1582_v55 = vpop.permute.xlu0 %1581  ;;  %v1588_v41 = vpop.permute.xlu1 %1587  ;;  %v2174_v45 = vmax.f32 %v1957_v6, %v2042_v17 }
 0x25d   :  { %v9303_v31 = vmax.f32 %v9301_v43, %v9302_v58  ;;  %v6760_v12 = vmax.f32 %v9306_v61, %v1582_v55  ;;  %v1833_v9 = vsel %vm1785_vm12, %v1831_v23, %v1832_v1  ;;  %v2256_v43 = vrot.slane %v6707_v38, 1  ;;  %v9314_v58 = vld [vmem:[#allocation35_spill] sm:$0xff] }
 0x25e   :  { %2773 = vrot.lane.b32.xlu0 %v9307_v22, %s3935_s17  ;;  %v2465_v18 = vrot.slane %v6715_v54, 2  ;;  %v9309_v6 = vrot.slane %v6509_v19, 2  ;;  %v9310_v23 = vrot.slane %v6441_v28, 2  ;;  %v9312_v55 = vrot.slane %v6331_v44, 1 }
 0x25f   :  { %v6753_v26 = vmax.f32 %v9303_v31, %v1584_v5  ;;  %v9308_v31 = vld [vmem:[#allocation24_spill] sm:$0xff]  ;;  %v1958_v5 = vmax.f32 %v6715_v54, %v1833_v9  ;;  %v9311_v9 = vrot.slane %v6318_v8, 1  ;;  %v9313_v54 = vld [vmem:[#allocation89_spill] sm:$0xff]  ;;  %v8543_v0 = vrot.slane %v6760_v12, 7 }
 0x260   :  { %2827 = vrot.lane.b32.xlu1 %v9308_v31, %s3935_s17  ;;  %v6778_v22 = vsel %vm2412_vm14, %v9310_v23, %v9309_v6  ;;  %v9315_v30 = vmax.f32 %v9313_v54, %v9314_v58  ;;  %v1586_v48 = vpop.permute.xlu0 %1585  ;;  %v1592_v6 = vpop.permute.xlu1 %1591  ;;  %v2255_v23 = vsel %vm2201_vm13, %v2253_v52, %v2254_v33  ;;  %v2466_v62 = vsel %vm2412_vm14, %v2464_v3, %v2465_v18 }
 0x261   :  { %v6787_v31 = vsel %vm2201_vm13, %v9312_v55, %v9311_v9  ;;  %v2044_v9 = vsel %vm1990_vm15, %v2042_v17, %v2043_v59  ;;  %v1835_v55 = vsel %vm1785_vm12, %v1832_v1, %v1834_v63  ;;  %v2385_v61 = vmax.f32 %v2174_v45, %v2255_v23 }
 0x262   :  { %v6793_v39 = vmax.f32 %v9315_v30, %v1588_v41  ;;  %2807 = vrot.lane.b32.xlu0 %v9316_v14, %s3935_s17  ;;  %v9317_v30 = vld [vmem:[#allocation125_spill] sm:$0xff]  ;;  %v2175_v41 = vmax.f32 %v1958_v5, %v2044_v9  ;;  %v1959_v58 = vmax.f32 %v6707_v38, %v1835_v55  ;;  %v2258_v17 = vrot.slane %v6760_v12, 1 }
 0x263   :  { %v9321_v55 = vmax.f32 %v9131_v2, %v9130_v37  ;;  %v9323_v23 = vmax.f32 %v9137_v60, %v9136_v40  ;;  %v2257_v52 = vsel %vm2201_vm13, %v2254_v33, %v2256_v43  ;;  %v9324_v14 = vrot.slane %v6707_v38, 7  ;;  %v9326_v37 = vld [vmem:[#allocation71_spill] sm:$0xff] }
 0x264   :  { %2861 = vrot.lane.b32.xlu1 %v9317_v30, %s3935_s17  ;;  %v9319_v30 = vld [vmem:[#allocation75_spill] sm:$0xff]  ;;  %v1590_v45 = vpop.permute.xlu0 %1589  ;;  %v1596_v3 = vpop.permute.xlu1 %1595  ;;  %v2386_v40 = vmax.f32 %v2175_v41, %v2257_v52  ;;  %v9328_v60 = vrot.slane %v6707_v38, 2  ;;  %v9340_v2 = vrot.slane %v6707_v38, 2  ;;  %v9341_v41 = vld [vmem:[#allocation94_spill] sm:$0xff] }
 0x265   :  { %v9320_v5 = vmax.f32 %v9318_v20, %v9319_v30  ;;  %v6821_v54 = vmax.f32 %v9321_v55, %v1592_v6  ;;  %v6826_v1 = vmax.f32 %v9323_v23, %v1596_v3  ;;  %v2046_v20 = vsel %vm1990_vm15, %v2043_v59, %v9324_v14  ;;  %v9327_v6 = vld [vmem:[#allocation28_spill] sm:$0xff]  ;;  %v9329_v59 = vld [vmem:[#allocation23_spill] sm:$0xff] }
 0x266   :  { %2845 = vrot.lane.b32.xlu0 %v9326_v37, %s3935_s17  ;;  %v2468_v33 = vsel %vm2412_vm14, %v2465_v18, %v9328_v60  ;;  %v9330_v14 = vmax.f32 %v9133_v36, %v9329_v59  ;;  %v2259_v3 = vsel %vm2201_vm13, %v2256_v43, %v2258_v17  ;;  %v9332_v43 = vld [vmem:[#allocation8_spill] sm:$0xff] }
 0x267   :  { %v6816_v9 = vmax.f32 %v9320_v5, %v1586_v48  ;;  %9322 = vst [vmem:[#allocation149_spill] sm:$0xff] %v6821_v54  ;;  %v9325_v48 = vrot.slane %v6760_v12, 6  ;;  %v2176_v5 = vmax.f32 %v1959_v58, %v2046_v20  ;;  %v2469_v58 = vrot.slane %v6760_v12, 2 }
 0x268   :  { %2793 = vrot.lane.b32.xlu1 %v9327_v6, %s3935_s17  ;;  %v6846_v55 = vmax.f32 %v9330_v14, %v1590_v45  ;;  %v1594_v37 = vpop.permute.xlu0 %1593  ;;  %v1600_v18 = vpop.permute.xlu1 %1599  ;;  %v9335_v6 = vld [vmem:[#allocation30_spill] sm:$0xff]  ;;  %v6866_v60 = vmax.f32 %v2386_v40, %v2468_v33  ;;  %v9336_v14 = vrot.slane %v6707_v38, 7  ;;  %v9337_v40 = vld [vmem:[#allocation41_spill] sm:$0xff]  ;;  %v9338_v33 = vld [vmem:[#allocation39_spill] sm:$0xff] }
 0x269   :  { %v1837_v30 = vsel %vm1785_vm12, %v1834_v63, %v9325_v48  ;;  %v6848_v63 = vmax.f32 %v2385_v61, %v2466_v62  ;;  %v1847_v62 = vrot.slane %v6826_v1, 6  ;;  %v9333_v61 = vmax.f32 %v9139_v29, %v9332_v43 }
 0x26a   :  { %9331 = vst [vmem:[#allocation150_spill] sm:$0xff] %v6846_v55  ;;  %v1960_v23 = vmax.f32 %v6760_v12, %v1837_v30  ;;  %v9334_v30 = vld [vmem:[#allocation127_spill] sm:$0xff]  ;;  %v2387_v59 = vmax.f32 %v2176_v5, %v2259_v3  ;;  %v2048_v52 = vsel %vm1990_vm15, %v9336_v14, %v8543_v0  ;;  %v9339_v5 = vmax.f32 %v9337_v40, %v9338_v33  ;;  %v9345_v40 = vld [vmem:[#allocation128_spill] sm:$0xff] }
 0x26b   :  { %v1719_v20 = vmax.f32 %v9333_v61, %v1594_v37  ;;  %2775 = vrot.lane.b32.xlu0 %v9334_v30, %s3935_s17  ;;  %v2060_v30 = vrot.slane %v6826_v1, 7  ;;  %v2271_v14 = vrot.slane %v6826_v1, 1  ;;  %v2470_v29 = vsel %vm2412_vm14, %v9340_v2, %v2469_v58  ;;  %v9342_v37 = vld [vmem:[#allocation99_spill] sm:$0xff] }
 0x26c   :  { %2829 = vrot.lane.b32.xlu1 %v9335_v6, %s3935_s17  ;;  %v6876_v61 = vmax.f32 %v1960_v23, %v2048_v52  ;;  %v6882_v3 = vmax.f32 %v9339_v5, %v1600_v18  ;;  %v1598_v6 = vpop.permute.xlu0 %1597  ;;  %v1604_v36 = vpop.permute.xlu1 %1603  ;;  %v9343_v48 = vmax.f32 %v9341_v41, %v9342_v37  ;;  %v9344_v18 = vld [vmem:[#allocation73_spill] sm:$0xff]  ;;  %v2482_v33 = vrot.slane %v6826_v1, 2 }
 0x26d   :  { %v1846_v43 = vrot.slane %v1719_v20, 6  ;;  %v2059_v45 = vrot.slane %v1719_v20, 7  ;;  %v6900_v2 = vmax.f32 %v2387_v59, %v2470_v29  ;;  %v9346_v41 = vrot.slane %v6753_v26, 1 }
 0x26e   :  { %v6891_v23 = vmax.f32 %v9343_v48, %v1598_v6  ;;  %v9347_v5 = vrot.slane %v6753_v26, 2 }
 0x26f   :  { %v1966_v52 = vmax.f32 %v1719_v20, %v1846_v43  ;;  %v1848_v0 = vsel %vm1785_vm12, %v1846_v43, %v1847_v62  ;;  %2809 = vrot.lane.b32.xlu0 %v9344_v18, %s3935_s17  ;;  %v6905_v48 = vsel %vm2201_vm13, %v2258_v17, %v9346_v41  ;;  %v2270_v17 = vrot.slane %v1719_v20, 1 }
 0x270   :  { %2863 = vrot.lane.b32.xlu1 %v9345_v40, %s3935_s17  ;;  %v1967_v38 = vmax.f32 %v6826_v1, %v1848_v0  ;;  %v6913_v6 = vsel %vm2412_vm14, %v2469_v58, %v9347_v5  ;;  %v9348_v0 = vmax.f32 %v6734_v15, %v6741_v7  ;;  %v1602_v59 = vpop.permute.xlu0 %1601  ;;  %v1612_v29 = vpop.permute.xlu1 %1611  ;;  %v2481_v18 = vrot.slane %v1719_v20, 2 }
 0x271   :  { %v2273_v40 = vrot.slane %v6891_v23, 1  ;;  %v9350_v43 = vmax.f32 %v9157_v51, %v5863_v25  ;;  %v2183_v58 = vmax.f32 %v1966_v52, %v2059_v45  ;;  %v2061_v5 = vsel %vm1990_vm15, %v2059_v45, %v2060_v30  ;;  %v9353_v25 = vld [vmem:[#allocation33_spill] sm:$0xff]  ;;  %v9354_v51 = vld [vmem:[#allocation68_spill] sm:$0xff] }
 0x272   :  { %v6919_v1 = vmax.f32 %v9348_v0, %v6778_v22  ;;  %v9351_v15 = vrot.slane %v6891_v23, 6  ;;  %v8544_v20 = vrot.slane %v6891_v23, 7  ;;  %v9352_v0 = vmax.f32 %v9150_v27, %v9149_v21 }
 0x273   :  { %v6926_v37 = vmax.f32 %v9350_v43, %v1612_v29  ;;  %2847 = vrot.lane.b32.xlu0 %v9353_v25, %s3935_s17  ;;  %v9355_v52 = vrot.slane %v9354_v51, 6  ;;  %v2184_v45 = vmax.f32 %v1967_v38, %v2061_v5  ;;  %v2484_v29 = vrot.slane %v6891_v23, 2 }
 0x274   :  { %9349 = vst [vmem:[#allocation151_spill] sm:$0xff] %v6919_v1  ;;  %v1850_v7 = vsel %vm1785_vm12, %v1847_v62, %v9351_v15  ;;  %v6937_v41 = vmax.f32 %v9352_v0, %v1604_v36  ;;  %v2274_v62 = vsel %vm2201_vm13, %v2271_v14, %v2273_v40  ;;  %v9356_v21 = vmax.f32 %v9152_v4, %v9151_v46  ;;  %v1606_v36 = vpop.permute.xlu0 %1605  ;;  %v1616_v0 = vpop.permute.xlu1 %1615  ;;  %v9357_v4 = vld [vmem:[#allocation97_spill] sm:$0xff]  ;;  %v9358_v46 = vld [vmem:[#allocation110_spill] sm:$0xff] }
 0x275   :  { %2795 = vrot.lane.b32.xlu1 %v9355_v52, %s3935_s17  ;;  %v2272_v25 = vsel %vm2201_vm13, %v2270_v17, %v2271_v14  ;;  %v1968_v38 = vmax.f32 %v6891_v23, %v1850_v7  ;;  %v1861_v5 = vrot.slane %v6926_v37, 6  ;;  %v2483_v43 = vsel %vm2412_vm14, %v2481_v18, %v2482_v33  ;;  %v9361_v14 = vld [vmem:[#allocation15_spill] sm:$0xff]  ;;  %v9363_v7 = vld [vmem:[#allocation69_spill] sm:$0xff] }
 0x276   :  { %v6951_v27 = vmax.f32 %v9356_v21, %v1602_v59  ;;  %v2394_v52 = vmax.f32 %v2183_v58, %v2272_v25  ;;  %v9359_v59 = vmax.f32 %v9357_v4, %v9358_v46  ;;  %v9362_v17 = vrot.slane %v9361_v14, 6 }
 0x277   :  { %v9364_v51 = vrot.slane %v9363_v7, 6  ;;  %v2395_v58 = vmax.f32 %v2184_v45, %v2274_v62  ;;  %v2063_v18 = vsel %vm1990_vm15, %v2060_v30, %v8544_v20  ;;  %v9365_v4 = vmax.f32 %v9159_v10, %v5930_v11  ;;  %v9366_v7 = vld [vmem:[#allocation63_spill] sm:$0xff]  ;;  %v9380_v20 = vld [vmem:[#allocation17_spill] sm:$0xff] }
 0x278   :  { %v6963_v21 = vmax.f32 %v9359_v59, %v1606_v36  ;;  %2777 = vrot.lane.b32.xlu0 %v9362_v17, %s3935_s17  ;;  %v2485_v46 = vsel %vm2412_vm14, %v2482_v33, %v2484_v29  ;;  %v2185_v59 = vmax.f32 %v1968_v38, %v2063_v18  ;;  %v2076_v45 = vrot.slane %v6926_v37, 7  ;;  %v1614_v62 = vpop.permute.xlu0 %1613  ;;  %v9369_v18 = vld [vmem:[#allocation74_spill] sm:$0xff]  ;;  %v9373_v38 = vld [vmem:[#allocation115_spill] sm:$0xff] }
 0x279   :  { %2831 = vrot.lane.b32.xlu1 %v9364_v51, %s3935_s17  ;;  %v6978_v36 = vmax.f32 %v9365_v4, %v1616_v0  ;;  %v1620_v51 = vpop.permute.xlu1 %1619  ;;  %v9367_v25 = vmax.f32 %v9160_v34, %v9366_v7  ;;  %v6990_v11 = vmax.f32 %v2394_v52, %v2483_v43  ;;  %v9368_v10 = vrot.slane %v6882_v3, 1  ;;  %v9370_v4 = vld [vmem:[#allocation129_spill] sm:$0xff] }
 0x27a   :  { %9360 = vst [vmem:[#allocation46_spill] sm:$0xff] %v6963_v21  ;;  %v1975_v0 = vmax.f32 %v6926_v37, %v1861_v5  ;;  %v7001_v22 = vmax.f32 %v2395_v58, %v2485_v46  ;;  %v9371_v34 = vrot.slane %v6882_v3, 2  ;;  %v2287_v52 = vrot.slane %v6926_v37, 1 }
 0x27b   :  { %v6988_v15 = vmax.f32 %v9367_v25, %v1614_v62  ;;  %v2276_v33 = vsel %vm2201_vm13, %v2273_v40, %v9368_v10  ;;  %v9382_v25 = vld [vmem:[#allocation126_spill] sm:$0xff]  ;;  %v9391_v1 = vrot.slane %v6891_v23, 7 }
 0x27c   :  { %2811 = vrot.lane.b32.xlu0 %v9369_v18, %s3935_s17  ;;  %v2487_v43 = vsel %vm2412_vm14, %v2484_v29, %v9371_v34  ;;  %v2396_v7 = vmax.f32 %v2185_v59, %v2276_v33  ;;  %v9372_v18 = vld [vmem:[#allocation9_spill] sm:$0xff]  ;;  %v1618_v46 = vpop.permute.xlu0 %1617  ;;  %v2290_v29 = vrot.slane %v6978_v36, 1  ;;  %v7020_v14 = vmax.f32 %v1975_v0, %v2076_v45 }
 0x27d   :  { %2865 = vrot.lane.b32.xlu1 %v9370_v4, %s3935_s17  ;;  %v1862_v62 = vrot.slane %v6988_v15, 6  ;;  %v9374_v4 = vmax.f32 %v9372_v18, %v9373_v38  ;;  %v1608_v30 = vpop.permute.xlu1 %1607  ;;  %v2077_v40 = vrot.slane %v6988_v15, 7  ;;  %v9375_v59 = vrot.slane %v6882_v3, 6  ;;  %v9378_v18 = vld [vmem:[#allocation66_spill] sm:$0xff] }
 0x27e   :  { %v9376_v33 = vrot.slane %v6891_v23, 6  ;;  %v9381_v34 = vrot.slane %v9380_v20, 6  ;;  %v2288_v54 = vrot.slane %v6988_v15, 1  ;;  %v9384_v20 = vmax.f32 %v6876_v61, %v6905_v48 }
 0x27f   :  { %v7014_v58 = vmax.f32 %v9374_v4, %v1620_v51  ;;  %v1863_v17 = vsel %vm1785_vm12, %v1861_v5, %v1862_v62  ;;  %v9377_v51 = vld [vmem:[#allocation53_spill] sm:$0xff]  ;;  %v9383_v5 = vrot.slane %v9382_v25, 6  ;;  %v9394_v23 = vrot.slane %v6951_v27, 1 }
 0x280   :  { %v1852_v38 = vsel %vm1785_vm12, %v9376_v33, %v9375_v59  ;;  %v9379_v4 = vmax.f32 %v9377_v51, %v9378_v18  ;;  %2849 = vrot.lane.b32.xlu0 %v9381_v34, %s3935_s17  ;;  %v1976_v0 = vmax.f32 %v6988_v15, %v1863_v17  ;;  %v7041_v59 = vmax.f32 %v2396_v7, %v2487_v43  ;;  %v9386_v51 = vld [vmem:[#allocation45_spill] sm:$0xff]  ;;  %v9387_v17 = vld [vmem:[#allocation106_spill] sm:$0xff] }
 0x281   :  { %2867 = vrot.lane.b32.xlu1 %v9383_v5, %s3935_s17  ;;  %v2499_v33 = vrot.slane %v6988_v15, 2  ;;  %v7049_v34 = vmax.f32 %v9384_v20, %v6913_v6  ;;  %v9388_v18 = vmax.f32 %v9386_v51, %v9387_v17  ;;  %v1622_v5 = vpop.permute.xlu0 %1621  ;;  %v1626_v43 = vpop.permute.xlu1 %1625  ;;  %v9389_v7 = vrot.slane %v6978_v36, 6  ;;  %v9392_v51 = vld [vmem:[#allocation70_spill] sm:$0xff] }
 0x282   :  { %v7030_v10 = vmax.f32 %v9379_v4, %v1618_v46  ;;  %v2498_v46 = vrot.slane %v6926_v37, 2  ;;  %v9390_v37 = vrot.slane %v6882_v3, 7  ;;  %v2078_v6 = vsel %vm1990_vm15, %v2076_v45, %v2077_v40  ;;  %v9396_v45 = vld [vmem:[#allocation55_spill] sm:$0xff] }
 0x283   :  { %9385 = vst [vmem:[#allocation93_spill] sm:$0xff] %v7049_v34  ;;  %v7055_v4 = vmax.f32 %v9388_v18, %v1608_v30  ;;  %v1865_v15 = vsel %vm1785_vm12, %v1862_v62, %v9389_v7  ;;  %v1969_v30 = vmax.f32 %v6882_v3, %v1852_v38  ;;  %v9393_v17 = vrot.slane %v9392_v51, 6  ;;  %v9406_v7 = vld [vmem:[#allocation118_spill] sm:$0xff] }
 0x284   :  { %v2065_v61 = vsel %vm1990_vm15, %v9391_v1, %v9390_v37  ;;  %v1977_v20 = vmax.f32 %v6978_v36, %v1865_v15  ;;  %v2193_v18 = vmax.f32 %v1976_v0, %v2078_v6  ;;  %v2291_v62 = vsel %vm2201_vm13, %v2288_v54, %v2290_v29  ;;  %v9397_v15 = vld [vmem:[#allocation16_spill] sm:$0xff] }
 0x285   :  { %2813 = vrot.lane.b32.xlu0 %v9393_v17, %s3935_s17  ;;  %v9395_v1 = vrot.slane %v6882_v3, 1  ;;  %v9398_v48 = vmax.f32 %v9396_v45, %v9397_v15  ;;  %v9399_v51 = vrot.slane %v6978_v36, 2  ;;  %v2289_v6 = vsel %vm2201_vm13, %v2287_v52, %v2288_v54  ;;  %v2762_v55 = vpop.permute.xlu1 %2761  ;;  %v9402_v15 = vld [vmem:[#allocation72_spill] sm:$0xff] }
 0x286   :  { %v9400_v45 = vrot.slane %v6978_v36, 7  ;;  %v3856_v54 = vld [vmem:[%s8315_s1] sm:$0xff]  ;;  %v2403_v17 = vmax.f32 %v7020_v14, %v2289_v6  ;;  %v9404_v21 = vrot.slane %v7030_v10, 1  ;;  %v9409_v6 = vrot.slane %v6753_v26, 6 }
 0x287   :  { %v7079_v37 = vsel %vm2201_vm13, %v9395_v1, %v9394_v23  ;;  %v7084_v38 = vmax.f32 %v9398_v48, %v1622_v5  ;;  %v2502_v0 = vsel %vm2412_vm14, %v2499_v33, %v9399_v51  ;;  %v1624_v1 = vpop.permute.xlu0 %1623  ;;  %v9401_v48 = vld [vmem:[#allocation56_spill] sm:$0xff]  ;;  %v2923_v52 = vsub.f32 %v3856_v54, %v2762_v55  ;;  %v9405_v54 = vld [vmem:[#allocation10_spill] sm:$0xff] }
 0x288   :  { %v2080_v5 = vsel %vm1990_vm15, %v2077_v40, %v9400_v45  ;;  %v9403_v34 = vmax.f32 %v9401_v48, %v9402_v15  ;;  %v2404_v23 = vmax.f32 %v2193_v18, %v2291_v62  ;;  %v2293_v40 = vsel %vm2201_vm13, %v2290_v29, %v9404_v21 }
 0x289   :  { %v2194_v25 = vmax.f32 %v1977_v20, %v2080_v5  ;;  %v2503_v45 = vrot.slane %v7030_v10, 2  ;;  %v2500_v48 = vsel %vm2412_vm14, %v2498_v46, %v2499_v33  ;;  %v2186_v15 = vmax.f32 %v1969_v30, %v2065_v61  ;;  %v2780_v62 = vpop.permute.xlu1 %2779  ;;  %v3857_v30 = vld [vmem:[%s8315_s1 + $0x48] sm:$0xff] }
 0x28a   :  { %v7100_v51 = vmax.f32 %v9403_v34, %v1626_v43  ;;  %v1870_v34 = vrot.slane %v7084_v38, 6  ;;  %v2977_v43 = vand.u32 2147483647, %v2923_v52  ;;  %v9407_v20 = vmax.f32 %v9405_v54, %v9406_v7 }
 0x28b   :  { %v1610_v14 = vpop.permute.xlu0 %1609  ;;  %v9408_v21 = vmax.f32 %v6331_v44, %v6473_v42  ;;  %v9410_v5 = vrot.slane %v6760_v12, 6  ;;  %v2932_v7 = vsub.f32 %v3857_v30, %v2780_v62  ;;  %v7134_v42 = vmax.f32 %v2404_v23, %v2502_v0 }
 0x28c   :  { %v7117_v18 = vmax.f32 %v9407_v20, %v1624_v1  ;;  %v3031_v61 = vmul.f32 %v2977_v43, %v6382_v57  ;;  %v2405_v1 = vmax.f32 %v2194_v25, %v2293_v40  ;;  %v8551_v52 = vrot.slane %v7100_v51, 6 }
 0x28d   :  { %v2151_v29 = vmax.f32 %v9408_v21, %v6480_v47  ;;  %v1839_v33 = vsel %vm1785_vm12, %v9410_v5, %v9409_v6  ;;  %v7136_v47 = vmax.f32 %v2403_v17, %v2500_v48  ;;  %v9411_v54 = vrot.slane %v6978_v36, 2  ;;  %v2816_v5 = vpop.permute.xlu1 %2815 }
 0x28e   :  { %3139 = vrot.lane.b32.xlu0 %v3031_v61, %s3938_s21  ;;  %v2397_v57 = vmax.f32 %v2186_v15, %v7079_v37  ;;  %v9412_v43 = vrot.slane %v6951_v27, 2  ;;  %v9413_v25 = vrot.slane %v6882_v3, 2  ;;  %v9414_v0 = vrot.slane %v6318_v8, 2 }
 0x28f   :  { %v2504_v20 = vsel %vm2412_vm14, %v9411_v54, %v2503_v45  ;;  %v9415_v17 = vrot.slane %v6331_v44, 2  ;;  %v1961_v48 = vmax.f32 %v6753_v26, %v1839_v33  ;;  %v2986_v21 = vand.u32 2147483647, %v2932_v7  ;;  %v2764_v6 = vpop.permute.xlu0 %2763  ;;  %v3859_v7 = vld [vmem:[%s8315_s1 + $0xd8] sm:$0xff] }
 0x290   :  { %v2489_v40 = vsel %vm2412_vm14, %v9413_v25, %v9412_v43  ;;  %v2362_v37 = vmax.f32 %v2151_v29, %v6787_v31  ;;  %v9416_v15 = vrot.slane %v6576_v32, 6  ;;  %v9417_v61 = vrot.slane %v6585_v56, 6  ;;  %v3858_v43 = vld [vmem:[%s8315_s1 + $0x8] sm:$0xff] }
 0x291   :  { %v2423_v23 = vsel %vm2412_vm14, %v9415_v17, %v9414_v0  ;;  %v2924_v33 = vsub.f32 %v3858_v43, %v2764_v6  ;;  %v2950_v25 = vsub.f32 %v3859_v7, %v2816_v5  ;;  %v7170_v0 = vmax.f32 %v2405_v1, %v2504_v20  ;;  %v9418_v31 = vld [vmem:[#allocation49_spill] sm:$0xff] }
 0x292   :  { %v1822_v30 = vsel %vm1785_vm12, %v9417_v61, %v9416_v15  ;;  %v9419_v29 = vld [vmem:[#allocation113_spill] sm:$0xff]  ;;  %v3040_v15 = vmul.f32 %v2986_v21, %v6539_v13  ;;  %v9421_v61 = vrot.slane %v6753_v26, 7  ;;  %v9422_v54 = vrot.slane %v6760_v12, 7 }
 0x293   :  { %v9420_v17 = vmax.f32 %v9418_v31, %v9419_v29  ;;  %v1951_v43 = vmax.f32 %v6576_v32, %v1822_v30  ;;  %v2978_v62 = vand.u32 2147483647, %v2924_v33  ;;  %v3004_v55 = vand.u32 2147483647, %v2950_v25  ;;  %v2782_v20 = vpop.permute.xlu0 %2781  ;;  %v3860_v31 = vld [vmem:[%s8315_s1 + $0x50] sm:$0xff] }
 0x294   :  { %v2050_v6 = vsel %vm1990_vm15, %v9422_v54, %v9421_v61  ;;  %v7184_v5 = vmax.f32 %v2397_v57, %v2489_v40  ;;  %3157 = vrot.lane.b32.xlu0 %v3040_v15, %s3938_s21  ;;  %v7187_v7 = vmax.f32 %v2362_v37, %v2423_v23  ;;  %v9423_v13 = vrot.slane %v6816_v9, 1  ;;  %v9429_v23 = vld [vmem:[#allocation131_spill] sm:$0xff] }
 0x295   :  { %v7175_v46 = vmax.f32 %v9420_v17, %v1610_v14  ;;  %v2178_v1 = vmax.f32 %v1961_v48, %v2050_v6  ;;  %v2834_v14 = vpop.permute.xlu1 %2833  ;;  %v9424_v21 = vrot.slane %v6753_v26, 1  ;;  %v9425_v54 = vrot.slane %v6576_v32, 7 }
 0x296   :  { %v9426_v30 = vrot.slane %v6585_v56, 7  ;;  %v9427_v40 = vrot.slane %v7030_v10, 6  ;;  %v9428_v48 = vrot.slane %v6978_v36, 6  ;;  %v3032_v37 = vmul.f32 %v2978_v62, %v9429_v23  ;;  %v3861_v56 = vld [vmem:[%s8315_s1 + $0x120] sm:$0xff] }
 0x297   :  { %v2263_v12 = vsel %vm2201_vm13, %v9424_v21, %v9423_v13  ;;  %v3058_v25 = vmul.f32 %v3004_v55, %v6848_v63  ;;  %v2933_v29 = vsub.f32 %v3860_v31, %v2782_v20  ;;  %v2959_v17 = vsub.f32 %v3861_v56, %v2834_v14 }
 0x298   :  { %v2031_v57 = vsel %vm1990_vm15, %v9426_v30, %v9425_v54  ;;  %v1867_v33 = vsel %vm1785_vm12, %v9428_v48, %v9427_v40  ;;  %v9430_v15 = vrot.slane %v7055_v4, 6  ;;  %v9431_v6 = vrot.slane %v6816_v9, 2  ;;  %3141 = vrot.lane.b32.xlu1 %v3032_v37, %s3938_s21 }
 0x299   :  { %v9432_v62 = vrot.slane %v6753_v26, 2  ;;  %v2168_v55 = vmax.f32 %v1951_v43, %v2031_v57  ;;  %v9433_v13 = vrot.slane %v6639_v53, 1  ;;  %v9434_v20 = vrot.slane %v6576_v32, 1  ;;  %v2818_v43 = vpop.permute.xlu0 %2817  ;;  %3193 = vrot.lane.b32.xlu0 %v3058_v25, %s3938_s21  ;;  %v1628_v57 = vpop.permute.xlu1 %1627 }
 0x29a   :  { %v7215_v61 = vmax.f32 %v7175_v46, %v9430_v15  ;;  %v2987_v54 = vand.u32 2147483647, %v2933_v29  ;;  %v3013_v14 = vand.u32 2147483647, %v2959_v17  ;;  %v2389_v30 = vmax.f32 %v2178_v1, %v2263_v12  ;;  %v9435_v15 = vld [vmem:[#allocation133_spill] sm:$0xff] }
 0x29b   :  { %v2474_v63 = vsel %vm2412_vm14, %v9432_v62, %v9431_v6  ;;  %v2244_v21 = vsel %vm2201_vm13, %v9434_v20, %v9433_v13  ;;  %v2294_v40 = vrot.slane %v7014_v58, 1  ;;  %v1978_v56 = vmax.f32 %v7030_v10, %v1867_v33  ;;  %v3862_v1 = vld [vmem:[%s8315_s1 + $0xe0] sm:$0xff] }
 0x29c   :  { %v3041_v29 = vmul.f32 %v2987_v54, %v9435_v15  ;;  %v3067_v37 = vmul.f32 %v3013_v14, %v6990_v11  ;;  %v2951_v12 = vsub.f32 %v3862_v1, %v2818_v43  ;;  %v9436_v17 = vrot.slane %v6951_v27, 6 }
 0x29d   :  { %v9437_v6 = vrot.slane %v6882_v3, 6  ;;  %v2379_v13 = vmax.f32 %v2168_v55, %v2244_v21  ;;  %v9438_v25 = vrot.slane %v6639_v53, 2  ;;  %v9439_v33 = vrot.slane %v6576_v32, 2 }
 0x29e   :  { %v2505_v11 = vrot.slane %v7014_v58, 2  ;;  %v9440_v54 = vrot.slane %v6509_v19, 6  ;;  %v9441_v14 = vrot.slane %v6441_v28, 6  ;;  %v3005_v15 = vand.u32 2147483647, %v2951_v12  ;;  %3159 = vrot.lane.b32.xlu1 %v3041_v29, %s3938_s21  ;;  %3211 = vrot.lane.b32.xlu0 %v3067_v37, %s3938_s21  ;;  %v2784_v12 = vpop.permute.xlu1 %2783 }
 0x29f   :  { %v1854_v62 = vsel %vm1785_vm12, %v9437_v6, %v9436_v17  ;;  %v2455_v20 = vsel %vm2412_vm14, %v9439_v33, %v9438_v25  ;;  %v7256_v1 = vmax.f32 %v2389_v30, %v2474_v63  ;;  %v9442_v55 = vrot.slane %v7030_v10, 7  ;;  %v2836_v33 = vpop.permute.xlu0 %2835 }
 0x2a0   :  { %v1811_v43 = vsel %vm1785_vm12, %v9441_v14, %v9440_v54  ;;  %v9443_v21 = vrot.slane %v6978_v36, 7  ;;  %v9444_v6 = vrot.slane %v7030_v10, 1  ;;  %v1970_v63 = vmax.f32 %v6951_v27, %v1854_v62  ;;  %v9445_v14 = vld [vmem:[#allocation107_spill] sm:$0xff] }
 0x2a1   :  { %v2490_v30 = vrot.slane %v6937_v41, 2  ;;  %v1944_v29 = vmax.f32 %v6509_v19, %v1811_v43  ;;  %v3059_v36 = vmul.f32 %v3005_v15, %v6866_v60  ;;  %v2506_v60 = vsel %vm2412_vm14, %v2503_v45, %v2505_v11 }
 0x2a2   :  { %v2082_v17 = vsel %vm1990_vm15, %v9443_v21, %v9442_v55  ;;  %v2295_v25 = vsel %vm2201_vm13, %v9444_v6, %v2294_v40  ;;  %v9446_v55 = vld [vmem:[#allocation123_spill] sm:$0xff]  ;;  %v3863_v6 = vld [vmem:[%s8315_s1 + $0x128] sm:$0xff]  ;;  %v9449_v43 = vrot.slane %v6882_v3, 7  ;;  %v9453_v45 = vrot.slane %v6441_v28, 7 }
 0x2a3   :  { %v2195_v54 = vmax.f32 %v1978_v56, %v2082_v17  ;;  %v9447_v21 = vmax.f32 %v9445_v14, %v9446_v55  ;;  %v2960_v37 = vsub.f32 %v3863_v6, %v2836_v33  ;;  %v3864_v56 = vld [vmem:[%s8315_s1 + $0x58] sm:$0xff]  ;;  %v7284_v17 = vmax.f32 %v2379_v13, %v2455_v20  ;;  %3195 = vrot.lane.b32.xlu1 %v3059_v36, %s3938_s21 }
 0x2a4   :  { %v2934_v62 = vsub.f32 %v3864_v56, %v2784_v12  ;;  %v9450_v33 = vrot.slane %v6937_v41, 1  ;;  %v9451_v14 = vrot.slane %v6951_v27, 1  ;;  %v9452_v55 = vrot.slane %v6509_v19, 7 }
 0x2a5   :  { %v7276_v48 = vmax.f32 %v9447_v21, %v1628_v57  ;;  %v9448_v57 = vrot.slane %v6951_v27, 7  ;;  %v3014_v13 = vand.u32 2147483647, %v2960_v37  ;;  %v9454_v3 = vrot.slane %v6318_v8, 6 }
 0x2a6   :  { %v2280_v12 = vsel %vm2201_vm13, %v9451_v14, %v9450_v33  ;;  %v2988_v20 = vand.u32 2147483647, %v2934_v62  ;;  %v2018_v21 = vsel %vm1990_vm15, %v9453_v45, %v9452_v55  ;;  %v9455_v6 = vrot.slane %v6331_v44, 6  ;;  %v3865_v55 = vld [vmem:[%s8315_s1 + $0x10] sm:$0xff] }
 0x2a7   :  { %v2067_v15 = vsel %vm1990_vm15, %v9449_v43, %v9448_v57  ;;  %v2766_v57 = vpop.permute.xlu0 %2765  ;;  %v2800_v43 = vpop.permute.xlu1 %2799  ;;  %v2406_v31 = vmax.f32 %v2195_v54, %v2295_v25  ;;  %v9456_v36 = vrot.slane %v6951_v27, 2  ;;  %v2161_v62 = vmax.f32 %v1944_v29, %v2018_v21  ;;  %v3866_v54 = vld [vmem:[%s8315_s1 + $0x98] sm:$0xff] }
 0x2a8   :  { %v1796_v56 = vsel %vm1785_vm12, %v9455_v6, %v9454_v3  ;;  %v2187_v33 = vmax.f32 %v1970_v63, %v2067_v15  ;;  %v7320_v28 = vmax.f32 %v7276_v48, %v8551_v52  ;;  %v3068_v14 = vmul.f32 %v3014_v13, %v7001_v22  ;;  %v9459_v3 = vld [vmem:[#allocation134_spill] sm:$0xff] }
 0x2a9   :  { %v2491_v37 = vsel %vm2412_vm14, %v9456_v36, %v2490_v30  ;;  %v2925_v25 = vsub.f32 %v3865_v55, %v2766_v57  ;;  %v2942_v63 = vsub.f32 %v3866_v54, %v2800_v43  ;;  %v9457_v45 = vrot.slane %v6486_v49, 1 }
 0x2aa   :  { %v9458_v21 = vrot.slane %v6509_v19, 1  ;;  %v1935_v13 = vmax.f32 %v6318_v8, %v1796_v56  ;;  %v3042_v6 = vmul.f32 %v2988_v20, %v9459_v3  ;;  %3213 = vrot.lane.b32.xlu1 %v3068_v14, %s3938_s21  ;;  %v9460_v43 = vrot.slane %v6816_v9, 6  ;;  %v9464_v14 = vld [vmem:[#allocation77_spill] sm:$0xff] }
 0x2ab   :  { %v2979_v57 = vand.u32 2147483647, %v2925_v25  ;;  %v2996_v36 = vand.u32 2147483647, %v2942_v63  ;;  %v9461_v55 = vrot.slane %v6753_v26, 6  ;;  %v2798_v15 = vpop.permute.xlu0 %2797  ;;  %v2838_v29 = vpop.permute.xlu1 %2837  ;;  %v7344_v52 = vmax.f32 %v2406_v31, %v2506_v60  ;;  %v3868_v31 = vld [vmem:[%s8315_s1 + $0x130] sm:$0xff] }
 0x2ac   :  { %v2231_v22 = vsel %vm2201_vm13, %v9458_v21, %v9457_v45  ;;  %v2398_v23 = vmax.f32 %v2187_v33, %v2280_v12  ;;  %v9462_v56 = vrot.slane %v6486_v49, 2  ;;  %v9463_v20 = vrot.slane %v6509_v19, 2  ;;  %v3867_v21 = vld [vmem:[%s8315_s1 + $0x90] sm:$0xff] }
 0x2ad   :  { %v1841_v54 = vsel %vm1785_vm12, %v9461_v55, %v9460_v43  ;;  %v2372_v45 = vmax.f32 %v2161_v62, %v2231_v22  ;;  %v3033_v63 = vmul.f32 %v2979_v57, %v9464_v14  ;;  %v2941_v3 = vsub.f32 %v3867_v21, %v2798_v15 }
 0x2ae   :  { %v2442_v25 = vsel %vm2412_vm14, %v9463_v20, %v9462_v56  ;;  %v2961_v60 = vsub.f32 %v3868_v31, %v2838_v29  ;;  %v9465_v12 = vrot.slane %v6318_v8, 7  ;;  %v9466_v33 = vrot.slane %v6331_v44, 7  ;;  %3161 = vrot.lane.b32.xlu1 %v3042_v6, %s3938_s21 }
 0x2af   :  { %v9467_v43 = vrot.slane %v6360_v50, 1  ;;  %v9468_v57 = vrot.slane %v6318_v8, 1  ;;  %v2475_v15 = vrot.slane %v6793_v39, 2  ;;  %v1962_v56 = vmax.f32 %v6816_v9, %v1841_v54  ;;  %3143 = vrot.lane.b32.xlu0 %v3033_v63, %s3938_s21  ;;  %v2820_v31 = vpop.permute.xlu0 %2819 }
 0x2b0   :  { %v2001_v62 = vsel %vm1990_vm15, %v9466_v33, %v9465_v12  ;;  %v3050_v20 = vmul.f32 %v2996_v36, %v6701_v24  ;;  %v2995_v29 = vand.u32 2147483647, %v2941_v3  ;;  %v3015_v44 = vand.u32 2147483647, %v2961_v60  ;;  %v2854_v12 = vpop.permute.xlu1 %2853 }
 0x2b1   :  { %v2152_v22 = vmax.f32 %v1935_v13, %v2001_v62  ;;  %v2214_v55 = vsel %vm2201_vm13, %v9468_v57, %v9467_v43  ;;  %v9469_v13 = vrot.slane %v6639_v53, 6  ;;  %v9470_v14 = vrot.slane %v6576_v32, 6 }
 0x2b2   :  { %v7378_v33 = vmax.f32 %v2398_v23, %v2491_v37  ;;  %v7380_v62 = vmax.f32 %v2372_v45, %v2442_v25  ;;  %v9471_v24 = vrot.slane %v6360_v50, 2  ;;  %v9472_v36 = vrot.slane %v6318_v8, 2  ;;  %v3869_v23 = vld [vmem:[%s8315_s1 + $0xe8] sm:$0xff]  ;;  %v3870_v45 = vld [vmem:[%s8315_s1 + $0x170] sm:$0xff]  ;;  %3177 = vrot.lane.b32.xlu1 %v3050_v20, %s3938_s21 }
 0x2b3   :  { %v1824_v21 = vsel %vm1785_vm12, %v9470_v14, %v9469_v13  ;;  %v9473_v54 = vrot.slane %v6816_v9, 7  ;;  %v9474_v63 = vrot.slane %v6753_v26, 7  ;;  %v3049_v60 = vmul.f32 %v2995_v29, %v6683_v16 }
 0x2b4   :  { %v2425_v6 = vsel %vm2412_vm14, %v9472_v36, %v9471_v24  ;;  %v2952_v37 = vsub.f32 %v3869_v23, %v2820_v31  ;;  %v2969_v25 = vsub.f32 %v3870_v45, %v2854_v12  ;;  %v9475_v43 = vrot.slane %v7014_v58, 6 }
 0x2b5   :  { %v2052_v3 = vsel %vm1990_vm15, %v9474_v63, %v9473_v54  ;;  %v9476_v57 = vrot.slane %v7030_v10, 6  ;;  %v2363_v13 = vmax.f32 %v2152_v22, %v2214_v55  ;;  %v9477_v16 = vrot.slane %v6793_v39, 1  ;;  %3175 = vrot.lane.b32.xlu0 %v3049_v60, %s3938_s21  ;;  %v2786_v63 = vpop.permute.xlu1 %2785 }
 0x2b6   :  { %v2179_v14 = vmax.f32 %v1962_v56, %v2052_v3  ;;  %v9478_v29 = vrot.slane %v6816_v9, 1  ;;  %v1952_v31 = vmax.f32 %v6639_v53, %v1824_v21  ;;  %v3069_v36 = vmul.f32 %v3015_v44, %v7041_v59  ;;  %v2852_v56 = vpop.permute.xlu0 %2851 }
 0x2b7   :  { %v1869_v26 = vsel %vm1785_vm12, %v9476_v57, %v9475_v43  ;;  %v3006_v54 = vand.u32 2147483647, %v2952_v37  ;;  %v3023_v12 = vand.u32 2147483647, %v2969_v25  ;;  %v9479_v22 = vrot.slane %v6816_v9, 2  ;;  %v3871_v37 = vld [vmem:[%s8315_s1 + $0x168] sm:$0xff] }
 0x2b8   :  { %v2265_v24 = vsel %vm2201_vm13, %v9478_v29, %v9477_v16  ;;  %v9480_v3 = vrot.slane %v6639_v53, 7  ;;  %v9481_v21 = vrot.slane %v6576_v32, 7  ;;  %v2245_v44 = vrot.slane %v6623_v35, 1  ;;  %v3872_v25 = vld [vmem:[%s8315_s1 + $0x60] sm:$0xff]  ;;  %3215 = vrot.lane.b32.xlu1 %v3069_v36, %s3938_s21 }
 0x2b9   :  { %v2476_v55 = vsel %vm2412_vm14, %v9479_v22, %v2475_v15  ;;  %v1979_v20 = vmax.f32 %v7014_v58, %v1869_v26  ;;  %v2296_v60 = vrot.slane %v7084_v38, 1  ;;  %v3060_v23 = vmul.f32 %v3006_v54, %v6900_v2 }
 0x2ba   :  { %v2033_v59 = vsel %vm1990_vm15, %v9481_v21, %v9480_v3  ;;  %v2968_v45 = vsub.f32 %v3871_v37, %v2852_v56  ;;  %v2935_v32 = vsub.f32 %v3872_v25, %v2786_v63  ;;  %v9482_v43 = vrot.slane %v6937_v41, 6 }
 0x2bb   :  { %v9483_v57 = vrot.slane %v6951_v27, 6  ;;  %v7438_v16 = vmax.f32 %v2363_v13, %v2425_v6  ;;  %v2390_v29 = vmax.f32 %v2179_v14, %v2265_v24  ;;  %v2169_v2 = vmax.f32 %v1952_v31, %v2033_v59  ;;  %3197 = vrot.lane.b32.xlu0 %v3060_v23, %s3938_s21  ;;  %v2768_v6 = vpop.permute.xlu0 %2767  ;;  %v2822_v13 = vpop.permute.xlu1 %2821  ;;  %v3874_v23 = vld [vmem:[%s8315_s1 + $0xf0] sm:$0xff] }
 0x2bc   :  { %v2456_v54 = vrot.slane %v6623_v35, 2  ;;  %v3077_v22 = vmul.f32 %v3023_v12, %v7134_v42  ;;  %v3022_v56 = vand.u32 2147483647, %v2968_v45  ;;  %v2989_v63 = vand.u32 2147483647, %v2935_v32  ;;  %v3873_v12 = vld [vmem:[%s8315_s1 + $0x18] sm:$0xff] }
 0x2bd   :  { %v1856_v26 = vsel %vm1785_vm12, %v9483_v57, %v9482_v43  ;;  %v9484_v3 = vrot.slane %v7014_v58, 7  ;;  %v9485_v21 = vrot.slane %v7030_v10, 7  ;;  %v9486_v14 = vrot.slane %v6639_v53, 1  ;;  %v9487_v45 = vld [vmem:[#allocation46_spill] sm:$0xff] }
 0x2be   :  { %v2297_v31 = vsel %vm2201_vm13, %v2294_v40, %v2296_v60  ;;  %v1971_v36 = vmax.f32 %v6937_v41, %v1856_v26  ;;  %v3076_v10 = vmul.f32 %v3022_v56, %v7136_v47  ;;  %v2926_v59 = vsub.f32 %v3873_v12, %v2768_v6  ;;  %v9490_v56 = vld [vmem:[#allocation136_spill] sm:$0xff]  ;;  %3231 = vrot.lane.b32.xlu1 %v3077_v22, %s3938_s21 }
 0x2bf   :  { %v2084_v37 = vsel %vm1990_vm15, %v9485_v21, %v9484_v3  ;;  %v2246_v42 = vsel %vm2201_vm13, %v9486_v14, %v2245_v44  ;;  %v2281_v25 = vrot.slane %v9487_v45, 1  ;;  %v7468_v32 = vmax.f32 %v2390_v29, %v2476_v55  ;;  %v2802_v6 = vpop.permute.xlu0 %2801 }
 0x2c0   :  { %v2196_v24 = vmax.f32 %v1979_v20, %v2084_v37  ;;  %v2953_v20 = vsub.f32 %v3874_v23, %v2822_v13  ;;  %v2380_v43 = vmax.f32 %v2169_v2, %v2246_v42  ;;  %v2507_v40 = vrot.slane %v7084_v38, 2  ;;  %3229 = vrot.lane.b32.xlu0 %v3076_v10, %s3938_s21  ;;  %v2856_v13 = vpop.permute.xlu1 %2855  ;;  %v9494_v10 = vld [vmem:[#allocation135_spill] sm:$0xff] }
 0x2c1   :  { %v9488_v57 = vrot.slane %v6937_v41, 7  ;;  %v9489_v47 = vrot.slane %v6951_v27, 7  ;;  %v3043_v3 = vmul.f32 %v2989_v63, %v9490_v56  ;;  %v2980_v21 = vand.u32 2147483647, %v2926_v59  ;;  %v3875_v59 = vld [vmem:[%s8315_s1 + $0xa0] sm:$0xff]  ;;  %v9496_v56 = vld [vmem:[#allocation78_spill] sm:$0xff] }
 0x2c2   :  { %v3007_v37 = vand.u32 2147483647, %v2953_v20  ;;  %v9491_v55 = vrot.slane %v6486_v49, 6  ;;  %v9492_v29 = vrot.slane %v6509_v19, 6  ;;  %v9493_v27 = vrot.slane %v6639_v53, 2  ;;  %v3876_v20 = vld [vmem:[%s8315_s1 + $0x178] sm:$0xff] }
 0x2c3   :  { %v2069_v26 = vsel %vm1990_vm15, %v9489_v47, %v9488_v57  ;;  %v2407_v14 = vmax.f32 %v2196_v24, %v2297_v31  ;;  %v8553_v22 = vrot.slane %v9487_v45, 2  ;;  %v3034_v12 = vmul.f32 %v2980_v21, %v9494_v10  ;;  %3163 = vrot.lane.b32.xlu1 %v3043_v3, %s3938_s21  ;;  %v2840_v10 = vpop.permute.xlu0 %2839 }
 0x2c4   :  { %v1813_v2 = vsel %vm1785_vm12, %v9492_v29, %v9491_v55  ;;  %v2457_v63 = vsel %vm2412_vm14, %v9493_v27, %v2456_v54  ;;  %v2188_v42 = vmax.f32 %v1971_v36, %v2069_v26  ;;  %v2943_v23 = vsub.f32 %v3875_v59, %v2802_v6  ;;  %v9497_v55 = vld [vmem:[#allocation93_spill] sm:$0xff] }
 0x2c5   :  { %v2970_v57 = vsub.f32 %v3876_v20, %v2856_v13  ;;  %v9495_v47 = vrot.slane %v6937_v41, 1  ;;  %v7502_v31 = vmax.f32 %v2380_v43, %v2457_v63  ;;  %v2508_v36 = vsel %vm2412_vm14, %v2505_v11, %v2507_v40  ;;  %3145 = vrot.lane.b32.xlu0 %v3034_v12, %s3938_s21  ;;  %v2788_v11 = vpop.permute.xlu1 %2787  ;;  %v9502_v20 = vld [vmem:[#allocation141_spill] sm:$0xff] }
 0x2c6   :  { %v1945_v26 = vmax.f32 %v6486_v49, %v1813_v2  ;;  %v8552_v21 = vrot.slane %v9496_v56, 1  ;;  %v3061_v29 = vmul.f32 %v3007_v37, %v9497_v55  ;;  %v2997_v6 = vand.u32 2147483647, %v2943_v23 }
 0x2c7   :  { %v2282_v24 = vsel %vm2201_vm13, %v9495_v47, %v2281_v25  ;;  %v3024_v13 = vand.u32 2147483647, %v2970_v57  ;;  %v9498_v43 = vrot.slane %v6360_v50, 6  ;;  %v9499_v27 = vrot.slane %v6318_v8, 6 }
 0x2c8   :  { %v7519_v59 = vmax.f32 %v2407_v14, %v2508_v36  ;;  %v2399_v2 = vmax.f32 %v2188_v42, %v2282_v24  ;;  %v2493_v3 = vsel %vm2412_vm14, %v2490_v30, %v8553_v22  ;;  %v9500_v37 = vrot.slane %v6486_v49, 7  ;;  %v3877_v14 = vld [vmem:[%s8315_s1 + $0x138] sm:$0xff]  ;;  %v3878_v42 = vld [vmem:[%s8315_s1 + $0x68] sm:$0xff]  ;;  %3199 = vrot.lane.b32.xlu1 %v3061_v29, %s3938_s21 }
 0x2c9   :  { %v1798_v63 = vsel %vm1785_vm12, %v9499_v27, %v9498_v43  ;;  %v9501_v12 = vrot.slane %v6509_v19, 7  ;;  %v3051_v57 = vmul.f32 %v2997_v6, %v9502_v20  ;;  %v2962_v47 = vsub.f32 %v3877_v14, %v2840_v10  ;;  %v9506_v20 = vld [vmem:[#allocation130_spill] sm:$0xff]  ;;  %v2824_v14 = vpop.permute.xlu1 %2823 }
 0x2ca   :  { %v2936_v24 = vsub.f32 %v3878_v42, %v2788_v11  ;;  %v9503_v30 = vrot.slane %v6793_v39, 6  ;;  %v9504_v36 = vrot.slane %v6816_v9, 6  ;;  %v9505_v6 = vrot.slane %v6486_v49, 1 }
 0x2cb   :  { %v2020_v23 = vsel %vm1990_vm15, %v9501_v12, %v9500_v37  ;;  %v2443_v27 = vrot.slane %v9496_v56, 2  ;;  %v1936_v10 = vmax.f32 %v6360_v50, %v1798_v63  ;;  %v3078_v37 = vmul.f32 %v3024_v13, %v7170_v0  ;;  %3179 = vrot.lane.b32.xlu0 %v3051_v57, %s3938_s21  ;;  %v9509_v13 = vld [vmem:[#allocation150_spill] sm:$0xff]  ;;  %v3879_v57 = vld [vmem:[%s8315_s1 + $0x20] sm:$0xff] }
 0x2cc   :  { %v1843_v19 = vsel %vm1785_vm12, %v9504_v36, %v9503_v30  ;;  %v2162_v55 = vmax.f32 %v1945_v26, %v2020_v23  ;;  %v2233_v43 = vsel %vm2201_vm13, %v9505_v6, %v8552_v21  ;;  %v3016_v11 = vand.u32 2147483647, %v2962_v47  ;;  %v2770_v23 = vpop.permute.xlu0 %2769 }
 0x2cd   :  { %v2990_v12 = vand.u32 2147483647, %v2936_v24  ;;  %v2215_v26 = vrot.slane %v9506_v20, 1  ;;  %v7554_v42 = vmax.f32 %v2399_v2, %v2493_v3  ;;  %v9507_v30 = vrot.slane %v6360_v50, 7  ;;  %v3880_v2 = vld [vmem:[%s8315_s1 + $0xf8] sm:$0xff]  ;;  %3233 = vrot.lane.b32.xlu1 %v3078_v37, %s3938_s21 }
 0x2ce   :  { %v9508_v36 = vrot.slane %v6318_v8, 7  ;;  %v1963_v0 = vmax.f32 %v6793_v39, %v1843_v19  ;;  %v2266_v47 = vrot.slane %v9509_v13, 1  ;;  %v3070_v29 = vmul.f32 %v3016_v11, %v7184_v5 }
 0x2cf   :  { %v2927_v24 = vsub.f32 %v3879_v57, %v2770_v23  ;;  %v2954_v3 = vsub.f32 %v3880_v2, %v2824_v14  ;;  %v9510_v8 = vrot.slane %v6623_v35, 6  ;;  %v9511_v6 = vrot.slane %v6639_v53, 6  ;;  %v9515_v2 = vld [vmem:[#allocation151_spill] sm:$0xff] }
 0x2d0   :  { %v2003_v63 = vsel %vm1990_vm15, %v9508_v36, %v9507_v30  ;;  %v2373_v30 = vmax.f32 %v2162_v55, %v2233_v43  ;;  %v9512_v5 = vrot.slane %v6486_v49, 2  ;;  %v9513_v23 = vrot.slane %v6793_v39, 7  ;;  %3217 = vrot.lane.b32.xlu0 %v3070_v29, %s3938_s21 }
 0x2d1   :  { %v1826_v19 = vsel %vm1785_vm12, %v9511_v6, %v9510_v8  ;;  %v2153_v36 = vmax.f32 %v1936_v10, %v2003_v63  ;;  %v9514_v57 = vrot.slane %v6816_v9, 7  ;;  %v3044_v21 = vmul.f32 %v2990_v12, %v9515_v2  ;;  %v2804_v63 = vpop.permute.xlu0 %2803  ;;  %v2858_v8 = vpop.permute.xlu1 %2857 }
 0x2d2   :  { %v2444_v11 = vsel %vm2412_vm14, %v9512_v5, %v2443_v27  ;;  %v2981_v22 = vand.u32 2147483647, %v2927_v24  ;;  %v3008_v55 = vand.u32 2147483647, %v2954_v3  ;;  %v9516_v43 = vrot.slane %v6360_v50, 1  ;;  %v9518_v24 = vld [vmem:[#allocation50_spill] sm:$0xff] }
 0x2d3   :  { %v2054_v14 = vsel %vm1990_vm15, %v9514_v57, %v9513_v23  ;;  %v9517_v9 = vrot.slane %v6793_v39, 1  ;;  %v1953_v37 = vmax.f32 %v6623_v35, %v1826_v19  ;;  %v2247_v29 = vrot.slane %v9518_v24, 1  ;;  %v3881_v5 = vld [vmem:[%s8315_s1 + $0xa8] sm:$0xff]  ;;  %3165 = vrot.lane.b32.xlu1 %v3044_v21, %s3938_s21 }
 0x2d4   :  { %v2216_v10 = vsel %vm2201_vm13, %v9516_v43, %v2215_v26  ;;  %v2180_v6 = vmax.f32 %v1963_v0, %v2054_v14  ;;  %v3035_v3 = vmul.f32 %v2981_v22, %v7187_v7  ;;  %v2944_v23 = vsub.f32 %v3881_v5, %v2804_v63  ;;  %v3882_v0 = vld [vmem:[%s8315_s1 + $0x180] sm:$0xff] }
 0x2d5   :  { %v2267_v12 = vsel %vm2201_vm13, %v9517_v9, %v2266_v47  ;;  %v2971_v57 = vsub.f32 %v3882_v0, %v2858_v8  ;;  %v9519_v14 = vrot.slane %v7014_v58, 6  ;;  %v7612_v2 = vmax.f32 %v2373_v30, %v2444_v11  ;;  %v2842_v11 = vpop.permute.xlu0 %2841 }
 0x2d6   :  { %v2364_v43 = vmax.f32 %v2153_v36, %v2216_v10  ;;  %v2426_v7 = vrot.slane %v9506_v20, 2  ;;  %v8554_v22 = vrot.slane %v9509_v13, 2  ;;  %v3062_v63 = vmul.f32 %v3008_v55, %v7256_v1  ;;  %3147 = vrot.lane.b32.xlu0 %v3035_v3, %s3938_s21  ;;  %v2790_v36 = vpop.permute.xlu1 %2789 }
 0x2d7   :  { %v1871_v19 = vsel %vm1785_vm12, %v9519_v14, %v1870_v34  ;;  %v2998_v9 = vand.u32 2147483647, %v2944_v23  ;;  %v3025_v8 = vand.u32 2147483647, %v2971_v57  ;;  %v9520_v5 = vrot.slane %v6623_v35, 7 }
 0x2d8   :  { %v9521_v0 = vrot.slane %v6639_v53, 7  ;;  %v2391_v10 = vmax.f32 %v2180_v6, %v2267_v12  ;;  %v2248_v1 = vsel %vm2201_vm13, %v2245_v44, %v2247_v29  ;;  %v1980_v21 = vmax.f32 %v7084_v38, %v1871_v19  ;;  %v3883_v53 = vld [vmem:[%s8315_s1 + $0x140] sm:$0xff]  ;;  %v3884_v6 = vld [vmem:[%s8315_s1 + $0x70] sm:$0xff]  ;;  %3201 = vrot.lane.b32.xlu1 %v3062_v63, %s3938_s21  ;;  %v3885_v63 = vld [vmem:[%s8315_s1 + $0x28] sm:$0xff] }
 0x2d9   :  { %v3052_v55 = vmul.f32 %v2998_v9, %v7284_v17  ;;  %v2963_v3 = vsub.f32 %v3883_v53, %v2842_v11  ;;  %v2937_v12 = vsub.f32 %v3884_v6, %v2790_v36  ;;  %v9522_v44 = vrot.slane %v6360_v50, 2  ;;  %v2772_v6 = vpop.permute.xlu0 %2771 }
 0x2da   :  { %v2035_v30 = vsel %vm1990_vm15, %v9521_v0, %v9520_v5  ;;  %v2478_v17 = vsel %vm2412_vm14, %v2475_v15, %v8554_v22  ;;  %v2458_v57 = vrot.slane %v9518_v24, 2  ;;  %v9523_v19 = vrot.slane %v7084_v38, 7 }
 0x2db   :  { %v2170_v14 = vmax.f32 %v1953_v37, %v2035_v30  ;;  %v2298_v37 = vrot.slane %v7117_v18, 1  ;;  %v2427_v23 = vsel %vm2412_vm14, %v9522_v44, %v2426_v7  ;;  %v9524_v9 = vrot.slane %v7014_v58, 7  ;;  %3181 = vrot.lane.b32.xlu0 %v3052_v55, %s3938_s21  ;;  %v2826_v44 = vpop.permute.xlu1 %2825 }
 0x2dc   :  { %v3079_v0 = vmul.f32 %v3025_v8, %v7344_v52  ;;  %v3017_v30 = vand.u32 2147483647, %v2963_v3  ;;  %v2991_v11 = vand.u32 2147483647, %v2937_v12  ;;  %v9525_v36 = vrot.slane %v9487_v45, 6  ;;  %v3886_v3 = vld [vmem:[%s8315_s1 + $0x100] sm:$0xff] }
 0x2dd   :  { %v2086_v5 = vsel %vm1990_vm15, %v9524_v9, %v9523_v19  ;;  %v9526_v15 = vrot.slane %v6937_v41, 6  ;;  %v7662_v22 = vmax.f32 %v2364_v43, %v2427_v23  ;;  %v7664_v58 = vmax.f32 %v2391_v10, %v2478_v17 }
 0x2de   :  { %v2381_v19 = vmax.f32 %v2170_v14, %v2248_v1  ;;  %v2197_v52 = vmax.f32 %v1980_v21, %v2086_v5  ;;  %v3071_v8 = vmul.f32 %v3017_v30, %v7378_v33  ;;  %v2928_v55 = vsub.f32 %v3885_v63, %v2772_v6  ;;  %3235 = vrot.lane.b32.xlu1 %v3079_v0, %s3938_s21 }
 0x2df   :  { %v1858_v53 = vsel %vm1785_vm12, %v9526_v15, %v9525_v36  ;;  %v2955_v12 = vsub.f32 %v3886_v3, %v2826_v44  ;;  %v2299_v43 = vsel %vm2201_vm13, %v2296_v60, %v2298_v37  ;;  %v2459_v33 = vsel %vm2412_vm14, %v2456_v54, %v2458_v57  ;;  %v2806_v36 = vpop.permute.xlu0 %2805  ;;  %v2860_v15 = vpop.permute.xlu1 %2859 }
 0x2e0   :  { %v2509_v10 = vrot.slane %v7117_v18, 2  ;;  %v1972_v14 = vmax.f32 %v9487_v45, %v1858_v53  ;;  %v9527_v1 = vrot.slane %v9487_v45, 7  ;;  %v9528_v21 = vrot.slane %v6937_v41, 7  ;;  %3219 = vrot.lane.b32.xlu0 %v3071_v8, %s3938_s21  ;;  %v3888_v8 = vld [vmem:[%s8315_s1 + $0x188] sm:$0xff] }
 0x2e1   :  { %v3045_v17 = vmul.f32 %v2991_v11, %v7380_v62  ;;  %v2982_v9 = vand.u32 2147483647, %v2928_v55  ;;  %v3009_v60 = vand.u32 2147483647, %v2955_v12  ;;  %v9529_v54 = vrot.slane %v9496_v56, 6  ;;  %v3887_v11 = vld [vmem:[%s8315_s1 + $0xb0] sm:$0xff] }
 0x2e2   :  { %v2071_v23 = vsel %vm1990_vm15, %v9528_v21, %v9527_v1  ;;  %v9530_v5 = vrot.slane %v6486_v49, 6  ;;  %v7698_v53 = vmax.f32 %v2381_v19, %v2459_v33  ;;  %v2408_v41 = vmax.f32 %v2197_v52, %v2299_v43 }
 0x2e3   :  { %v2283_v6 = vrot.slane %v7055_v4, 1  ;;  %v2494_v62 = vrot.slane %v7055_v4, 2  ;;  %v3036_v0 = vmul.f32 %v2982_v9, %v7438_v16  ;;  %v2945_v44 = vsub.f32 %v3887_v11, %v2806_v36  ;;  %3167 = vrot.lane.b32.xlu1 %v3045_v17, %s3938_s21 }
 0x2e4   :  { %v1815_v30 = vsel %vm1785_vm12, %v9530_v5, %v9529_v54  ;;  %v2972_v63 = vsub.f32 %v3888_v8, %v2860_v15  ;;  %v9531_v19 = vrot.slane %v9506_v20, 6  ;;  %v9532_v52 = vrot.slane %v6360_v50, 6  ;;  %v2844_v5 = vpop.permute.xlu0 %2843  ;;  %v3889_v15 = vld [vmem:[%s8315_s1 + $0x148] sm:$0xff] }
 0x2e5   :  { %v2510_v16 = vsel %vm2412_vm14, %v2507_v40, %v2509_v10  ;;  %v7719_v3 = vmax.f32 %v1972_v14, %v2071_v23  ;;  %v1946_v12 = vmax.f32 %v9496_v56, %v1815_v30  ;;  %v9533_v43 = vrot.slane %v9496_v56, 7  ;;  %3149 = vrot.lane.b32.xlu0 %v3036_v0, %s3938_s21  ;;  %v2792_v30 = vpop.permute.xlu1 %2791 }
 0x2e6   :  { %v1800_v55 = vsel %vm1785_vm12, %v9532_v52, %v9531_v19  ;;  %v9534_v33 = vrot.slane %v6486_v49, 7  ;;  %v3063_v21 = vmul.f32 %v3009_v60, %v7468_v32  ;;  %v2999_v9 = vand.u32 2147483647, %v2945_v44  ;;  %v9540_v52 = vld [vmem:[#allocation76_spill] sm:$0xff] }
 0x2e7   :  { %v3026_v54 = vand.u32 2147483647, %v2972_v63  ;;  %v9535_v40 = vrot.slane %v9509_v13, 6  ;;  %v9536_v14 = vrot.slane %v6793_v39, 6  ;;  %v7735_v36 = vmax.f32 %v2408_v41, %v2510_v16  ;;  %v3890_v41 = vld [vmem:[%s8315_s1 + $0x78] sm:$0xff] }
 0x2e8   :  { %v2022_v1 = vsel %vm1990_vm15, %v9534_v33, %v9533_v43  ;;  %v2284_v49 = vsel %vm2201_vm13, %v2281_v25, %v2283_v6  ;;  %v1937_v32 = vmax.f32 %v9506_v20, %v1800_v55  ;;  %v3053_v60 = vmul.f32 %v2999_v9, %v7502_v31  ;;  %3203 = vrot.lane.b32.xlu1 %v3063_v21, %s3938_s21  ;;  %v3891_v21 = vld [vmem:[%s8315_s1 + $0x30] sm:$0xff] }
 0x2e9   :  { %v1845_v23 = vsel %vm1785_vm12, %v9536_v14, %v9535_v40  ;;  %v2964_v0 = vsub.f32 %v3889_v15, %v2844_v5  ;;  %v2938_v11 = vsub.f32 %v3890_v41, %v2792_v30  ;;  %v9537_v25 = vrot.slane %v9487_v45, 2  ;;  %v2828_v5 = vpop.permute.xlu1 %2827  ;;  %v9546_v41 = vld [vmem:[#allocation137_spill] sm:$0xff] }
 0x2ea   :  { %v1964_v17 = vmax.f32 %v9509_v13, %v1845_v23  ;;  %v2163_v8 = vmax.f32 %v1946_v12, %v2022_v1  ;;  %v9538_v63 = vrot.slane %v9506_v20, 7  ;;  %v9539_v31 = vrot.slane %v6360_v50, 7  ;;  %3183 = vrot.lane.b32.xlu0 %v3053_v60, %s3938_s21  ;;  %v2774_v23 = vpop.permute.xlu0 %2773 }
 0x2eb   :  { %v2495_v44 = vsel %vm2412_vm14, %v9537_v25, %v2494_v62  ;;  %v9541_v55 = vrot.slane %v9540_v52, 1  ;;  %v9542_v43 = vrot.slane %v9509_v13, 7  ;;  %v9543_v33 = vrot.slane %v6793_v39, 7 }
 0x2ec   :  { %v2005_v19 = vsel %vm1990_vm15, %v9539_v31, %v9538_v63  ;;  %v3080_v12 = vmul.f32 %v3026_v54, %v7519_v59  ;;  %v3018_v1 = vand.u32 2147483647, %v2964_v0  ;;  %v2992_v50 = vand.u32 2147483647, %v2938_v11  ;;  %v3892_v0 = vld [vmem:[%s8315_s1 + $0x108] sm:$0xff]  ;;  %v9549_v31 = vld [vmem:[#allocation40_spill] sm:$0xff] }
 0x2ed   :  { %v2218_v16 = vsel %vm2201_vm13, %v2215_v26, %v9541_v55  ;;  %v2056_v9 = vsel %vm1990_vm15, %v9543_v33, %v9542_v43  ;;  %v9544_v40 = vrot.slane %v9518_v24, 6  ;;  %v9545_v14 = vrot.slane %v6623_v35, 6 }
 0x2ee   :  { %v2154_v30 = vmax.f32 %v1937_v32, %v2005_v19  ;;  %v2181_v39 = vmax.f32 %v1964_v17, %v2056_v9  ;;  %v2249_v59 = vrot.slane %v9546_v41, 1  ;;  %v3072_v54 = vmul.f32 %v3018_v1, %v7554_v42  ;;  %3237 = vrot.lane.b32.xlu1 %v3080_v12, %s3938_s21 }
 0x2ef   :  { %v1828_v26 = vsel %vm1785_vm12, %v9545_v14, %v9544_v40  ;;  %v2929_v60 = vsub.f32 %v3891_v21, %v2774_v23  ;;  %v2956_v11 = vsub.f32 %v3892_v0, %v2828_v5  ;;  %v9547_v25 = vrot.slane %v9518_v24, 7  ;;  %v2862_v23 = vpop.permute.xlu1 %2861 }
 0x2f0   :  { %v1954_v15 = vmax.f32 %v9518_v24, %v1828_v26  ;;  %v9548_v32 = vrot.slane %v6623_v35, 7  ;;  %v2400_v63 = vmax.f32 %v7719_v3, %v2284_v49  ;;  %v9550_v42 = vrot.slane %v9549_v31, 1  ;;  %3221 = vrot.lane.b32.xlu0 %v3072_v54, %s3938_s21  ;;  %v9553_v49 = vld [vmem:[#allocation149_spill] sm:$0xff]  ;;  %v2808_v26 = vpop.permute.xlu0 %2807 }
 0x2f1   :  { %v9551_v19 = vrot.slane %v9496_v56, 1  ;;  %v9552_v43 = vrot.slane %v9549_v31, 2  ;;  %v3046_v1 = vmul.f32 %v2992_v50, %v7612_v2  ;;  %v2983_v35 = vand.u32 2147483647, %v2929_v60  ;;  %v3893_v50 = vld [vmem:[%s8315_s1 + $0xb8] sm:$0xff] }
 0x2f2   :  { %v2037_v17 = vsel %vm1990_vm15, %v9548_v32, %v9547_v25  ;;  %v3010_v3 = vand.u32 2147483647, %v2956_v11  ;;  %v9554_v40 = vrot.slane %v9553_v49, 1  ;;  %v2365_v21 = vmax.f32 %v2154_v30, %v2218_v16 }
 0x2f3   :  { %v2235_v55 = vsel %vm2201_vm13, %v9551_v19, %v9550_v42  ;;  %v2446_v33 = vsel %vm2412_vm14, %v2443_v27, %v9552_v43  ;;  %v2171_v9 = vmax.f32 %v1954_v15, %v2037_v17  ;;  %v2250_v2 = vsel %vm2201_vm13, %v2247_v29, %v2249_v59  ;;  %3169 = vrot.lane.b32.xlu1 %v3046_v1, %s3938_s21  ;;  %v3895_v1 = vld [vmem:[%s8315_s1 + $0x150] sm:$0xff] }
 0x2f4   :  { %v2269_v14 = vsel %vm2201_vm13, %v2266_v47, %v9554_v40  ;;  %v2374_v5 = vmax.f32 %v2163_v8, %v2235_v55  ;;  %v3037_v12 = vmul.f32 %v2983_v35, %v7662_v22  ;;  %v2946_v15 = vsub.f32 %v3893_v50, %v2808_v26  ;;  %v3894_v47 = vld [vmem:[%s8315_s1 + $0x190] sm:$0xff]  ;;  %v2846_v17 = vpop.permute.xlu0 %2845 }
 0x2f5   :  { %v2392_v27 = vmax.f32 %v2181_v39, %v2269_v14  ;;  %v2973_v8 = vsub.f32 %v3894_v47, %v2862_v23  ;;  %v9555_v16 = vrot.slane %v7117_v18, 6  ;;  %v2611_v39 = vmax.f32 %v2400_v63, %v2495_v44  ;;  %v2794_v63 = vpop.permute.xlu1 %2793 }
 0x2f6   :  { %v9556_v29 = vrot.slane %v9540_v52, 2  ;;  %v2382_v54 = vmax.f32 %v2171_v9, %v2250_v2  ;;  %v2460_v60 = vrot.slane %v9546_v41, 2  ;;  %v3064_v0 = vmul.f32 %v3010_v3, %v7664_v58  ;;  %3151 = vrot.lane.b32.xlu0 %v3037_v12, %s3938_s21 }
 0x2f7   :  { %v1873_v30 = vsel %vm1785_vm12, %v1870_v34, %v9555_v16  ;;  %v3000_v11 = vand.u32 2147483647, %v2946_v15  ;;  %v3027_v25 = vand.u32 2147483647, %v2973_v8  ;;  %v9557_v34 = vrot.slane %v7055_v4, 6 }
 0x2f8   :  { %v2429_v22 = vsel %vm2412_vm14, %v2426_v7, %v9556_v29  ;;  %v9558_v44 = vrot.slane %v9487_v45, 6  ;;  %v2585_v7 = vmax.f32 %v2374_v5, %v2446_v33  ;;  %v9559_v19 = vrot.slane %v9553_v49, 2  ;;  %v3896_v33 = vld [vmem:[%s8315_s1 + $0x80] sm:$0xff]  ;;  %3205 = vrot.lane.b32.xlu1 %v3064_v0, %s3938_s21  ;;  %v3897_v0 = vld [vmem:[%s8315_s1 + $0x38] sm:$0xff] }
 0x2f9   :  { %v2576_v42 = vmax.f32 %v2365_v21, %v2429_v22  ;;  %v9560_v58 = vrot.slane %v9509_v13, 2  ;;  %v1981_v43 = vmax.f32 %v7117_v18, %v1873_v30  ;;  %v3054_v9 = vmul.f32 %v3000_v11, %v7698_v53  ;;  %v2830_v15 = vpop.permute.xlu1 %2829 }
 0x2fa   :  { %v1860_v32 = vsel %vm1785_vm12, %v9558_v44, %v9557_v34  ;;  %v2965_v35 = vsub.f32 %v3895_v1, %v2846_v17  ;;  %v2939_v3 = vsub.f32 %v3896_v33, %v2794_v63  ;;  %v2461_v14 = vsel %vm2412_vm14, %v2458_v57, %v2460_v60  ;;  %v2776_v57 = vpop.permute.xlu0 %2775 }
 0x2fb   :  { %v2480_v55 = vsel %vm2412_vm14, %v9560_v58, %v9559_v19  ;;  %v9561_v26 = vrot.slane %v7117_v18, 7  ;;  %v9562_v53 = vrot.slane %v7084_v38, 7  ;;  %v2300_v5 = vrot.slane %v7100_v51, 1  ;;  %3185 = vrot.lane.b32.xlu0 %v3054_v9, %s3938_s21 }
 0x2fc   :  { %v2603_v40 = vmax.f32 %v2392_v27, %v2480_v55  ;;  %v1973_v21 = vmax.f32 %v7055_v4, %v1860_v32  ;;  %v3081_v2 = vmul.f32 %v3027_v25, %v7735_v36  ;;  %v3019_v12 = vand.u32 2147483647, %v2965_v35 }
 0x2fd   :  { %v2088_v23 = vsel %vm1990_vm15, %v9562_v53, %v9561_v26  ;;  %v2993_v27 = vand.u32 2147483647, %v2939_v3  ;;  %v2593_v50 = vmax.f32 %v2382_v54, %v2461_v14  ;;  %v9563_v38 = vrot.slane %v7055_v4, 7  ;;  %v2864_v33 = vpop.permute.xlu1 %2863 }
 0x2fe   :  { %v2198_v47 = vmax.f32 %v1981_v43, %v2088_v23  ;;  %v9564_v8 = vrot.slane %v9487_v45, 7  ;;  %v9565_v30 = vrot.slane %v7175_v46, 1  ;;  %v9566_v29 = vrot.slane %v9496_v56, 6  ;;  %v3898_v45 = vld [vmem:[%s8315_s1 + $0x110] sm:$0xff]  ;;  %3239 = vrot.lane.b32.xlu1 %v3081_v2, %s3938_s21  ;;  %v2810_v35 = vpop.permute.xlu0 %2809  ;;  %v3899_v23 = vld [vmem:[%s8315_s1 + $0xc0] sm:$0xff]  ;;  %v3900_v2 = vld [vmem:[%s8315_s1 + $0x198] sm:$0xff] }
 0x2ff   :  { %v3073_v54 = vmul.f32 %v3019_v12, %v2611_v39  ;;  %v2930_v11 = vsub.f32 %v3897_v0, %v2776_v57  ;;  %v2957_v25 = vsub.f32 %v3898_v45, %v2830_v15  ;;  %v9567_v34 = vrot.slane %v9549_v31, 7 }
 0x300   :  { %v2073_v16 = vsel %vm1990_vm15, %v9564_v8, %v9563_v38  ;;  %v2286_v36 = vsel %vm2201_vm13, %v2283_v6, %v9565_v30  ;;  %v1947_v22 = vmax.f32 %v9549_v31, %v9566_v29  ;;  %v9568_v44 = vrot.slane %v9496_v56, 7  ;;  %v9577_v8 = vld [vmem:[#allocation132_spill] sm:$0xff] }
 0x301   :  { %v2301_v39 = vsel %vm2201_vm13, %v2298_v37, %v2300_v5  ;;  %v2511_v32 = vrot.slane %v7100_v51, 2  ;;  %v2190_v17 = vmax.f32 %v1973_v21, %v2073_v16  ;;  %v9569_v63 = vrot.slane %v9540_v52, 7  ;;  %3223 = vrot.lane.b32.xlu0 %v3073_v54, %s3938_s21  ;;  %v2796_v45 = vpop.permute.xlu1 %2795 }
 0x302   :  { %v2024_v6 = vsel %vm1990_vm15, %v9568_v44, %v9567_v34  ;;  %v9570_v19 = vrot.slane %v9506_v20, 7  ;;  %v3047_v55 = vmul.f32 %v2993_v27, %v2585_v7  ;;  %v2984_v43 = vand.u32 2147483647, %v2930_v11 }
 0x303   :  { %v3011_v56 = vand.u32 2147483647, %v2957_v25  ;;  %v9571_v9 = vrot.slane %v9546_v41, 6  ;;  %v9572_v37 = vrot.slane %v9518_v24, 6  ;;  %v2409_v3 = vmax.f32 %v2198_v47, %v2301_v39 }
 0x304   :  { %v2007_v58 = vsel %vm1990_vm15, %v9570_v19, %v9569_v63  ;;  %v2401_v14 = vmax.f32 %v2190_v17, %v2286_v36  ;;  %v2164_v20 = vmax.f32 %v1947_v22, %v2024_v6  ;;  %v9573_v26 = vrot.slane %v9509_v13, 6  ;;  %3171 = vrot.lane.b32.xlu1 %v3047_v55, %s3938_s21  ;;  %v3901_v6 = vld [vmem:[%s8315_s1 + $0x158] sm:$0xff]  ;;  %v3902_v17 = vld [vmem:[%s8315_s1 + $0x88] sm:$0xf] }
 0x305   :  { %v1830_v1 = vsel %vm1785_vm12, %v9572_v37, %v9571_v9  ;;  %v3038_v53 = vmul.f32 %v2984_v43, %v2576_v42  ;;  %v2947_v21 = vsub.f32 %v3899_v23, %v2810_v35  ;;  %v2974_v12 = vsub.f32 %v3900_v2, %v2864_v33  ;;  %v9584_v9 = vld [vmem:[#allocation138_spill] sm:$0xff] }
 0x306   :  { %v1965_v7 = vmax.f32 %v9553_v49, %v9573_v26  ;;  %v9574_v27 = vrot.slane %v9553_v49, 7  ;;  %v9575_v57 = vrot.slane %v9509_v13, 7  ;;  %v2512_v42 = vsel %vm2412_vm14, %v2509_v10, %v2511_v32 }
 0x307   :  { %v9576_v47 = vrot.slane %v7175_v46, 2  ;;  %v2155_v16 = vmax.f32 %v9577_v8, %v2007_v58  ;;  %v1955_v30 = vmax.f32 %v9546_v41, %v1830_v1  ;;  %v3065_v36 = vmul.f32 %v3011_v56, %v2603_v40  ;;  %3153 = vrot.lane.b32.xlu0 %v3038_v53, %s3938_s21 }
 0x308   :  { %v2058_v15 = vsel %vm1990_vm15, %v9575_v57, %v9574_v27  ;;  %v3001_v13 = vand.u32 2147483647, %v2947_v21  ;;  %v3028_v29 = vand.u32 2147483647, %v2974_v12  ;;  %v9578_v22 = vrot.slane %v7100_v51, 6  ;;  %v2832_v21 = vpop.permute.xlu1 %2831 }
 0x309   :  { %v2497_v38 = vsel %vm2412_vm14, %v2494_v62, %v9576_v47  ;;  %v9579_v10 = vrot.slane %v7117_v18, 6  ;;  %v2620_v0 = vmax.f32 %v2409_v3, %v2512_v42  ;;  %v2848_v62 = vpop.permute.xlu0 %2847  ;;  %v9580_v25 = vrot.slane %v9549_v31, 1  ;;  %3207 = vrot.lane.b32.xlu1 %v3065_v36, %s3938_s21 }
 0x30a   :  { %v2612_v11 = vmax.f32 %v2401_v14, %v2497_v38  ;;  %v2182_v40 = vmax.f32 %v1965_v7, %v2058_v15  ;;  %v3055_v44 = vmul.f32 %v3001_v13, %v2593_v50  ;;  %v2966_v39 = vsub.f32 %v3901_v6, %v2848_v62 }
 0x30b   :  { %v1875_v54 = vsel %vm1785_vm12, %v9579_v10, %v9578_v22  ;;  %v2375_v34 = vmax.f32 %v2164_v20, %v9580_v25  ;;  %v2940_v63 = vsub.f32 %v3902_v17, %v2796_v45  ;;  %v9581_v19 = vrot.slane %v9546_v41, 7 }
 0x30c   :  { %v9582_v58 = vrot.slane %v9518_v24, 7  ;;  %v9583_v43 = vrot.slane %v9540_v52, 1  ;;  %v9585_v37 = vrot.slane %v9584_v9, 1  ;;  %v1982_v35 = vmax.f32 %v7100_v51, %v1875_v54  ;;  %3187 = vrot.lane.b32.xlu0 %v3055_v44, %s3938_s21 }
 0x30d   :  { %v3082_v33 = vmul.f32 %v3028_v29, %v2620_v0  ;;  %v3020_v3 = vand.u32 2147483647, %v2966_v39  ;;  %v2994_v24 = vand.u32 2147483647, %v2940_v63  ;;  %v9586_v14 = vrot.slane %v7175_v46, 7  ;;  %v2778_v23 = vpop.permute.xlu0 %2777 }
 0x30e   :  { %v2039_v55 = vsel %vm1990_vm15, %v9582_v58, %v9581_v19  ;;  %v2366_v56 = vmax.f32 %v2155_v16, %v9583_v43  ;;  %v2252_v1 = vsel %vm2201_vm13, %v2249_v59, %v9585_v37  ;;  %v9587_v20 = vrot.slane %v7055_v4, 7  ;;  %v3903_v4 = vld [vmem:[%s8315_s1 + $0x40] sm:$0xf] }
 0x30f   :  { %v2172_v50 = vmax.f32 %v1955_v30, %v2039_v55  ;;  %v2513_v7 = vrot.slane %v7276_v48, 2  ;;  %v9588_v53 = vrot.slane %v9549_v31, 2  ;;  %v9589_v2 = vrot.slane %v9553_v49, 1  ;;  %v3904_v31 = vld [vmem:[%s8315_s1 + $0x118] sm:$0xf]  ;;  %3241 = vrot.lane.b32.xlu1 %v3082_v33, %s3938_s21 }
 0x310   :  { %v2075_v26 = vsel %vm1990_vm15, %v9587_v20, %v9586_v14  ;;  %v9590_v27 = vrot.slane %v7100_v51, 7  ;;  %v9591_v57 = vrot.slane %v7117_v18, 7  ;;  %v3074_v42 = vmul.f32 %v3020_v3, %v2612_v11  ;;  %v3907_v51 = vld [vmem:[%s8315_s1 + $0x160] sm:$0xf] }
 0x311   :  { %v2586_v59 = vmax.f32 %v2375_v34, %v9588_v53  ;;  %v2393_v12 = vmax.f32 %v2182_v40, %v9589_v2  ;;  %v2931_v47 = vsub.f32 %v3903_v4, %v2778_v23  ;;  %v2958_v38 = vsub.f32 %v3904_v31, %v2832_v21  ;;  %v2812_v34 = vpop.permute.xlu0 %2811  ;;  %v2866_v40 = vpop.permute.xlu1 %2865  ;;  %v3908_v53 = vld [vmem:[%s8315_s1 + $0x1a8] sm:$0xf] }
 0x312   :  { %v2090_v15 = vsel %vm1990_vm15, %v9591_v57, %v9590_v27  ;;  %v9592_v8 = vrot.slane %v7276_v48, 1  ;;  %v2383_v18 = vmax.f32 %v2172_v50, %v2252_v1  ;;  %v2191_v36 = vmax.f32 %v7215_v61, %v2075_v26  ;;  %3225 = vrot.lane.b32.xlu0 %v3074_v42, %s3938_s21 }
 0x313   :  { %v2199_v30 = vmax.f32 %v1982_v35, %v2090_v15  ;;  %v9593_v13 = vrot.slane %v7276_v48, 7  ;;  %v9594_v29 = vmov %v9590_v27  ;;  %v3048_v10 = vmul.f32 %v2994_v24, %v2586_v59  ;;  %v9601_v35 = vld [vmem:[#allocation143_spill] sm:$0xff] }
 0x314   :  { %v2303_v16 = vsel %vm2201_vm13, %v2300_v5, %v9592_v8  ;;  %v9595_v54 = vrot.slane %v9540_v52, 2  ;;  %v2985_v11 = vand.u32 2147483647, %v2931_v47  ;;  %v3012_v5 = vand.u32 2147483647, %v2958_v38 }
 0x315   :  { %v2092_v22 = vsel %vm1990_vm15, %v9594_v29, %v9593_v13  ;;  %v9596_v62 = vrot.slane %v9553_v49, 2  ;;  %v9597_v61 = vrot.slane %v9584_v9, 2  ;;  %v2410_v44 = vmax.f32 %v2199_v30, %v2303_v16  ;;  %v3905_v49 = vld [vmem:[%s8315_s1 + $0xc8] sm:$0xff]  ;;  %3173 = vrot.lane.b32.xlu1 %v3048_v10, %s3938_s21  ;;  %v2850_v24 = vpop.permute.xlu0 %2849  ;;  %v3909_v47 = vld [vmem:[%s8315_s1 + $0xd0] sm:$0xf] }
 0x316   :  { %v2577_v0 = vmax.f32 %v2366_v56, %v9595_v54  ;;  %v9598_v52 = vrot.slane %v9584_v9, 7  ;;  %v9599_v6 = vmov %v9581_v19  ;;  %v2948_v63 = vsub.f32 %v3905_v49, %v2812_v34  ;;  %v3906_v19 = vld [vmem:[%s8315_s1 + $0x1a0] sm:$0xff]  ;;  %s3939_s1 = smov [#allocation2]  }
 0x317   :  { %v2604_v45 = vmax.f32 %v2393_v12, %v9596_v62  ;;  %v2463_v25 = vsel %vm2412_vm14, %v2460_v60, %v9597_v61  ;;  %v2975_v60 = vsub.f32 %v3906_v19, %v2866_v40  ;;  %v2200_v58 = vmax.f32 %v7320_v28, %v2092_v22  ;;  %v2868_v28 = vpop.permute.xlu1 %2867 }
 0x318   :  { %v2041_v39 = vsel %vm1990_vm15, %v9599_v6, %v9598_v52  ;;  %v3039_v17 = vmul.f32 %v2985_v11, %v2577_v0  ;;  %v2594_v55 = vmax.f32 %v2383_v18, %v2463_v25  ;;  %v2514_v41 = vsel %vm2412_vm14, %v2511_v32, %v2513_v7 }
 0x319   :  { %v9600_v43 = vrot.slane %v7175_v46, 1  ;;  %v3066_v50 = vmul.f32 %v3012_v5, %v2604_v45  ;;  %v3002_v37 = vand.u32 2147483647, %v2948_v63  ;;  %v3029_v1 = vand.u32 2147483647, %v2975_v60  ;;  %v2814_v48 = vpop.permute.xlu0 %2813 }
 0x31a   :  { %3155 = vrot.lane.b32.xlu0 %v3039_v17, %s3938_s21  ;;  %v2173_v33 = vmax.f32 %v9601_v35, %v2041_v39  ;;  %v2621_v3 = vmax.f32 %v2410_v44, %v2514_v41  ;;  %v2967_v32 = vsub.f32 %v3907_v51, %v2850_v24  ;;  %v9602_v20 = vmov %v9592_v8 }
 0x31b   :  { %v2402_v56 = vmax.f32 %v2191_v36, %v9600_v43  ;;  %v3056_v14 = vmul.f32 %v3002_v37, %v2594_v55  ;;  %v2411_v26 = vmax.f32 %v2200_v58, %v9602_v20  ;;  %v2976_v59 = vsub.f32 %v3908_v53, %v2868_v28  ;;  %3209 = vrot.lane.b32.xlu1 %v3066_v50, %s3938_s21  ;;  %v3142_v30 = vpop.permute.xlu1 %3141 }
 0x31c   :  { %v9603_v23 = vrot.slane %v7175_v46, 2  ;;  %v3083_v2 = vmul.f32 %v3029_v1, %v2621_v3  ;;  %v3021_v12 = vand.u32 2147483647, %v2967_v32  ;;  %v9604_v57 = vrot.slane %v9584_v9, 1 }
 0x31d   :  { %v3030_v27 = vand.u32 2147483647, %v2976_v59  ;;  %v2622_v4 = vmax.f32 %v2411_v26, %v2513_v7  ;;  %v2949_v31 = vsub.f32 %v3909_v47, %v2814_v48  ;;  %v9605_v38 = vmov %v9597_v61  ;;  %v3140_v7 = vpop.permute.xlu0 %3139 }
 0x31e   :  { %v2613_v21 = vmax.f32 %v2402_v56, %v9603_v23  ;;  %3189 = vrot.lane.b32.xlu0 %v3056_v14, %s3938_s21  ;;  %v2384_v15 = vmax.f32 %v2173_v33, %v9604_v57  ;;  %v3302_v62 = vsel %vm3301_vm0, %v3140_v7, 0.0  ;;  %v3306_v34 = vsel %vm3305_vm1, %v3142_v30, 0.0 }
 0x31f   :  { %v3084_v46 = vmul.f32 %v3030_v27, %v2622_v4  ;;  %v3003_v16 = vand.u32 2147483647, %v2949_v31  ;;  %3243 = vrot.lane.b32.xlu1 %v3083_v2, %s3938_s21  ;;  %v3160_v13 = vpop.permute.xlu1 %3159  ;;  %vm3805_vm12 = vcmask 1042434   ;;  %vm3811_vm13 = vcmask 518144  }
 0x320   :  { %v3075_v42 = vmul.f32 %v3021_v12, %v2613_v21  ;;  %v2595_v8 = vmax.f32 %v2384_v15, %v9605_v38  ;;  %v3334_v52 = vsel %vm3305_vm1, %v3160_v13, 0.0  ;;  %vm3830_vm14 = vcmask 17408  }
 0x321   :  { %v3158_v36 = vpop.permute.xlu0 %3157 }
 0x322   :  { %3227 = vrot.lane.b32.xlu0 %v3075_v42, %s3938_s21  ;;  %v3057_v18 = vmul.f32 %v3003_v16, %v2595_v8  ;;  %v3331_v25 = vsel %vm3301_vm0, %v3158_v36, 0.0 }
 0x323   :  { %3245 = vrot.lane.b32.xlu1 %v3084_v46, %s3938_s21  ;;  %v3196_v22 = vpop.permute.xlu1 %3195 }
 0x324   :  { %v3388_v49 = vsel %vm3305_vm1, %v3196_v22, 0.0 }
 0x325   :  { %v3194_v29 = vpop.permute.xlu0 %3193 }
 0x326   :  { %3191 = vrot.lane.b32.xlu0 %v3057_v18, %s3938_s21  ;;  %v3385_v6 = vsel %vm3301_vm0, %v3194_v29, 0.0  ;;  %s3842_s21 = sshll.u32 %s3939_s1, 4  ;;  %s3843_s21 = int_to_ptr.vmem [resolvable:$true] %s3842_s21 }
 0x327   :  { %v3214_v54 = vpop.permute.xlu1 %3213  ;;  %s3910_s9 = scalar_lea.vmem %s3843_s21, 32  ;;  %p3915_p1 = scmp.lt.s32.totalorder %s3843_s21, %s3843_s21 }
 0x328   :  { %v3415_v58 = vsel %vm3305_vm1, %v3214_v54, 0.0  ;;  %p3911_p0 = scmp.ne.s32.totalorder %s3843_s21, %s3910_s9  ;;  %p3916_p2 = scmp.lt.s32.totalorder %s3910_s9, %s3910_s9 }
 0x329   :  { %v3212_v10 = vpop.permute.xlu0 %3211 }
 0x32a   :  { %v3412_v63 = vsel %vm3301_vm0, %v3212_v10, 0.0  ;;  %p3917_p3 = por %p3916_p2, %p3915_p1 }
 0x32b   :  { %v3162_v9 = vpop.permute.xlu1 %3161 }
 0x32c   :  { %v3337_v56 = vsel %vm3305_vm1, %v3162_v9, 0.0  ;;  %p3918_p4 = pnand %p3917_p3, %p3911_p0 }
 0x32d   :  { %v3144_v0 = vpop.permute.xlu0 %3143 }
 0x32e   :  { %v3309_v55 = vsel %vm3305_vm1, %v3144_v0, 0.0 }
 0x32f   :  { %v3178_v11 = vpop.permute.xlu1 %3177 }
 0x330   :  { %v3361_v35 = vsel %vm3305_vm1, %v3178_v11, 0.0 }
 0x331   :  { %v3176_v5 = vpop.permute.xlu0 %3175 }
 0x332   :  { %v3358_v50 = vsel %vm3301_vm0, %v3176_v5, 0.0 }
 0x333   :  { %v3216_v45 = vpop.permute.xlu1 %3215 }
 0x334   :  { %v3418_v3 = vsel %vm3305_vm1, %v3216_v45, 0.0 }
 0x335   :  { %v3198_v61 = vpop.permute.xlu0 %3197 }
 0x336   :  { %v3391_v33 = vsel %vm3305_vm1, %v3198_v61, 0.0 }
 0x337   :  { %v3232_v40 = vpop.permute.xlu1 %3231 }
 0x338   :  { %v3442_v51 = vsel %vm3305_vm1, %v3232_v40, 0.0 }
 0x339   :  { %v3230_v44 = vpop.permute.xlu0 %3229 }
 0x33a   :  { %v3439_v14 = vsel %vm3301_vm0, %v3230_v44, 0.0 }
 0x33b   :  { %v3164_v39 = vpop.permute.xlu1 %3163 }
 0x33c   :  { %v3340_v53 = vsel %vm3305_vm1, %v3164_v39, 0.0 }
 0x33d   :  { %v3146_v17 = vpop.permute.xlu0 %3145 }
 0x33e   :  { %v3312_v26 = vsel %vm3305_vm1, %v3146_v17, 0.0 }
 0x33f   :  { %v3200_v19 = vpop.permute.xlu1 %3199 }
 0x340   :  { %v3394_v2 = vsel %vm3305_vm1, %v3200_v19, 0.0 }
 0x341   :  { %v3180_v60 = vpop.permute.xlu0 %3179 }
 0x342   :  { %v3364_v21 = vsel %vm3305_vm1, %v3180_v60, 0.0 }
 0x343   :  { %v3234_v41 = vpop.permute.xlu1 %3233 }
 0x344   :  { %v3445_v15 = vsel %vm3305_vm1, %v3234_v41, 0.0 }
 0x345   :  { %3303 = vadd.xlane.f32.xlu0 %v3302_v62  ;;  %v3218_v43 = vpop.permute.xlu0 %3217 }
 0x346   :  { %v3421_v57 = vsel %vm3305_vm1, %v3218_v43, 0.0 }
 0x347   :  { %3307 = vadd.xlane.f32.xlu1 %v3306_v34  ;;  %v3166_v37 = vpop.permute.xlu1 %3165 }
 0x348   :  { %v3343_v47 = vsel %vm3305_vm1, %v3166_v37, 0.0 }
 0x349   :  { %3332 = vadd.xlane.f32.xlu0 %v3331_v25  ;;  %v3148_v1 = vpop.permute.xlu0 %3147 }
 0x34a   :  { %v3315_v42 = vsel %vm3305_vm1, %v3148_v1, 0.0 }
 0x34b   :  { %3386 = vadd.xlane.f32.xlu1 %v3385_v6  ;;  %v3202_v24 = vpop.permute.xlu1 %3201 }
 0x34c   :  { %v3397_v8 = vsel %vm3305_vm1, %v3202_v24, 0.0 }
 0x34d   :  { %3335 = vadd.xlane.f32.xlu0 %v3334_v52  ;;  %v3182_v28 = vpop.permute.xlu0 %3181 }
 0x34e   :  { %v3367_v46 = vsel %vm3305_vm1, %v3182_v28, 0.0 }
 0x34f   :  { %3413 = vadd.xlane.f32.xlu1 %v3412_v63 }
 0x350   :  { %v3236_v32 = vpop.permute.xlu1 %3235 }
 0x351   :  { %3389 = vadd.xlane.f32.xlu0 %v3388_v49  ;;  %v3448_v7 = vsel %vm3305_vm1, %v3236_v32, 0.0 }
 0x352   :  { %v3220_v20 = vpop.permute.xlu0 %3219 }
 0x353   :  { %3310 = vadd.xlane.f32.xlu1 %v3309_v55  ;;  %v3424_v16 = vsel %vm3305_vm1, %v3220_v20, 0.0 }
 0x355   :  { %3416 = vadd.xlane.f32.xlu0 %v3415_v58  ;;  %v3168_v59 = vpop.permute.xlu1 %3167 }
 0x356   :  { %v3346_v13 = vsel %vm3305_vm1, %v3168_v59, 0.0 }
 0x357   :  { %3359 = vadd.xlane.f32.xlu1 %v3358_v50  ;;  %v3150_v23 = vpop.permute.xlu0 %3149 }
 0x358   :  { %v3318_v30 = vsel %vm3305_vm1, %v3150_v23, 0.0 }
 0x359   :  { %3338 = vadd.xlane.f32.xlu0 %v3337_v56 }
 0x35a   :  { %v3204_v12 = vpop.permute.xlu1 %3203 }
 0x35b   :  { %3392 = vadd.xlane.f32.xlu1 %v3391_v33  ;;  %v3400_v54 = vsel %vm3305_vm1, %v3204_v12, 0.0 }
 0x35c   :  { %v3184_v27 = vpop.permute.xlu0 %3183 }
 0x35d   :  { %3362 = vadd.xlane.f32.xlu0 %v3361_v35  ;;  %v3370_v22 = vsel %vm3305_vm1, %v3184_v27, 0.0 }
 0x35f   :  { %3440 = vadd.xlane.f32.xlu1 %v3439_v14 }
 0x360   :  { %v3238_v4 = vpop.permute.xlu1 %3237 }
 0x361   :  { %3419 = vadd.xlane.f32.xlu0 %v3418_v3  ;;  %v3451_v11 = vsel %vm3305_vm1, %v3238_v4, 0.0 }
 0x362   :  { %v3222_v48 = vpop.permute.xlu0 %3221 }
 0x363   :  { %3313 = vadd.xlane.f32.xlu1 %v3312_v26  ;;  %v3427_v9 = vsel %vm3305_vm1, %v3222_v48, 0.0  ;;  %v3520_v26 = vlaneseq }
 0x365   :  { %3443 = vadd.xlane.f32.xlu0 %v3442_v51  ;;  %v3170_v38 = vpop.permute.xlu1 %3169  ;;  %v8112_v23 = vshrl.u32 %v3520_v26, 7 }
 0x366   :  { %v3349_v45 = vsel %vm3305_vm1, %v3170_v38, 0.0 }
 0x367   :  { %3365 = vadd.xlane.f32.xlu1 %v3364_v21 }
 0x368   :  { %v3152_v31 = vpop.permute.xlu0 %3151 }
 0x369   :  { %3341 = vadd.xlane.f32.xlu0 %v3340_v53  ;;  %v3321_v5 = vsel %vm3305_vm1, %v3152_v31, 0.0  ;;  %v8109_v53 = vand.u32 127, %v3520_v26 }
 0x36a   :  { %v3206_v36 = vpop.permute.xlu1 %3205 }
 0x36b   :  { %3422 = vadd.xlane.f32.xlu1 %v3421_v57  ;;  %v3403_v40 = vsel %vm3305_vm1, %v3206_v36, 0.0  ;;  %v3522_v59 = vadd.s32 2, %v8109_v53  ;;  %v3527_v21 = vadd.s32 4294967290, %v8109_v53 }
 0x36d   :  { %3395 = vadd.xlane.f32.xlu0 %v3394_v2  ;;  %v3186_v18 = vpop.permute.xlu0 %3185  ;;  %v3525_v12 = vsub.s32 %v3522_v59, %v8112_v23  ;;  %v3530_v27 = vsub.s32 %v3527_v21, %v8112_v23 }
 0x36e   :  { %v3373_v25 = vsel %vm3305_vm1, %v3186_v18, 0.0 }
 0x36f   :  { %3316 = vadd.xlane.f32.xlu1 %v3315_v42 }
 0x370   :  { %v3240_v10 = vpop.permute.xlu1 %3239 }
 0x371   :  { %3446 = vadd.xlane.f32.xlu0 %v3445_v15  ;;  %v3454_v6 = vsel %vm3305_vm1, %v3240_v10, 0.0 }
 0x373   :  { %3368 = vadd.xlane.f32.xlu1 %v3367_v46  ;;  %v3224_v29 = vpop.permute.xlu0 %3223 }
 0x374   :  { %v3430_v44 = vsel %vm3305_vm1, %v3224_v29, 0.0 }
 0x375   :  { %3344 = vadd.xlane.f32.xlu0 %v3343_v47 }
 0x376   :  { %v3172_v62 = vpop.permute.xlu1 %3171 }
 0x377   :  { %3425 = vadd.xlane.f32.xlu1 %v3424_v16  ;;  %v3352_v49 = vsel %vm3305_vm1, %v3172_v62, 0.0 }
 0x379   :  { %3398 = vadd.xlane.f32.xlu0 %v3397_v8  ;;  %v3154_v0 = vpop.permute.xlu0 %3153  ;;  %v3534_v8 = vadd.s32 4294967282, %v8109_v53 }
 0x37a   :  { %v3324_v39 = vsel %vm3305_vm1, %v3154_v0, 0.0 }
 0x37b   :  { %3319 = vadd.xlane.f32.xlu1 %v3318_v30  ;;  %v3208_v34 = vpop.permute.xlu1 %3207 }
 0x37c   :  { %v3406_v58 = vsel %vm3305_vm1, %v3208_v34, 0.0 }
 0x37d   :  { %3449 = vadd.xlane.f32.xlu0 %v3448_v7 }
 0x37e   :  { %v3188_v61 = vpop.permute.xlu0 %3187 }
 0x37f   :  { %3371 = vadd.xlane.f32.xlu1 %v3370_v22  ;;  %v3376_v19 = vsel %vm3305_vm1, %v3188_v61, 0.0 }
 0x381   :  { %3347 = vadd.xlane.f32.xlu0 %v3346_v13  ;;  %v3242_v17 = vpop.permute.xlu1 %3241  ;;  %v8121_v13 = vsub.s32 %v3534_v8, %v8112_v23 }
 0x382   :  { %v3457_v43 = vsel %vm3305_vm1, %v3242_v17, 0.0 }
 0x383   :  { %3428 = vadd.xlane.f32.xlu1 %v3427_v9 }
 0x384   :  { %v3226_v52 = vpop.permute.xlu0 %3225 }
 0x385   :  { %3401 = vadd.xlane.f32.xlu0 %v3400_v54  ;;  %v3433_v55 = vsel %vm3305_vm1, %v3226_v52, 0.0 }
 0x387   :  { %3322 = vadd.xlane.f32.xlu1 %v3321_v5  ;;  %v3174_v60 = vpop.permute.xlu1 %3173 }
 0x388   :  { %v3355_v37 = vsel %vm3327_vm2, %v3174_v60, 0.0 }
 0x389   :  { %3452 = vadd.xlane.f32.xlu0 %v3451_v11 }
 0x38b   :  { %3374 = vadd.xlane.f32.xlu1 %v3373_v25 }
 0x38c   :  { %v3156_v63 = vpop.permute.xlu0 %3155 }
 0x38d   :  { %3350 = vadd.xlane.f32.xlu0 %v3349_v45  ;;  %v3328_v56 = vsel %vm3327_vm2, %v3156_v63, 0.0  ;;  %v3210_v50 = vpop.permute.xlu1 %3209 }
 0x38e   :  { %v3409_v3 = vsel %vm3327_vm2, %v3210_v50, 0.0 }
 0x38f   :  { %3431 = vadd.xlane.f32.xlu1 %v3430_v44 }
 0x390   :  { %v3190_v41 = vpop.permute.xlu0 %3189 }
 0x391   :  { %3404 = vadd.xlane.f32.xlu0 %v3403_v40  ;;  %v3379_v35 = vsel %vm3305_vm1, %v3190_v41, 0.0  ;;  %v3244_v33 = vpop.permute.xlu1 %3243 }
 0x392   :  { %v3460_v14 = vsel %vm3305_vm1, %v3244_v33, 0.0 }
 0x393   :  { %3325 = vadd.xlane.f32.xlu1 %v3324_v39  ;;  %v3541_v39 = vadd.s32 4294967274, %v8109_v53 }
 0x394   :  { %v3228_v1 = vpop.permute.xlu0 %3227 }
 0x395   :  { %3455 = vadd.xlane.f32.xlu0 %v3454_v6  ;;  %v3436_v24 = vsel %vm3327_vm2, %v3228_v1, 0.0  ;;  %v3246_v51 = vpop.permute.xlu1 %3245 }
 0x396   :  { %v3463_v20 = vsel %vm3327_vm2, %v3246_v51, 0.0 }
 0x397   :  { %3377 = vadd.xlane.f32.xlu1 %v3376_v19 }
 0x398   :  { %v3192_v28 = vpop.permute.xlu0 %3191 }
 0x399   :  { %3353 = vadd.xlane.f32.xlu0 %v3352_v49  ;;  %v3382_v32 = vsel %vm3327_vm2, %v3192_v28, 0.0 }
 0x39b   :  { %3434 = vadd.xlane.f32.xlu1 %v3433_v55 }
 0x39d   :  { %3407 = vadd.xlane.f32.xlu0 %v3406_v58  ;;  %v8141_v58 = vsub.s32 %v3541_v39, %v8112_v23 }
 0x39f   :  { %3329 = vadd.xlane.f32.xlu1 %v3328_v56 }
 0x3a1   :  { %3458 = vadd.xlane.f32.xlu0 %v3457_v43 }
 0x3a3   :  { %3380 = vadd.xlane.f32.xlu1 %v3379_v35 }
 0x3a5   :  { %3356 = vadd.xlane.f32.xlu0 %v3355_v37 }
 0x3a7   :  { %3437 = vadd.xlane.f32.xlu1 %v3436_v24 }
 0x3a9   :  { %3410 = vadd.xlane.f32.xlu0 %v3409_v3 }
 0x3ab   :  { %3383 = vadd.xlane.f32.xlu1 %v3382_v32 }
 0x3ad   :  { %3461 = vadd.xlane.f32.xlu0 %v3460_v14 }
 0x3b1   :  { %3464 = vadd.xlane.f32.xlu0 %v3463_v20 }
 0x3d2   :  { %v3304_v2 = vpop.xlane.xlu0 %3303 }
 0x3d3   :  { %v3526_v48 = vrot.slane %v3304_v2, %v3525_v12 }
 0x3d4   :  { %v3308_v15 = vpop.xlane.xlu1 %3307 }
 0x3d5   :  { %v3531_v42 = vrot.slane %v3308_v15, %v3530_v27 }
 0x3d6   :  { %v3333_v57 = vpop.xlane.xlu0 %3332 }
 0x3d7   :  { %v3533_v4 = vsel %vm3532_vm3, %v3531_v42, %v3526_v48  ;;  %v3586_v31 = vrot.slane %v3333_v57, %v3525_v12 }
 0x3d8   :  { %v3387_v38 = vpop.xlane.xlu1 %3386 }
 0x3d9   :  { %v3674_v7 = vrot.slane %v3387_v38, %v3525_v12 }
 0x3da   :  { %v3336_v47 = vpop.xlane.xlu0 %3335 }
 0x3db   :  { %v3590_v46 = vrot.slane %v3336_v47, %v3530_v27 }
 0x3dc   :  { %v3414_v36 = vpop.xlane.xlu1 %3413 }
 0x3dd   :  { %v3591_v16 = vsel %vm3532_vm3, %v3590_v46, %v3586_v31  ;;  %v3718_v10 = vrot.slane %v3414_v36, %v3525_v12  ;;  %v3569_v36 = vadd.s32 4294967242, %v8109_v53 }
 0x3de   :  { %v3390_v18 = vpop.xlane.xlu0 %3389 }
 0x3df   :  { %v3678_v30 = vrot.slane %v3390_v18, %v3530_v27  ;;  %v3555_v18 = vadd.s32 4294967258, %v8109_v53 }
 0x3e0   :  { %v3311_v9 = vpop.xlane.xlu1 %3310 }
 0x3e1   :  { %v3679_v29 = vsel %vm3532_vm3, %v3678_v30, %v3674_v7  ;;  %v3538_v0 = vrot.slane %v3311_v9, %v8121_v13  ;;  %v3562_v30 = vadd.s32 4294967250, %v8109_v53 }
 0x3e2   :  { %v3417_v22 = vpop.xlane.xlu0 %3416 }
 0x3e3   :  { %v3722_v54 = vrot.slane %v3417_v22, %v3530_v27  ;;  %v3540_v5 = vsel %vm3539_vm4, %v3538_v0, %v3533_v4 }
 0x3e4   :  { %v3360_v61 = vpop.xlane.xlu1 %3359 }
 0x3e5   :  { %v3723_v11 = vsel %vm3532_vm3, %v3722_v54, %v3718_v10  ;;  %v3630_v40 = vrot.slane %v3360_v61, %v3525_v12  ;;  %v3576_v10 = vadd.s32 4294967234, %v8109_v53  ;;  %v8198_v61 = vsub.s32 %v3569_v36, %v8112_v23 }
 0x3e6   :  { %v3339_v62 = vpop.xlane.xlu0 %3338 }
 0x3e7   :  { %v3595_v45 = vrot.slane %v3339_v62, %v8121_v13 }
 0x3e8   :  { %v3393_v52 = vpop.xlane.xlu1 %3392 }
 0x3e9   :  { %v8129_v25 = vsel %vm3539_vm4, %v3595_v45, %v3591_v16  ;;  %v3683_v6 = vrot.slane %v3393_v52, %v8121_v13  ;;  %v3548_v16 = vadd.s32 4294967266, %v8109_v53  ;;  %v8195_v45 = vsub.s32 %v3562_v30, %v8112_v23 }
 0x3ea   :  { %v3363_v34 = vpop.xlane.xlu0 %3362  ;;  %v8203_v52 = vsub.s32 %v3576_v10, %v8112_v23 }
 0x3eb   :  { %v3634_v44 = vrot.slane %v3363_v34, %v3530_v27  ;;  %v8137_v49 = vsel %vm3539_vm4, %v3683_v6, %v3679_v29  ;;  %v8182_v22 = vsub.s32 %v3548_v16, %v8112_v23 }
 0x3ec   :  { %v3441_v60 = vpop.xlane.xlu1 %3440 }
 0x3ed   :  { %v8134_v17 = vsel %vm3532_vm3, %v3634_v44, %v3630_v40  ;;  %v3762_v43 = vrot.slane %v3441_v60, %v3525_v12 }
 0x3ee   :  { %v3420_v63 = vpop.xlane.xlu0 %3419 }
 0x3ef   :  { %v3727_v19 = vrot.slane %v3420_v63, %v8121_v13 }
 0x3f0   :  { %v3314_v50 = vpop.xlane.xlu1 %3313 }
 0x3f1   :  { %v8144_v55 = vsel %vm3539_vm4, %v3727_v19, %v3723_v11  ;;  %v3545_v37 = vrot.slane %v3314_v50, %v8141_v58  ;;  %v8189_v11 = vsub.s32 %v3555_v18, %v8112_v23 }
 0x3f2   :  { %v3444_v41 = vpop.xlane.xlu0 %3443 }
 0x3f3   :  { %v3766_v56 = vrot.slane %v3444_v41, %v3530_v27  ;;  %v8151_v35 = vsel %vm3546_vm5, %v3545_v37, %v3540_v5 }
 0x3f4   :  { %v3366_v3 = vpop.xlane.xlu1 %3365 }
 0x3f5   :  { %v8148_v1 = vsel %vm3532_vm3, %v3766_v56, %v3762_v43  ;;  %v3639_v9 = vrot.slane %v3366_v3, %v8121_v13 }
 0x3f6   :  { %v3342_v33 = vpop.xlane.xlu0 %3341 }
 0x3f7   :  { %v3600_v54 = vrot.slane %v3342_v33, %v8141_v58  ;;  %v3640_v19 = vsel %vm3539_vm4, %v3639_v9, %v8134_v17 }
 0x3f8   :  { %v3423_v28 = vpop.xlane.xlu1 %3422 }
 0x3f9   :  { %v3732_v62 = vrot.slane %v3423_v28, %v8141_v58  ;;  %v3601_v6 = vsel %vm3546_vm5, %v3600_v54, %v8129_v25 }
 0x3fa   :  { %v3396_v24 = vpop.xlane.xlu0 %3395 }
 0x3fb   :  { %v3688_v0 = vrot.slane %v3396_v24, %v8141_v58  ;;  %v3733_v25 = vsel %vm3546_vm5, %v3732_v62, %v8144_v55 }
 0x3fc   :  { %v3317_v51 = vpop.xlane.xlu1 %3316 }
 0x3fd   :  { %v3552_v40 = vrot.slane %v3317_v51, %v8182_v22  ;;  %v3689_v60 = vsel %vm3546_vm5, %v3688_v0, %v8137_v49 }
 0x3fe   :  { %v8153_v14 = vpop.xlane.xlu0 %3446 }
 0x3ff   :  { %v3771_v50 = vrot.slane %v8153_v14, %v8121_v13  ;;  %v3554_v49 = vsel %vm3553_vm6, %v3552_v40, %v8151_v35 }
 0x400   :  { %v3369_v20 = vpop.xlane.xlu1 %3368 }
 0x401   :  { %v3644_v39 = vrot.slane %v3369_v20, %v8141_v58 }
 0x402   :  { %v3345_v32 = vpop.xlane.xlu0 %3344 }
 0x403   :  { %v3605_v44 = vrot.slane %v3345_v32, %v8182_v22  ;;  %v3645_v51 = vsel %vm3546_vm5, %v3644_v39, %v3640_v19 }
 0x404   :  { %v8155_v59 = vpop.xlane.xlu1 %3425 }
 0x405   :  { %v3606_v3 = vsel %vm3553_vm6, %v3605_v44, %v3601_v6  ;;  %v3737_v13 = vrot.slane %v8155_v59, %v8182_v22 }
 0x406   :  { %v3399_v26 = vpop.xlane.xlu0 %3398 }
 0x407   :  { %v3693_v63 = vrot.slane %v3399_v26, %v8182_v22 }
 0x408   :  { %v3320_v2 = vpop.xlane.xlu1 %3319 }
 0x409   :  { %v3559_v41 = vrot.slane %v3320_v2, %v8189_v11  ;;  %v3694_v55 = vsel %vm3553_vm6, %v3693_v63, %v3689_v60 }
 0x40a   :  { %v8157_v21 = vpop.xlane.xlu0 %3449 }
 0x40b   :  { %v3561_v32 = vsel %vm3560_vm7, %v3559_v41, %v3554_v49  ;;  %v3776_v10 = vrot.slane %v8157_v21, %v8141_v58 }
 0x40c   :  { %v8159_v27 = vpop.xlane.xlu1 %3371 }
 0x40e   :  { %v3348_v12 = vpop.xlane.xlu0 %3347 }
 0x40f   :  { %v3610_v43 = vrot.slane %v3348_v12, %v8189_v11 }
 0x410   :  { %v8163_v15 = vpop.xlane.xlu1 %3428 }
 0x411   :  { %v3611_v20 = vsel %vm3560_vm7, %v3610_v43, %v3606_v3  ;;  %v3742_v26 = vrot.slane %v8163_v15, %v8189_v11 }
 0x412   :  { %v8161_v57 = vpop.xlane.xlu0 %3401 }
 0x413   :  { %v3698_v35 = vrot.slane %v8161_v57, %v8189_v11 }
 0x414   :  { %v3323_v42 = vpop.xlane.xlu1 %3322 }
 0x415   :  { %v3566_v37 = vrot.slane %v3323_v42, %v8195_v45  ;;  %v3699_v54 = vsel %vm3560_vm7, %v3698_v35, %v3694_v55 }
 0x416   :  { %v8165_v48 = vpop.xlane.xlu0 %3452 }
 0x417   :  { %v3568_v12 = vsel %vm3567_vm8, %v3566_v37, %v3561_v32  ;;  %v3781_v39 = vrot.slane %v8165_v48, %v8182_v22 }
 0x418   :  { %v8167_v47 = vpop.xlane.xlu1 %3374 }
 0x419   :  { %v3654_v62 = vrot.slane %v8167_v47, %v8189_v11 }
 0x41a   :  { %v3351_v4 = vpop.xlane.xlu0 %3350 }
 0x41b   :  { %v3615_v33 = vrot.slane %v3351_v4, %v8195_v45 }
 0x41c   :  { %v8171_v46 = vpop.xlane.xlu1 %3431 }
 0x41d   :  { %v3616_v42 = vsel %vm3567_vm8, %v3615_v33, %v3611_v20  ;;  %v3747_v16 = vrot.slane %v8171_v46, %v8195_v45  ;;  %v3649_v46 = vrot.slane %v8159_v27, %v8182_v22  ;;  %v3822_v20 = vsub.s32 %v8109_v53, %v8112_v23 }
 0x41e   :  { %v8169_v31 = vpop.xlane.xlu0 %3404 }
 0x41f   :  { %v3703_v59 = vrot.slane %v8169_v31, %v8195_v45  ;;  %v3650_v60 = vsel %vm3553_vm6, %v3649_v46, %v3645_v51 }
 0x420   :  { %v3326_v8 = vpop.xlane.xlu1 %3325  ;;  %v3655_v48 = vsel %vm3560_vm7, %v3654_v62, %v3650_v60 }
 0x421   :  { %v3573_v24 = vrot.slane %v3326_v8, %v8198_v61 }
 0x422   :  { %v8173_v38 = vpop.xlane.xlu0 %3455 }
 0x423   :  { %v3575_v18 = vsel %vm3574_vm9, %v3573_v24, %v3568_v12  ;;  %v3786_v41 = vrot.slane %v8173_v38, %v8189_v11 }
 0x424   :  { %v8179_v29 = vpop.xlane.xlu1 %3377 }
 0x425   :  { %v3659_v21 = vrot.slane %v8179_v29, %v8195_v45 }
 0x426   :  { %v3354_v7 = vpop.xlane.xlu0 %3353 }
 0x427   :  { %v3620_v28 = vrot.slane %v3354_v7, %v8198_v61  ;;  %v3738_v7 = vsel %vm3553_vm6, %v3737_v13, %v3733_v25  ;;  %v3772_v25 = vsel %vm3539_vm4, %v3771_v50, %v8148_v1  ;;  %v3660_v49 = vsel %vm3567_vm8, %v3659_v21, %v3655_v48 }
 0x428   :  { %v3435_v34 = vpop.xlane.xlu1 %3434 }
 0x429   :  { %v3621_v57 = vsel %vm3574_vm9, %v3620_v28, %v3616_v42  ;;  %v3752_v30 = vrot.slane %v3435_v34, %v8198_v61  ;;  %v3704_v34 = vsel %vm3567_vm8, %v3703_v59, %v3699_v54 }
 0x42a   :  { %v8191_v5 = vpop.xlane.xlu0 %3407 }
 0x42b   :  { %v3708_v15 = vrot.slane %v8191_v5, %v8198_v61  ;;  %v3743_v5 = vsel %vm3560_vm7, %v3742_v26, %v3738_v7 }
 0x42c   :  { %v3330_v17 = vpop.xlane.xlu1 %3329  ;;  %v3748_v58 = vsel %vm3567_vm8, %v3747_v16, %v3743_v5 }
 0x42d   :  { %v3580_v14 = vrot.slane %v3330_v17, %v8203_v52  ;;  %v3709_v27 = vsel %vm3574_vm9, %v3708_v15, %v3704_v34  ;;  %v3753_v63 = vsel %vm3574_vm9, %v3752_v30, %v3748_v58  ;;  %v3777_v17 = vsel %vm3546_vm5, %v3776_v10, %v3772_v25 }
 0x42e   :  { %v8215_v56 = vpop.xlane.xlu0 %3458  ;;  %v3782_v3 = vsel %vm3553_vm6, %v3781_v39, %v3777_v17 }
 0x42f   :  { %v3582_v36 = vsel %vm3581_vm10, %v3580_v14, %v3575_v18  ;;  %v3791_v22 = vrot.slane %v8215_v56, %v8195_v45  ;;  %v3787_v50 = vsel %vm3560_vm7, %v3786_v41, %v3782_v3 }
 0x430   :  { %v3381_v8 = vpop.xlane.xlu1 %3380 }
 0x431   :  { %v3664_v47 = vrot.slane %v3381_v8, %v8198_v61  ;;  %v3792_v56 = vsel %vm3567_vm8, %v3791_v22, %v3787_v50 }
 0x432   :  { %v3357_v2 = vpop.xlane.xlu0 %3356 }
 0x433   :  { %v3625_v4 = vrot.slane %v3357_v2, %v8203_v52  ;;  %v3665_v1 = vsel %vm3574_vm9, %v3664_v47, %v3660_v49 }
 0x434   :  { %v3438_v44 = vpop.xlane.xlu1 %3437 }
 0x435   :  { %v3626_v31 = vsel %vm3581_vm10, %v3625_v4, %v3621_v57  ;;  %v3757_v6 = vrot.slane %v3438_v44, %v8203_v52 }
 0x436   :  { %v3411_v9 = vpop.xlane.xlu0 %3410  ;;  %v3804_v0 = vsel %vm3803_vm11, %v3626_v31, %v3582_v36 }
 0x437   :  { %v3713_v40 = vrot.slane %v3411_v9, %v8203_v52  ;;  %v3758_v29 = vsel %vm3581_vm10, %v3757_v6, %v3753_v63 }
 0x438   :  { %v3384_v37 = vpop.xlane.xlu1 %3383 }
 0x439   :  { %v3714_v19 = vsel %vm3581_vm10, %v3713_v40, %v3709_v27  ;;  %v3669_v11 = vrot.slane %v3384_v37, %v8203_v52 }
 0x43a   :  { %v3462_v43 = vpop.xlane.xlu0 %3461  ;;  %v3807_v33 = vsel %vm3803_vm11, %v3758_v29, %v3714_v19 }
 0x43b   :  { %v3796_v38 = vrot.slane %v3462_v43, %v8198_v61  ;;  %v3670_v45 = vsel %vm3581_vm10, %v3669_v11, %v3665_v1 }
 0x43c   :  { %v3806_v51 = vsel %vm3805_vm12, %v3670_v45, %v3804_v0 }
 0x43d   :  { %v3797_v61 = vsel %vm3574_vm9, %v3796_v38, %v3792_v56  ;;  %v3812_v55 = vsel %vm3811_vm13, %v3806_v51, 0.0 }
 0x43e   :  { %v3465_v24 = vpop.xlane.xlu0 %3464  ;;  %3813 = vadd.xlane.f32.xlu1 %v3812_v55 }
 0x43f   :  { %v3801_v28 = vrot.slane %v3465_v24, %v8203_v52 }
 0x441   :  { %v3802_v13 = vsel %vm3581_vm10, %v3801_v28, %v3797_v61 }
 0x442   :  { %v3808_v14 = vsel %vm3805_vm12, %v3802_v13, %v3807_v33 }
 0x443   :  { %v3815_v32 = vsel %vm3811_vm13, %v3808_v14, 0.0 }
 0x444   :  { %3816 = vadd.xlane.f32.xlu0 %v3815_v32 }
 0x4cb   :  { %v3814_v35 = vpop.xlane.xlu1 %3813 }
 0x4cc   :  { %v3823_v2 = vrot.slane %v3814_v35, %v3822_v20 }
 0x4d1   :  { %v3817_v26 = vpop.xlane.xlu0 %3816 }
 0x4d2   :  { %v3827_v12 = vrot.slane %v3817_v26, %v3822_v20 }
 0x4d4   :  { %v3828_v52 = vsel %vm3803_vm11, %v3827_v12, %v3823_v2 }
 0x4d5   :  { %v3831_v42 = vsel %vm3830_vm14, %v3828_v52, 0.0 }
 0x4d6   :  { %3832 = vadd.xlane.f32.xlu1 %v3831_v42 }
 0x563   :  { %v3833_v59 = vpop.xlane.xlu1 %3832 }
 0x564   :  { %v3834_v4 = vmul.f32 0.00081380206, %v3833_v59 }
 0x566   :  { %3835 = vst [vmem:[#allocation2] sm:$0x3] %v3834_v4 }
 0x567   :  { %3921 = shalt.err (!%p3918_p4)
}
 0x568   :  { %s3922_s12 = scalar_lea.hbm %s8317_s3, 32 }
 0x569   :  { %p3923_p5 = scmp.ne.s32.totalorder %s8317_s3, %s3922_s12  ;;  %p3926_p6 = scmp.lt.u32.totalorder %s3922_s12, %s8317_s3 }
 0x56b   :  { %p3928_p7 = pnand %p3926_p6, %p3923_p5 }
 0x56d   :  { %3931 = shalt.err (!%p3928_p7)
}
 0x56e   :  { %3845 = dma.vmem_to_hbm [thread:$0]  %s3843_s21, 32, %s8317_s3, [#allocation3]  }
 0x56f   :  { %3932 = dma.done.wait [#allocation3], 32  }
 0x570   :  { %3933 = vsyncadd [#allocation3], 4294967264 }
 0x571   :  { %3849 = vsyncpa [#allocation3], 1 }

</bundles_post_ra>
